<compile_context>
chip_gen: v5e
topology: v5e:2x2
jax: 0.10.0
libtpu: 0.0.40
codegen_flags: <defaults>
</compile_context>

<pallas_src>
import numpy as np

import jax
import jax.numpy as jnp
from jax.experimental import pallas as pl
from jax.experimental.pallas import tpu as pltpu

WINDOW_SIZE = 120  # Interpolator.window_size


def _depth_weight_matrix(d_in, d_out):
    """(d_out, d_in) f32 matrix implementing PyTorch half-pixel
    (align_corners=False) 1-D linear interpolation along depth."""
    od = np.arange(d_out, dtype=np.float64)
    src = np.maximum((od + 0.5) * (d_in / d_out) - 0.5, 0.0)
    d0 = np.minimum(np.floor(src).astype(np.int64), d_in - 1)
    d1 = np.minimum(d0 + 1, d_in - 1)
    w1 = (src - d0).astype(np.float32)
    w0 = (1.0 - w1).astype(np.float32)
    w = np.zeros((d_out, d_in), dtype=np.float32)
    np.add.at(w, (np.arange(d_out), d0), w0)
    np.add.at(w, (np.arange(d_out), d1), w1)
    return w


def _make_interp_kernel(b_tile):
    """Kernel: w (D_out, D_in), x (b_tile, D_in, s_tile) -> o (b_tile, D_out, s_tile)."""
    def kernel(w_ref, x_ref, o_ref):
        w = w_ref[...]
        for b in range(b_tile):            # small static unroll; one dot + one dense store each
            y = jnp.dot(
                w,
                x_ref[b],
                preferred_element_type=jnp.float32,
                precision=jax.lax.Precision.HIGHEST,
            )
            o_ref[b] = y.astype(o_ref.dtype)
    return kernel


def interpolator_forward(sample, indexes=None, window_size=WINDOW_SIZE):
    """Pallas equivalent of Interpolator.forward (`indexes` unused, as in torch)."""
    del indexes  # unused by the torch forward as well
    N, C, D_in, H, W = sample.shape
    B = N * C
    S = H * W
    D_out = window_size
    itemsize = jnp.dtype(sample.dtype).itemsize

    # (N, C, D, H, W) -> (B, D_in, S): pure reshape, no HBM copy.
    x = sample.reshape(B, D_in, S)
    w = jnp.asarray(_depth_weight_matrix(D_in, D_out))

    # --- tile selection ------------------------------------------------------
    # Double-buffered in+out residency target; safe on v7x (64 MiB VMEM/TC),
    # comfortable on v5e/v6e (128 MiB).
    budget = 24 * 1024 * 1024
    lane_bytes = 2 * (D_in + D_out) * itemsize          # in + out, double-buffered, per lane
    s_cap = max(budget // lane_bytes, 512)
    if S <= s_cap:
        s_tile = S                                      # full extent: always legal
    else:
        s_tile = max((s_cap // 128) * 128, 128)         # lane-dense tile, cdiv handles remainder

    # Grow b_tile toward ~4 MiB of output per block for small-S shapes, but
    # keep >= 2 grid steps along B so both v7x TensorCores get work.
    out_block_target = 4 * 1024 * 1024
    b_tile = max(out_block_target // (D_out * s_tile * itemsize), 1)
    b_tile = int(min(b_tile, max(B // 2, 1), 8))

    # Ensure >= 2 total grid steps when possible (megacore on v7x).
    if pl.cdiv(B, b_tile) * pl.cdiv(S, s_tile) < 2 and S >= 256:
        s_tile = max(((pl.cdiv(S, 2) + 127) // 128) * 128, 128)

    grid = (pl.cdiv(B, b_tile), pl.cdiv(S, s_tile))
    kernel = _make_interp_kernel(b_tile)

    cost = pl.CostEstimate(
        flops=2 * B * D_out * D_in * S,
        transcendentals=0,
        bytes_accessed=(D_in + D_out) * B * S * itemsize,
    )

    out = pl.pallas_call(
        kernel,
        out_shape=jax.ShapeDtypeStruct((B, D_out, S), sample.dtype),
        grid=grid,
        in_specs=[
            pl.BlockSpec((D_out, D_in), lambda i, j: (0, 0)),           # weights (resident)
            pl.BlockSpec((b_tile, D_in, s_tile), lambda i, j: (i, 0, j)),
        ],
        out_specs=pl.BlockSpec((b_tile, D_out, s_tile), lambda i, j: (i, 0, j)),
        compiler_params=pltpu.CompilerParams(
            dimension_semantics=("parallel", "parallel"),
            vmem_limit_bytes=48 * 1024 * 1024,
        ),
        cost_estimate=cost,
    )(w, x)

    # (B, D_out, S) -> (N, C, D_out, H, W): pure reshape, no HBM copy.
    return out.reshape(N, C, D_out, H, W)


def _reference(sample, window_size=WINDOW_SIZE):
    """Pure-JAX reference with the same half-pixel linear-interp semantics."""
    N, C, D_in, H, W = sample.shape
    od = jnp.arange(window_size, dtype=jnp.float32)
    src = jnp.maximum((od + 0.5) * (D_in / window_size) - 0.5, 0.0)
    d0 = jnp.floor(src).astype(jnp.int32)
    d1 = jnp.minimum(d0 + 1, D_in - 1)
    w1 = (src - d0.astype(jnp.float32)).reshape(1, 1, -1, 1, 1)
    x0 = jnp.take(sample, d0, axis=2)
    x1 = jnp.take(sample, d1, axis=2)
    return (1.0 - w1) * x0 + w1 * x1


if __name__ == "__main__":
    key = jax.random.PRNGKey(0)
    # Small 5-D video-like input: (N, C, D, H, W)
    N, C, D_in, H, W = 2, 4, 16, 16, 16
    sample = jax.random.normal(key, (N, C, D_in, H, W), dtype=jnp.float32)
    # `indexes` is accepted but unused by the torch forward; keep parity.
    indexes = jnp.tile(jnp.arange(D_in)[None, :], (N, 1))

    out = interpolator_forward(sample, indexes)
    out = jax.block_until_ready(out)

    assert out.shape == (N, C, WINDOW_SIZE, H, W), out.shape
    ref = jax.block_until_ready(_reference(sample))
    assert jnp.allclose(out, ref, atol=1e-5, rtol=1e-5), "mismatch vs reference"

    print("KERNEL_OK")
</pallas_src>

<mosaic_0001>
module attributes {stable_mosaic.version = 11 : i64} {
  func.func @kernel(%arg0: i32, %arg1: i32, %arg2: memref<120x16xf32, #tpu.memory_space<vmem>>, %arg3: memref<4x16x256xf32, #tpu.memory_space<vmem>>, %arg4: memref<4x120x256xf32, #tpu.memory_space<vmem>>) attributes {dimension_semantics = [#tpu.dimension_semantics<parallel>, #tpu.dimension_semantics<parallel>], iteration_bounds = array<i64: 2, 1>, scalar_prefetch = 0 : i64, scratch_operands = 0 : i64, tpu.core_type = #tpu.core_type<tc>, window_params = [{pipeline_mode = #tpu.pipeline_mode<synchronous>, transform_indices = @transform_0, window_bounds = array<i64: 120, 16>}, {transform_indices = @transform_1, window_bounds = array<i64: 4, 16, 256>}, {transform_indices = @transform_2, window_bounds = array<i64: 4, 120, 256>}]} {
    %c0 = arith.constant 0 : index
    %c0_0 = arith.constant 0 : index
    %0 = vector.load %arg2[%c0, %c0_0] : memref<120x16xf32, #tpu.memory_space<vmem>>, vector<120x16xf32>
    %c0_1 = arith.constant 0 : index
    %c0_2 = arith.constant 0 : index
    %c0_3 = arith.constant 0 : index
    %1 = vector.load %arg3[%c0_1, %c0_2, %c0_3] : memref<4x16x256xf32, #tpu.memory_space<vmem>>, vector<1x16x256xf32>
    %2 = vector.shape_cast %1 : vector<1x16x256xf32> to vector<16x256xf32>
    %cst = arith.constant dense<0.000000e+00> : vector<120x256xf32>
    %3 = tpu.matmul %0, %2, %cst {dimension_numbers = #tpu.dot_dimension_numbers<[1], [0], [0], [1], [0, 0, 1, 1], [], []>, precision = #tpu.contract_precision<fp32>} : vector<120x16xf32>, vector<16x256xf32>, vector<120x256xf32> -> vector<120x256xf32>
    %c0_4 = arith.constant 0 : index
    %c0_5 = arith.constant 0 : index
    %c0_6 = arith.constant 0 : index
    %4 = vector.load %arg4[%c0_4, %c0_5, %c0_6] : memref<4x120x256xf32, #tpu.memory_space<vmem>>, vector<1x120x256xf32>
    %5 = vector.shape_cast %4 : vector<1x120x256xf32> to vector<120x256xf32>
    %6 = vector.shape_cast %3 : vector<120x256xf32> to vector<1x120x256xf32>
    tpu.vector_store %arg4[%c0_4, %c0_5, %c0_6], %6 {strides = array<i32>} : memref<4x120x256xf32, #tpu.memory_space<vmem>>, vector<1x120x256xf32>,
    %c1 = arith.constant 1 : index
    %c0_7 = arith.constant 0 : index
    %c0_8 = arith.constant 0 : index
    %7 = vector.load %arg3[%c1, %c0_7, %c0_8] : memref<4x16x256xf32, #tpu.memory_space<vmem>>, vector<1x16x256xf32>
    %8 = vector.shape_cast %7 : vector<1x16x256xf32> to vector<16x256xf32>
    %cst_9 = arith.constant dense<0.000000e+00> : vector<120x256xf32>
    %9 = tpu.matmul %0, %8, %cst_9 {dimension_numbers = #tpu.dot_dimension_numbers<[1], [0], [0], [1], [0, 0, 1, 1], [], []>, precision = #tpu.contract_precision<fp32>} : vector<120x16xf32>, vector<16x256xf32>, vector<120x256xf32> -> vector<120x256xf32>
    %c1_10 = arith.constant 1 : index
    %c0_11 = arith.constant 0 : index
    %c0_12 = arith.constant 0 : index
    %10 = vector.load %arg4[%c1_10, %c0_11, %c0_12] : memref<4x120x256xf32, #tpu.memory_space<vmem>>, vector<1x120x256xf32>
    %11 = vector.shape_cast %10 : vector<1x120x256xf32> to vector<120x256xf32>
    %12 = vector.shape_cast %9 : vector<120x256xf32> to vector<1x120x256xf32>
    tpu.vector_store %arg4[%c1_10, %c0_11, %c0_12], %12 {strides = array<i32>} : memref<4x120x256xf32, #tpu.memory_space<vmem>>, vector<1x120x256xf32>,
    %c2 = arith.constant 2 : index
    %c0_13 = arith.constant 0 : index
    %c0_14 = arith.constant 0 : index
    %13 = vector.load %arg3[%c2, %c0_13, %c0_14] : memref<4x16x256xf32, #tpu.memory_space<vmem>>, vector<1x16x256xf32>
    %14 = vector.shape_cast %13 : vector<1x16x256xf32> to vector<16x256xf32>
    %cst_15 = arith.constant dense<0.000000e+00> : vector<120x256xf32>
    %15 = tpu.matmul %0, %14, %cst_15 {dimension_numbers = #tpu.dot_dimension_numbers<[1], [0], [0], [1], [0, 0, 1, 1], [], []>, precision = #tpu.contract_precision<fp32>} : vector<120x16xf32>, vector<16x256xf32>, vector<120x256xf32> -> vector<120x256xf32>
    %c2_16 = arith.constant 2 : index
    %c0_17 = arith.constant 0 : index
    %c0_18 = arith.constant 0 : index
    %16 = vector.load %arg4[%c2_16, %c0_17, %c0_18] : memref<4x120x256xf32, #tpu.memory_space<vmem>>, vector<1x120x256xf32>
    %17 = vector.shape_cast %16 : vector<1x120x256xf32> to vector<120x256xf32>
    %18 = vector.shape_cast %15 : vector<120x256xf32> to vector<1x120x256xf32>
    tpu.vector_store %arg4[%c2_16, %c0_17, %c0_18], %18 {strides = array<i32>} : memref<4x120x256xf32, #tpu.memory_space<vmem>>, vector<1x120x256xf32>,
    %c3 = arith.constant 3 : index
    %c0_19 = arith.constant 0 : index
    %c0_20 = arith.constant 0 : index
    %19 = vector.load %arg3[%c3, %c0_19, %c0_20] : memref<4x16x256xf32, #tpu.memory_space<vmem>>, vector<1x16x256xf32>
    %20 = vector.shape_cast %19 : vector<1x16x256xf32> to vector<16x256xf32>
    %cst_21 = arith.constant dense<0.000000e+00> : vector<120x256xf32>
    %21 = tpu.matmul %0, %20, %cst_21 {dimension_numbers = #tpu.dot_dimension_numbers<[1], [0], [0], [1], [0, 0, 1, 1], [], []>, precision = #tpu.contract_precision<fp32>} : vector<120x16xf32>, vector<16x256xf32>, vector<120x256xf32> -> vector<120x256xf32>
    %c3_22 = arith.constant 3 : index
    %c0_23 = arith.constant 0 : index
    %c0_24 = arith.constant 0 : index
    %22 = vector.load %arg4[%c3_22, %c0_23, %c0_24] : memref<4x120x256xf32, #tpu.memory_space<vmem>>, vector<1x120x256xf32>
    %23 = vector.shape_cast %22 : vector<1x120x256xf32> to vector<120x256xf32>
    %24 = vector.shape_cast %21 : vector<120x256xf32> to vector<1x120x256xf32>
    tpu.vector_store %arg4[%c3_22, %c0_23, %c0_24], %24 {strides = array<i32>} : memref<4x120x256xf32, #tpu.memory_space<vmem>>, vector<1x120x256xf32>,
    return
  }
  func.func @transform_0(%arg0: i32, %arg1: i32) -> (i32, i32) {
    %c0_i32 = arith.constant 0 : i32
    %c0_i32_0 = arith.constant 0 : i32
    %c0_i32_1 = arith.constant 0 : i32
    return %c0_i32, %c0_i32_0 : i32, i32
  }
  func.func @transform_1(%arg0: i32, %arg1: i32) -> (i32, i32, i32) {
    %c0_i32 = arith.constant 0 : i32
    %c0_i32_0 = arith.constant 0 : i32
    return %arg0, %c0_i32, %arg1 : i32, i32, i32
  }
  func.func @transform_2(%arg0: i32, %arg1: i32) -> (i32, i32, i32) {
    %c0_i32 = arith.constant 0 : i32
    %c0_i32_0 = arith.constant 0 : i32
    return %arg0, %c0_i32, %arg1 : i32, i32, i32
  }
}

</mosaic_0001>

<bundles_post_ra>
// kernel: tpu_custom_call.1
= control target key start
LH: loop header
LB: loop body
LE: loop exit
PB: predicated region body
PF: predicated region fallthrough
CT: control target
= control target key end

     0   :  { %7 = vsyncpa [#allocation3], 0  ;;  %s7247_s0 = inlined_call_operand.vmem [shape: f32[120,16], index: 0, kind: input, shape index: {}]   ;;  %s7248_s1 = inlined_call_operand.hbm [shape: f32[8,16,256], index: 1, kind: input, shape index: {}]   ;;  %s7249_s2 = inlined_call_operand.hbm [shape: f32[8,120,256], index: 2, kind: output, shape index: {}]  }
   0x1   :  { %9 = vsyncpa [#allocation3 + $0x1], 0 }
   0x2   :  { %10 = vsyncpa [#allocation4], 0 }
   0x3   :  { %12 = vsyncpa [#allocation4 + $0x1], 0  ;;  %s5560_s9 = smov 0   ;;  %s5562_s10 = smov 0  }
   0x4   :  { %s5564_s11 = smov 0   ;;  %s5566_s12 = smov 0  }
   0x5   :  { %s5568_s13 = smov 0   ;;  %s5570_s14 = smov 0  }
   0x6 LB: > { %s5240_s15 = sadd.s32 4294967295, %s5539_s14   ;;  %s5241_s16 = sadd.s32 4294967294, %s5539_s14   ;;  %s5539_s14 = sphi %s5570_s14, %s18_s14   ;;  %s5535_s13 = sphi %s5568_s13, %s7566_s13   ;;  %s5531_s12 = sphi %s5566_s12, %s7565_s12   ;;  %s5527_s11 = sphi %s5564_s11, %s7564_s11   ;;  %s5523_s10 = sphi %s5562_s10, %s7563_s10   ;;  %s5519_s9 = sphi %s5560_s9, %s7562_s9  }
   0x7   : > { %s30_s17 = sadd.s32 1, %s5535_s13  ;;  %s60_s18 = sadd.s32 1, %s5527_s11 }
   0x8   : > { %p32_p0 = scmp.ge.s32.totalorder %s30_s17, 2  ;;  %p67_p1 = scmp.ne.s32.totalorder %s5527_s11, %s5523_s10 }
   0x9   : > { %p68_p2 = scmp.eq.s32.totalorder %s5539_s14, 0  ;;  %p73_p3 = scmp.ne.s32.totalorder %s5523_s10, %s5519_s9 }
   0xa   : > { %s7568_s17 = smov (%p32_p0, %s30_s17), 0  ;;  %p74_p5 = scmp.eq.s32.totalorder %s5240_s15, 0 }
   0xb   : > { %p5601_p4 = por %p68_p2, %p67_p1  ;;  %s55_s20 = ssub.s32 %s5535_s13, %s7568_s17 }
   0xc   : > { %p99_p6 = scmp.eq.s32.totalorder %s5240_s15, 1  ;;  %p58_p7 = scmp.eq.s32.totalorder %s55_s20, 0 }
   0xd   : > { %p5607_p8 = por %p74_p5, %p73_p3  ;;  %p105_p10 = scmp.eq.s32.totalorder %s5241_s16, 1 }
   0xe   : > { %p5611_p9 = por %p99_p6, %p67_p1  ;;  %p5243_p12 = scmp.ge.s32.totalorder %s5539_s14, 2 }
   0xf   : > { %s5616_s23 = scalar_select %p58_p7, %s5527_s11, %s60_s18  }
  0x10   : > { %p5618_p11 = por %p105_p10, %p73_p3  ;;  %p5373_p13 = scmp.lt.s32.totalorder %s5539_s14, 2 }
  0x11   : > { %s128_s25 = sand.u32 1, %s5527_s11   ;;  %s5358_s27 = sshll.u32 %s5535_s13, 7 }
  0x12   : > { %s5244_s26 = sshll.u32 %s128_s25, 7  ;;  %s140_s30 = scalar_lea.hbm %s7248_s1, %s5358_s27 }
  0x13   : > { %s132_s3 = scalar_lea.vmem [#allocation2], %s5244_s26  ;;  %s141_s5 = sshll.u32 %s140_s30, 4  ;;  %s142_s5 = int_to_ptr.hbm [resolvable:$true] %s141_s5 }
  0x14   : > { %s143_s4 = sshll.u32 %s132_s3, 4  ;;  %p5366_p0 = pnand %p5373_p13, %p5601_p4  ;;  %s144_s4 = int_to_ptr.vmem [resolvable:$true] %s143_s4 }
  0x15   : > { %p5248_p1 = scmp.ge.s32.totalorder %s5539_s14, 1  ;;  %s129_s6 = scalar_lea.sflag [#allocation3], %s128_s25 }
  0x16   : > { %s5541_s7 = smov 256   ;;  %s5542_s8 = smov 16  }
  0x17   : > { %5368 = dma.hbm_to_vmem [thread:$0]  (!%p5366_p0), %s142_s5, 2048, %s144_s4, %s129_s6, %s5541_s7, %s5541_s7, %s5542_s8  }
  0x18   : > { %p151_p2 = scmp.lt.s32.totalorder %s5539_s14, 3 }
  0x1a   : > { %p152_p3 = pnand %p5248_p1, %p151_p2 }
  0x1c   : > { %155 = sbr.rel (%p152_p3) target bundleno = 1620 (0x654), region = 28 }
  0x21   : > { %s5634_s15 = sand.u32 1, %s5523_s10  }
  0x22   : > { %s5249_s16 = sshll.u32 %s5634_s15, 7  ;;  %s158_s18 = scalar_lea.sflag [#allocation3], %s5634_s15 }
  0x23   : > { %s5638_s20 = scalar_lea.vmem [#allocation2], %s5249_s16 }
  0x24   : > { %5510 = dma.done.wait (%p5607_p8), %s158_s18, 2048  }
  0x25   : > { %5512 = vsyncadd (%p5607_p8), %s158_s18, 4294965248  ;;  %vm206_vm0 = vcmask 130048   ;;  %v204_v0 = vld [vmem:[%s5638_s20 + $0x10] sm:$0xff]  ;;  %v202_v1 = vld [vmem:[%s5638_s20] sm:$0xff]  ;;  %s5359_s16 = smul.u32 960, %s5634_s15  ;;  %s5477_s4 = scalar_lea.hbm %s7249_s2, 1920 }
  0x26   : > { %v187_v2 = vld [vmem:[%s7247_s0] sm:$0xff]  ;;  %v266_v3 = vand.u32 4294901760, %v204_v0  ;;  %v268_v4 = vand.u32 4294901760, %v202_v1  ;;  %v205_v6 = vld [vmem:[%s5638_s20 + $0x18] sm:$0xff]  ;;  %v188_v7 = vld [vmem:[%s7247_s0 + $0x8] sm:$0xff] }
  0x27   : > { %v208_v5 = vsel %vm206_vm0, %v187_v2, 0  ;;  %v5656_v9 = vand.u32 4294901760, %v205_v6  ;;  %v211_v10 = vsel %vm206_vm0, %v188_v7, 0  ;;  %v189_v11 = vld [vmem:[%s7247_s0 + $0x10] sm:$0xff]  ;;  %v190_v33 = vld [vmem:[%s7247_s0 + $0x18] sm:$0xff]  ;;  %v191_v40 = vld [vmem:[%s7247_s0 + $0x20] sm:$0xff] }
  0x28   : > { %v5654_v8 = vand.u32 4294901760, %v208_v5  ;;  %v406_v12 = vsub.f32 %v204_v0, %v266_v3  ;;  %589 = vmatpush.msra.mxu3 %v266_v3  ;;  %267 = vmatpush.msra.mxu0 %v266_v3  ;;  %v412_v13 = vsub.f32 %v202_v1, %v268_v4  ;;  %v5662_v14 = vand.u32 4294901760, %v211_v10  ;;  %v192_v47 = vld [vmem:[%s7247_s0 + $0x28] sm:$0xff]  ;;  %v193_v54 = vld [vmem:[%s7247_s0 + $0x30] sm:$0xff]  ;;  %v194_v0 = vld [vmem:[%s7247_s0 + $0x38] sm:$0xff]  ;;  %s6077_s18 = scalar_lea.vmem [#allocation5], %s5359_s16 }
  0x29   : > { %v5668_v16 = vsub.f32 %v205_v6, %v5656_v9  ;;  %v214_v20 = vsel %vm206_vm0, %v189_v11, 0  ;;  %v217_v36 = vsel %vm206_vm0, %v190_v33, 0  ;;  %v220_v43 = vsel %vm206_vm0, %v191_v40, 0  ;;  %v203_v58 = vld [vmem:[%s5638_s20 + $0x8] sm:$0xff]  ;;  %s5150_s27 = sshll.u32 %s6077_s18, 4  ;;  %s5151_s27 = int_to_ptr.vmem [resolvable:$true] %s5150_s27 }
  0x2a   : > { %7395 = vst [vmem:[#allocation8_spill] sm:$0xff] %v5654_v8  ;;  %v5665_v15 = vsub.f32 %v208_v5, %v5654_v8  ;;  %494 = vmatpush.msra.mxu2 %v406_v12  ;;  %591 = vmatpush.msra.mxu3 %v268_v4  ;;  %v407_v17 = vand.u32 4294901760, %v406_v12  ;;  %v413_v18 = vand.u32 4294901760, %v412_v13  ;;  %v5671_v19 = vsub.f32 %v211_v10, %v5662_v14 }
  0x2b   : > { %7396 = vst [vmem:[#allocation9_spill] sm:$0xff] %v5662_v14  ;;  %269 = vmatpush.msra.mxu0 %v268_v4  ;;  %v1000_v22 = vand.u32 4294901760, %v5668_v16  ;;  %v5688_v28 = vand.u32 4294901760, %v214_v20  ;;  %v5712_v39 = vand.u32 4294901760, %v217_v36  ;;  %v5733_v46 = vand.u32 4294901760, %v220_v43 }
  0x2c   : > { %7397 = vst [vmem:[#allocation10_spill] sm:$0xff] %v5665_v15  ;;  %v5675_v21 = vand.u32 4294901760, %v5665_v15  ;;  %497 = vmatpush.msra.mxu2 %v412_v13  ;;  %v408_v23 = vsub.f32 %v406_v12, %v407_v17  ;;  %v414_v24 = vsub.f32 %v412_v13, %v413_v18  ;;  %v5686_v27 = vand.u32 4294901760, %v5671_v19  ;;  %v195_v12 = vld [vmem:[%s7247_s0 + $0x40] sm:$0xff] }
  0x2d   : > { %7398 = vst [vmem:[#allocation11_spill] sm:$0xff] %v5671_v19  ;;  %700 = vmatpush.msrb.mxu0 %v407_v17  ;;  %500 = vmatmul.f32.vlgmr.msra.gmra.mxu2 %v5665_v15  ;;  %v1001_v26 = vsub.f32 %v5668_v16, %v1000_v22  ;;  %v5700_v35 = vsub.f32 %v214_v20, %v5688_v28  ;;  %v223_v50 = vsel %vm206_vm0, %v192_v47, 0  ;;  %v226_v57 = vsel %vm206_vm0, %v193_v54, 0  ;;  %v198_v47 = vld [vmem:[%s7247_s0 + $0x58] sm:$0xff] }
  0x2e   : > { %7399 = vst [vmem:[#allocation12_spill] sm:$0xff] %v5675_v21  ;;  %595 = vmatmul.f32.vlgmr.msra.gmra.mxu3 %v5675_v21  ;;  %v273_v25 = vsub.f32 %v5665_v15, %v5675_v21  ;;  %860 = vmatpush.msrb.mxu2 %v5656_v9  ;;  %v409_v29 = vand.u32 4294901760, %v408_v23  ;;  %v415_v30 = vand.u32 4294901760, %v414_v24  ;;  %v281_v34 = vsub.f32 %v5671_v19, %v5686_v27 }
  0x2f   : > { %7400 = vst [vmem:[#allocation13_spill] sm:$0xff] %v5686_v27  ;;  %704 = vmatpush.msrb.mxu0 %v413_v18  ;;  %v1002_v32 = vand.u32 4294901760, %v1001_v26  ;;  %v5710_v38 = vand.u32 4294901760, %v5700_v35  ;;  %v5722_v42 = vsub.f32 %v217_v36, %v5712_v39  ;;  %v5742_v49 = vsub.f32 %v220_v43, %v5733_v46 }
  0x30   : > { %7401 = vst [vmem:[#allocation14_spill] sm:$0xff] %v5688_v28  ;;  %v5691_v31 = vand.u32 4294901760, %v273_v25  ;;  %410 = vmatpush.msra.mxu1 %v409_v29  ;;  %v5707_v37 = vand.u32 4294901760, %v281_v34  ;;  %v5753_v53 = vand.u32 4294901760, %v223_v50  ;;  %v861_v59 = vand.u32 4294901760, %v203_v58 }
  0x31   : > { %1003 = vmatpush.msrb.mxu3 %v1002_v32  ;;  %7403 = vst [vmem:[#allocation16_spill] sm:$0xff] %v5700_v35  ;;  %v289_v41 = vsub.f32 %v5700_v35, %v5710_v38  ;;  %v5731_v45 = vand.u32 4294901760, %v5722_v42  ;;  %v5751_v52 = vand.u32 4294901760, %v5742_v49  ;;  %v5774_v62 = vand.u32 4294901760, %v226_v57  ;;  %v197_v32 = vld [vmem:[%s7247_s0 + $0x50] sm:$0xff] }
  0x32   : > { %7402 = vst [vmem:[#allocation15_spill] sm:$0xff] %v5691_v31  ;;  %275 = vmatmul.f32.vlgmr.msra.gmra.mxu0 %v5691_v31  ;;  %416 = vmatpush.msra.mxu1 %v415_v30  ;;  %v5762_v56 = vsub.f32 %v223_v50, %v5753_v53  ;;  %v1005_v63 = vsub.f32 %v203_v58, %v861_v59  ;;  %v232_v17 = vsel %vm206_vm0, %v195_v12, 0  ;;  %v238_v36 = vsel %vm206_vm0, %v197_v32, 0  ;;  %v201_v32 = vld [vmem:[%s7247_s0 + $0x70] sm:$0xff] }
  0x33   : > { %1087 = vmatpush.msra.mxu0 %v5668_v16  ;;  %418 = vmatmul.f32.vlgmr.msra.gmra.mxu1 %v5654_v8  ;;  %7404 = vst [vmem:[#allocation17_spill] sm:$0xff] %v5707_v37  ;;  %v5728_v44 = vand.u32 4294901760, %v289_v41  ;;  %v297_v48 = vsub.f32 %v5722_v42, %v5731_v45  ;;  %v305_v55 = vsub.f32 %v5742_v49, %v5751_v52  ;;  %v5817_v20 = vand.u32 4294901760, %v232_v17 }
  0x34   : > { %781 = vmatpush.msrb.mxu1 %v266_v3  ;;  %7405 = vst [vmem:[#allocation18_spill] sm:$0xff] %v5710_v38  ;;  %v5772_v61 = vand.u32 4294901760, %v5762_v56  ;;  %862 = vmatpush.msrb.mxu2 %v861_v59  ;;  %v1006_v1 = vand.u32 4294901760, %v1005_v63  ;;  %v5785_v3 = vsub.f32 %v226_v57, %v5774_v62  ;;  %v5857_v43 = vand.u32 4294901760, %v238_v36 }
  0x35   : > { %505 = vmatmul.f32.gmra.mxu2 %v5671_v19  ;;  %7406 = vst [vmem:[#allocation19_spill] sm:$0xff] %v5712_v39  ;;  %v5748_v51 = vand.u32 4294901760, %v297_v48  ;;  %v5769_v60 = vand.u32 4294901760, %v305_v55  ;;  %1090 = vmatpush.msra.mxu0 %v1005_v63  ;;  %v5826_v24 = vsub.f32 %v232_v17, %v5817_v20  ;;  %v241_v54 = vsel %vm206_vm0, %v198_v47, 0 }
  0x36   : > { %601 = vmatmul.f32.gmra.mxu3 %v5686_v27  ;;  %783 = vmatpush.msrb.mxu1 %v268_v4  ;;  %7407 = vst [vmem:[#allocation20_spill] sm:$0xff] %v5722_v42  ;;  %v313_v2 = vsub.f32 %v5762_v56, %v5772_v61  ;;  %v229_v4 = vsel %vm206_vm0, %v194_v0, 0  ;;  %v1007_v5 = vsub.f32 %v1005_v63, %v1006_v1  ;;  %v5794_v10 = vand.u32 4294901760, %v5785_v3 }
  0x37   : > { %7408 = vst [vmem:[#allocation21_spill] sm:$0xff] %v5728_v44  ;;  %1293 = vmatpush.msra.mxu2 %v1000_v22  ;;  %v5796_v11 = vand.u32 4294901760, %v229_v4  ;;  %v196_v22 = vld [vmem:[%s7247_s0 + $0x48] sm:$0xff]  ;;  %v5835_v29 = vand.u32 4294901760, %v5826_v24  ;;  %v5866_v50 = vsub.f32 %v238_v36, %v5857_v43  ;;  %v5877_v58 = vand.u32 4294901760, %v241_v54 }
  0x38   : > { %1182 = vmatpush.msra.mxu1 %v5656_v9  ;;  %7409 = vst [vmem:[#allocation22_spill] sm:$0xff] %v5731_v45  ;;  %v1008_v6 = vand.u32 4294901760, %v1007_v5  ;;  %v5791_v7 = vand.u32 4294901760, %v313_v2  ;;  %v321_v13 = vsub.f32 %v5785_v3, %v5794_v10  ;;  %v235_v25 = vsel %vm206_vm0, %v196_v22, 0 }
  0x39   : > { %7410 = vst [vmem:[#allocation23_spill] sm:$0xff] %v5733_v46  ;;  %1297 = vmatpush.msra.mxu2 %v1006_v1  ;;  %v5806_v16 = vsub.f32 %v229_v4, %v5796_v11  ;;  %v5837_v30 = vand.u32 4294901760, %v235_v25  ;;  %v337_v33 = vsub.f32 %v5826_v24, %v5835_v29  ;;  %v5875_v57 = vand.u32 4294901760, %v5866_v50 }
  0x3a   : > { %283 = vmatmul.f32.gmra.mxu0 %v5707_v37  ;;  %7411 = vst [vmem:[#allocation24_spill] sm:$0xff] %v5742_v49  ;;  %1184 = vmatpush.msra.mxu1 %v861_v59  ;;  %v5812_v18 = vand.u32 4294901760, %v321_v13  ;;  %v5886_v0 = vsub.f32 %v241_v54, %v5877_v58  ;;  %v250_v47 = vsel %vm206_vm0, %v201_v32, 0 }
  0x3b   : > { %422 = vmatmul.f32.gmra.mxu1 %v5662_v14  ;;  %7412 = vst [vmem:[#allocation25_spill] sm:$0xff] %v5748_v51  ;;  %1009 = vmatpush.msrb.mxu3 %v1008_v6  ;;  %v5846_v34 = vsub.f32 %v235_v25, %v5837_v30  ;;  %v5852_v40 = vand.u32 4294901760, %v337_v33  ;;  %v353_v63 = vsub.f32 %v5866_v50, %v5875_v57  ;;  %v200_v6 = vld [vmem:[%s7247_s0 + $0x68] sm:$0xff] }
  0x3c   : > { %7413 = vst [vmem:[#allocation26_spill] sm:$0xff] %v5751_v52  ;;  %v5895_v4 = vand.u32 4294901760, %v5886_v0  ;;  %v247_v17 = vsel %vm206_vm0, %v200_v6, 0 }
  0x3d   : > { %510 = vmatmul.f32.gmra.mxu2 %v5700_v35  ;;  %7414 = vst [vmem:[#allocation27_spill] sm:$0xff] %v5769_v60  ;;  %1374 = vmatpush.msra.mxu3 %v5656_v9  ;;  %v5815_v9 = vand.u32 4294901760, %v5806_v16  ;;  %v5855_v41 = vand.u32 4294901760, %v5846_v34  ;;  %v5892_v2 = vand.u32 4294901760, %v353_v63  ;;  %v5917_v25 = vand.u32 4294901760, %v247_v17 }
  0x3e   : > { %607 = vmatmul.f32.gmra.mxu3 %v5710_v38  ;;  %7415 = vst [vmem:[#allocation28_spill] sm:$0xff] %v5791_v7  ;;  %v361_v12 = vsub.f32 %v5886_v0, %v5895_v4 }
  0x3f   : > { %1376 = vmatpush.msra.mxu3 %v861_v59  ;;  %7416 = vst [vmem:[#allocation29_spill] sm:$0xff] %v5812_v18  ;;  %v329_v23 = vsub.f32 %v5806_v16, %v5815_v9  ;;  %v345_v48 = vsub.f32 %v5846_v34, %v5855_v41  ;;  %v199_v59 = vld [vmem:[%s7247_s0 + $0x60] sm:$0xff]  ;;  %v5926_v36 = vsub.f32 %v247_v17, %v5917_v25 }
  0x40   : > { %7418 = vst [vmem:[#allocation31_spill] sm:$0xff] %v5852_v40  ;;  %v244_v1 = vsel %vm206_vm0, %v199_v59, 0  ;;  %v5912_v22 = vand.u32 4294901760, %v361_v12  ;;  %v5937_v59 = vand.u32 4294901760, %v250_v47 }
  0x41   : > { %v5832_v26 = vand.u32 4294901760, %v329_v23  ;;  %v5872_v55 = vand.u32 4294901760, %v345_v48  ;;  %7420 = vst [vmem:[#allocation33_spill] sm:$0xff] %v5877_v58  ;;  %v5897_v5 = vand.u32 4294901760, %v244_v1  ;;  %v5935_v54 = vand.u32 4294901760, %v5926_v36 }
  0x42   : > { %291 = vmatmul.f32.gmra.mxu0 %v5728_v44  ;;  %7421 = vst [vmem:[#allocation34_spill] sm:$0xff] %v5886_v0 }
  0x43   : > { %426 = vmatmul.f32.gmra.mxu1 %v5688_v28  ;;  %7417 = vst [vmem:[#allocation30_spill] sm:$0xff] %v5832_v26  ;;  %v5906_v13 = vsub.f32 %v244_v1, %v5897_v5  ;;  %v377_v63 = vsub.f32 %v5926_v36, %v5935_v54  ;;  %v5943_v1 = vsub.f32 %v250_v47, %v5937_v59 }
  0x44   : > { %7419 = vst [vmem:[#allocation32_spill] sm:$0xff] %v5872_v55 }
  0x45   : > { %515 = vmatmul.f32.gmra.mxu2 %v5722_v42  ;;  %7422 = vst [vmem:[#allocation35_spill] sm:$0xff] %v5892_v2  ;;  %v5915_v23 = vand.u32 4294901760, %v5906_v13  ;;  %v5948_v6 = vand.u32 4294901760, %v377_v63  ;;  %v5951_v12 = vand.u32 4294901760, %v5943_v1 }
  0x46   : > { %613 = vmatmul.f32.gmra.mxu3 %v5731_v45  ;;  %7423 = vst [vmem:[#allocation36_spill] sm:$0xff] %v5895_v4 }
  0x47   : > { %7424 = vst [vmem:[#allocation37_spill] sm:$0xff] %v5897_v5  ;;  %v369_v33 = vsub.f32 %v5906_v13, %v5915_v23  ;;  %v385_v17 = vsub.f32 %v5943_v1, %v5951_v12 }
  0x48   : > { %7425 = vst [vmem:[#allocation38_spill] sm:$0xff] %v5906_v13 }
  0x49   : > { %7426 = vst [vmem:[#allocation39_spill] sm:$0xff] %v5912_v22  ;;  %v5932_v48 = vand.u32 4294901760, %v369_v33  ;;  %v5959_v32 = vand.u32 4294901760, %v385_v17 }
  0x4a   : > { %299 = vmatmul.f32.gmra.mxu0 %v5748_v51  ;;  %7427 = vst [vmem:[#allocation40_spill] sm:$0xff] %v5915_v23 }
  0x4b   : > { %430 = vmatmul.f32.gmra.mxu1 %v5712_v39  ;;  %7428 = vst [vmem:[#allocation41_spill] sm:$0xff] %v5917_v25 }
  0x4c   : > { %7429 = vst [vmem:[#allocation42_spill] sm:$0xff] %v5926_v36 }
  0x4d   : > { %520 = vmatmul.f32.gmra.mxu2 %v5742_v49  ;;  %7430 = vst [vmem:[#allocation43_spill] sm:$0xff] %v5932_v48 }
  0x4e   : > { %619 = vmatmul.f32.gmra.mxu3 %v5751_v52  ;;  %7431 = vst [vmem:[#allocation44_spill] sm:$0xff] %v5935_v54 }
  0x4f   : > { %7432 = vst [vmem:[#allocation45_spill] sm:$0xff] %v5937_v59 }
  0x50   : > { %7433 = vst [vmem:[#allocation46_spill] sm:$0xff] %v5943_v1 }
  0x51   : > { %7434 = vst [vmem:[#allocation47_spill] sm:$0xff] %v5948_v6 }
  0x52   : > { %307 = vmatmul.f32.gmra.mxu0 %v5769_v60  ;;  %7435 = vst [vmem:[#allocation48_spill] sm:$0xff] %v5951_v12 }
  0x53   : > { %434 = vmatmul.f32.gmra.mxu1 %v5733_v46  ;;  %7436 = vst [vmem:[#allocation49_spill] sm:$0xff] %v5959_v32 }
  0x55   : > { %525 = vmatmul.f32.gmra.mxu2 %v5762_v56 }
  0x56   : > { %625 = vmatmul.f32.gmra.mxu3 %v5772_v61 }
  0x5a   : > { %315 = vmatmul.f32.gmra.mxu0 %v5791_v7 }
  0x5b   : > { %438 = vmatmul.f32.gmra.mxu1 %v5753_v53 }
  0x5d   : > { %530 = vmatmul.f32.gmra.mxu2 %v5785_v3 }
  0x5e   : > { %631 = vmatmul.f32.gmra.mxu3 %v5794_v10 }
  0x62   : > { %323 = vmatmul.f32.gmra.mxu0 %v5812_v18 }
  0x63   : > { %442 = vmatmul.f32.gmra.mxu1 %v5774_v62 }
  0x65   : > { %535 = vmatmul.f32.gmra.mxu2 %v5806_v16 }
  0x66   : > { %637 = vmatmul.f32.gmra.mxu3 %v5815_v9 }
  0x6a   : > { %331 = vmatmul.f32.gmra.mxu0 %v5832_v26 }
  0x6b   : > { %446 = vmatmul.f32.gmra.mxu1 %v5796_v11 }
  0x6d   : > { %540 = vmatmul.f32.gmra.mxu2 %v5826_v24 }
  0x6e   : > { %643 = vmatmul.f32.gmra.mxu3 %v5835_v29 }
  0x72   : > { %339 = vmatmul.f32.gmra.mxu0 %v5852_v40 }
  0x73   : > { %450 = vmatmul.f32.gmra.mxu1 %v5817_v20 }
  0x75   : > { %545 = vmatmul.f32.gmra.mxu2 %v5846_v34 }
  0x76   : > { %649 = vmatmul.f32.gmra.mxu3 %v5855_v41 }
  0x7a   : > { %347 = vmatmul.f32.gmra.mxu0 %v5872_v55 }
  0x7b   : > { %454 = vmatmul.f32.gmra.mxu1 %v5837_v30 }
  0x7d   : > { %550 = vmatmul.f32.gmra.mxu2 %v5866_v50 }
  0x7e   : > { %655 = vmatmul.f32.gmra.mxu3 %v5875_v57 }
  0x82   : > { %355 = vmatmul.f32.gmra.mxu0 %v5892_v2 }
  0x83   : > { %458 = vmatmul.f32.gmra.mxu1 %v5857_v43 }
  0x85   : > { %555 = vmatmul.f32.gmra.mxu2 %v5886_v0 }
  0x86   : > { %661 = vmatmul.f32.gmra.mxu3 %v5895_v4 }
  0x8a   : > { %363 = vmatmul.f32.gmra.mxu0 %v5912_v22 }
  0x8b   : > { %462 = vmatmul.f32.gmra.mxu1 %v5877_v58 }
  0x8d   : > { %560 = vmatmul.f32.gmra.mxu2 %v5906_v13 }
  0x8e   : > { %667 = vmatmul.f32.gmra.mxu3 %v5915_v23 }
  0x92   : > { %371 = vmatmul.f32.gmra.mxu0 %v5932_v48 }
  0x93   : > { %466 = vmatmul.f32.gmra.mxu1 %v5897_v5 }
  0x95   : > { %565 = vmatmul.f32.gmra.mxu2 %v5926_v36 }
  0x96   : > { %673 = vmatmul.f32.gmra.mxu3 %v5935_v54 }
  0x9a   : > { %379 = vmatmul.f32.gmra.mxu0 %v5948_v6 }
  0x9b   : > { %470 = vmatmul.f32.gmra.mxu1 %v5917_v25 }
  0x9d   : > { %570 = vmatmul.f32.gmra.mxu2 %v5943_v1 }
  0x9e   : > { %679 = vmatmul.f32.gmra.mxu3 %v5951_v12 }
  0xa2   : > { %387 = vmatmul.f32.gmra.mxu0 %v5959_v32 }
  0xa3   : > { %474 = vmatmul.f32.gmra.mxu1 %v5937_v59 }
  0xa5   : > { %868 = vmatmul.f32.vlgmr.msrb.gmra.mxu2 %v5691_v31 }
  0xa6   : > { %1011 = vmatmul.f32.vlgmr.msrb.gmra.mxu3 %v5654_v8 }
  0xaa   : > { %706 = vmatmul.f32.vlgmr.msrb.gmra.mxu0 %v5654_v8 }
  0xab   : > { %785 = vmatmul.f32.vlgmr.msrb.gmra.mxu1 %v5654_v8 }
  0xad   : > { %876 = vmatmul.f32.gmra.mxu2 %v5707_v37 }
  0xae   : > { %1015 = vmatmul.f32.gmra.mxu3 %v5662_v14 }
  0xaf   : > { %v276_v33 = vpop.f32.mrf.mxu0 }
  0xb0   : > { %v419_v47 = vpop.f32.mrf.mxu1  ;;  %v501_v63 = vpop.f32.mrf.mxu2 }
  0xb1   : > { %v420_v17 = vadd.f32 %v419_v47, %v276_v33  ;;  %v596_v12 = vpop.f32.mrf.mxu3 }
  0xb2   : > { %710 = vmatmul.f32.gmra.mxu0 %v5662_v14 }
  0xb3   : > { %v502_v1 = vadd.f32 %v501_v63, %v420_v17  ;;  %789 = vmatmul.f32.gmra.mxu1 %v5662_v14 }
  0xb5   : > { %v5971_v31 = vadd.f32 %v596_v12, %v502_v1  ;;  %884 = vmatmul.f32.gmra.mxu2 %v5728_v44 }
  0xb6   : > { %1019 = vmatmul.f32.gmra.mxu3 %v5688_v28 }
  0xb7   : > { %v284_v54 = vpop.f32.mrf.mxu0 }
  0xb8   : > { %v423_v37 = vpop.f32.mrf.mxu1  ;;  %v506_v36 = vpop.f32.mrf.mxu2 }
  0xb9   : > { %v424_v23 = vadd.f32 %v423_v37, %v284_v54  ;;  %v602_v13 = vpop.f32.mrf.mxu3 }
  0xba   : > { %714 = vmatmul.f32.gmra.mxu0 %v5688_v28 }
  0xbb   : > { %v507_v33 = vadd.f32 %v506_v36, %v424_v23  ;;  %793 = vmatmul.f32.gmra.mxu1 %v5688_v28 }
  0xbd   : > { %v5977_v47 = vadd.f32 %v602_v13, %v507_v33  ;;  %892 = vmatmul.f32.gmra.mxu2 %v5748_v51 }
  0xbe   : > { %1023 = vmatmul.f32.gmra.mxu3 %v5712_v39 }
  0xbf   : > { %v292_v1 = vpop.f32.mrf.mxu0 }
  0xc0   : > { %v427_v12 = vpop.f32.mrf.mxu1  ;;  %v511_v63 = vpop.f32.mrf.mxu2 }
  0xc1   : > { %v428_v17 = vadd.f32 %v427_v12, %v292_v1  ;;  %v608_v44 = vpop.f32.mrf.mxu3 }
  0xc2   : > { %718 = vmatmul.f32.gmra.mxu0 %v5712_v39 }
  0xc3   : > { %v512_v37 = vadd.f32 %v511_v63, %v428_v17  ;;  %797 = vmatmul.f32.gmra.mxu1 %v5712_v39 }
  0xc5   : > { %v5983_v54 = vadd.f32 %v608_v44, %v512_v37  ;;  %900 = vmatmul.f32.gmra.mxu2 %v5769_v60 }
  0xc6   : > { %1027 = vmatmul.f32.gmra.mxu3 %v5733_v46 }
  0xc7   : > { %v300_v13 = vpop.f32.mrf.mxu0 }
  0xc8   : > { %v431_v23 = vpop.f32.mrf.mxu1  ;;  %v516_v36 = vpop.f32.mrf.mxu2 }
  0xc9   : > { %v432_v33 = vadd.f32 %v431_v23, %v300_v13  ;;  %v614_v51 = vpop.f32.mrf.mxu3 }
  0xca   : > { %722 = vmatmul.f32.gmra.mxu0 %v5733_v46 }
  0xcb   : > { %v517_v1 = vadd.f32 %v516_v36, %v432_v33  ;;  %801 = vmatmul.f32.gmra.mxu1 %v5733_v46 }
  0xcd   : > { %v5989_v12 = vadd.f32 %v614_v51, %v517_v1  ;;  %908 = vmatmul.f32.gmra.mxu2 %v5791_v7 }
  0xce   : > { %1031 = vmatmul.f32.gmra.mxu3 %v5753_v53 }
  0xcf   : > { %v308_v44 = vpop.f32.mrf.mxu0 }
  0xd0   : > { %v435_v63 = vpop.f32.mrf.mxu1  ;;  %v521_v17 = vpop.f32.mrf.mxu2 }
  0xd1   : > { %v436_v37 = vadd.f32 %v435_v63, %v308_v44  ;;  %v620_v60 = vpop.f32.mrf.mxu3 }
  0xd2   : > { %726 = vmatmul.f32.gmra.mxu0 %v5753_v53 }
  0xd3   : > { %v522_v13 = vadd.f32 %v521_v17, %v436_v37  ;;  %805 = vmatmul.f32.gmra.mxu1 %v5753_v53 }
  0xd5   : > { %v5995_v23 = vadd.f32 %v620_v60, %v522_v13  ;;  %916 = vmatmul.f32.gmra.mxu2 %v5812_v18 }
  0xd6   : > { %1035 = vmatmul.f32.gmra.mxu3 %v5774_v62 }
  0xd7   : > { %v316_v51 = vpop.f32.mrf.mxu0 }
  0xd8   : > { %v439_v36 = vpop.f32.mrf.mxu1  ;;  %v526_v33 = vpop.f32.mrf.mxu2 }
  0xd9   : > { %v440_v1 = vadd.f32 %v439_v36, %v316_v51  ;;  %v626_v7 = vpop.f32.mrf.mxu3 }
  0xda   : > { %730 = vmatmul.f32.gmra.mxu0 %v5774_v62 }
  0xdb   : > { %v527_v44 = vadd.f32 %v526_v33, %v440_v1  ;;  %809 = vmatmul.f32.gmra.mxu1 %v5774_v62 }
  0xdd   : > { %v6001_v63 = vadd.f32 %v626_v7, %v527_v44  ;;  %924 = vmatmul.f32.gmra.mxu2 %v5832_v26 }
  0xde   : > { %1039 = vmatmul.f32.gmra.mxu3 %v5796_v11 }
  0xdf   : > { %v324_v60 = vpop.f32.mrf.mxu0 }
  0xe0   : > { %v443_v17 = vpop.f32.mrf.mxu1  ;;  %v531_v37 = vpop.f32.mrf.mxu2 }
  0xe1   : > { %v444_v13 = vadd.f32 %v443_v17, %v324_v60  ;;  %v632_v18 = vpop.f32.mrf.mxu3 }
  0xe2   : > { %734 = vmatmul.f32.gmra.mxu0 %v5796_v11 }
  0xe3   : > { %v532_v51 = vadd.f32 %v531_v37, %v444_v13  ;;  %813 = vmatmul.f32.gmra.mxu1 %v5796_v11 }
  0xe5   : > { %v6007_v36 = vadd.f32 %v632_v18, %v532_v51  ;;  %932 = vmatmul.f32.gmra.mxu2 %v5852_v40 }
  0xe6   : > { %1043 = vmatmul.f32.gmra.mxu3 %v5817_v20 }
  0xe7   : > { %v332_v7 = vpop.f32.mrf.mxu0 }
  0xe8   : > { %v447_v33 = vpop.f32.mrf.mxu1  ;;  %v536_v1 = vpop.f32.mrf.mxu2 }
  0xe9   : > { %v448_v44 = vadd.f32 %v447_v33, %v332_v7  ;;  %v638_v26 = vpop.f32.mrf.mxu3 }
  0xea   : > { %738 = vmatmul.f32.gmra.mxu0 %v5817_v20 }
  0xeb   : > { %v537_v60 = vadd.f32 %v536_v1, %v448_v44  ;;  %817 = vmatmul.f32.gmra.mxu1 %v5817_v20 }
  0xed   : > { %v6013_v17 = vadd.f32 %v638_v26, %v537_v60  ;;  %940 = vmatmul.f32.gmra.mxu2 %v5872_v55 }
  0xee   : > { %1047 = vmatmul.f32.gmra.mxu3 %v5837_v30 }
  0xef   : > { %v340_v18 = vpop.f32.mrf.mxu0 }
  0xf0   : > { %v451_v37 = vpop.f32.mrf.mxu1  ;;  %v541_v13 = vpop.f32.mrf.mxu2 }
  0xf1   : > { %v452_v51 = vadd.f32 %v451_v37, %v340_v18  ;;  %v644_v40 = vpop.f32.mrf.mxu3 }
  0xf2   : > { %742 = vmatmul.f32.gmra.mxu0 %v5837_v30 }
  0xf3   : > { %v542_v7 = vadd.f32 %v541_v13, %v452_v51  ;;  %821 = vmatmul.f32.gmra.mxu1 %v5837_v30  ;;  %v5252_v51 = vld [vmem:[%s5638_s20 + $0x30] sm:$0xff] }
  0xf5   : > { %v6019_v33 = vadd.f32 %v644_v40, %v542_v7  ;;  %948 = vmatmul.f32.gmra.mxu2 %v5892_v2  ;;  %v6030_v7 = vand.u32 4294901760, %v5252_v51 }
  0xf6   : > { %1051 = vmatmul.f32.gmra.mxu3 %v5857_v43 }
  0xf7   : > { %v348_v26 = vpop.f32.mrf.mxu0  ;;  %1810 = vmatpush.msrb.mxu3 %v6030_v7  ;;  %1488 = vmatpush.msrb.mxu0 %v6030_v7 }
  0xf8   : > { %v455_v1 = vpop.f32.mrf.mxu1  ;;  %v546_v44 = vpop.f32.mrf.mxu2 }
  0xf9   : > { %v456_v60 = vadd.f32 %v455_v1, %v348_v26  ;;  %v650_v18 = vpop.f32.mrf.mxu3  ;;  %v6034_v1 = vsub.f32 %v5252_v51, %v6030_v7 }
  0xfa   : > { %746 = vmatmul.f32.gmra.mxu0 %v5857_v43 }
  0xfb   : > { %v547_v37 = vadd.f32 %v546_v44, %v456_v60  ;;  %825 = vmatmul.f32.gmra.mxu1 %v5857_v43  ;;  %1715 = vmatpush.msrb.mxu2 %v6034_v1 }
  0xfd   : > { %v6025_v13 = vadd.f32 %v650_v18, %v547_v37  ;;  %956 = vmatmul.f32.gmra.mxu2 %v5912_v22 }
  0xfe   : > { %1055 = vmatmul.f32.gmra.mxu3 %v5877_v58 }
  0xff   : > { %v356_v40 = vpop.f32.mrf.mxu0 }
 0x100   : > { %v459_v2 = vpop.f32.mrf.mxu1  ;;  %v551_v55 = vpop.f32.mrf.mxu2 }
 0x101   : > { %v460_v4 = vadd.f32 %v459_v2, %v356_v40  ;;  %v656_v26 = vpop.f32.mrf.mxu3  ;;  %v7292_v2 = vand.u32 4294901760, %v6034_v1 }
 0x102   : > { %750 = vmatmul.f32.gmra.mxu0 %v5877_v58 }
 0x103   : > { %v552_v44 = vadd.f32 %v551_v55, %v460_v4  ;;  %829 = vmatmul.f32.gmra.mxu1 %v5877_v58  ;;  %v1629_v37 = vsub.f32 %v6034_v1, %v7292_v2 }
 0x105   : > { %v6040_v60 = vadd.f32 %v656_v26, %v552_v44  ;;  %964 = vmatmul.f32.gmra.mxu2 %v5932_v48  ;;  %v1630_v22 = vand.u32 4294901760, %v1629_v37 }
 0x106   : > { %1059 = vmatmul.f32.gmra.mxu3 %v5897_v5 }
 0x107   : > { %7437 = vst [vmem:[#allocation50_spill] sm:$0xff] %v6040_v60  ;;  %v364_v18 = vpop.f32.mrf.mxu0  ;;  %1631 = vmatpush.msrb.mxu1 %v1630_v22 }
 0x108   : > { %v463_v40 = vpop.f32.mrf.mxu1  ;;  %v556_v51 = vpop.f32.mrf.mxu2 }
 0x109   : > { %v464_v55 = vadd.f32 %v463_v40, %v364_v18  ;;  %v662_v4 = vpop.f32.mrf.mxu3 }
 0x10a   : > { %754 = vmatmul.f32.gmra.mxu0 %v5897_v5 }
 0x10b   : > { %v557_v26 = vadd.f32 %v556_v51, %v464_v55  ;;  %833 = vmatmul.f32.gmra.mxu1 %v5897_v5 }
 0x10d   : > { %v6050_v44 = vadd.f32 %v662_v4, %v557_v26  ;;  %972 = vmatmul.f32.gmra.mxu2 %v5948_v6 }
 0x10e   : > { %1063 = vmatmul.f32.gmra.mxu3 %v5917_v25 }
 0x10f   : > { %v372_v48 = vpop.f32.mrf.mxu0 }
 0x110   : > { %v467_v0 = vpop.f32.mrf.mxu1  ;;  %v561_v2 = vpop.f32.mrf.mxu2 }
 0x111   : > { %v468_v60 = vadd.f32 %v467_v0, %v372_v48  ;;  %v668_v18 = vpop.f32.mrf.mxu3 }
 0x112   : > { %758 = vmatmul.f32.gmra.mxu0 %v5917_v25 }
 0x113   : > { %v562_v40 = vadd.f32 %v561_v2, %v468_v60  ;;  %837 = vmatmul.f32.gmra.mxu1 %v5917_v25 }
 0x115   : > { %v6056_v37 = vadd.f32 %v668_v18, %v562_v40  ;;  %980 = vmatmul.f32.gmra.mxu2 %v5959_v32 }
 0x116   : > { %1067 = vmatmul.f32.gmra.mxu3 %v5937_v59 }
 0x117   : > { %v380_v22 = vpop.f32.mrf.mxu0 }
 0x118   : > { %v471_v51 = vpop.f32.mrf.mxu1  ;;  %v566_v55 = vpop.f32.mrf.mxu2 }
 0x119   : > { %v472_v4 = vadd.f32 %v471_v51, %v380_v22  ;;  %v674_v0 = vpop.f32.mrf.mxu3 }
 0x11a   : > { %762 = vmatmul.f32.gmra.mxu0 %v5937_v59 }
 0x11b   : > { %v567_v48 = vadd.f32 %v566_v55, %v472_v4  ;;  %841 = vmatmul.f32.gmra.mxu1 %v5937_v59 }
 0x11d   : > { %v6062_v60 = vadd.f32 %v674_v0, %v567_v48  ;;  %1299 = vmatmul.f32.vlgmr.msra.gmra.mxu2 %v5654_v8 }
 0x11e   : > { %1378 = vmatmul.f32.vlgmr.msra.gmra.mxu3 %v5654_v8 }
 0x11f   : > { %v388_v2 = vpop.f32.mrf.mxu0 }
 0x120   : > { %v475_v26 = vpop.f32.mrf.mxu1  ;;  %v571_v18 = vpop.f32.mrf.mxu2 }
 0x121   : > { %v476_v40 = vadd.f32 %v475_v26, %v388_v2  ;;  %v680_v22 = vpop.f32.mrf.mxu3 }
 0x122   : > { %1093 = vmatmul.f32.vlgmr.msra.gmra.mxu0 %v5665_v15 }
 0x123   : > { %v572_v51 = vadd.f32 %v571_v18, %v476_v40  ;;  %1188 = vmatmul.f32.vlgmr.msra.gmra.mxu1 %v5675_v21 }
 0x125   : > { %v6069_v55 = vadd.f32 %v680_v22, %v572_v51  ;;  %1303 = vmatmul.f32.gmra.mxu2 %v5662_v14 }
 0x126   : > { %1382 = vmatmul.f32.gmra.mxu3 %v5662_v14 }
 0x127   : > { %v707_v4 = vpop.f32.mrf.mxu0 }
 0x128   : > { %v708_v0 = vadd.f32 %v707_v4, %v5971_v31  ;;  %v786_v48 = vpop.f32.mrf.mxu1  ;;  %v869_v32 = vpop.f32.mrf.mxu2 }
 0x129   : > { %v1012_v2 = vpop.f32.mrf.mxu3 }
 0x12a   : > { %v787_v6 = vadd.f32 %v786_v48, %v708_v0  ;;  %1098 = vmatmul.f32.gmra.mxu0 %v5671_v19  ;;  %v6075_v26 = vadd.f32 %v1012_v2, %v869_v32 }
 0x12b   : > { %1194 = vmatmul.f32.gmra.mxu1 %v5686_v27 }
 0x12c   : > { %1438 = vst [vmem:[%s6077_s18] sm:$0xff] %v787_v6 }
 0x12d   : > { %1307 = vmatmul.f32.gmra.mxu2 %v5688_v28 }
 0x12e   : > { %1386 = vmatmul.f32.gmra.mxu3 %v5688_v28 }
 0x12f   : > { %v711_v31 = vpop.f32.mrf.mxu0 }
 0x130   : > { %v712_v18 = vadd.f32 %v711_v31, %v5977_v47  ;;  %v790_v40 = vpop.f32.mrf.mxu1  ;;  %v877_v22 = vpop.f32.mrf.mxu2 }
 0x131   : > { %v1016_v32 = vpop.f32.mrf.mxu3 }
 0x132   : > { %v791_v51 = vadd.f32 %v790_v40, %v712_v18  ;;  %1103 = vmatmul.f32.gmra.mxu0 %v5700_v35  ;;  %v6085_v4 = vadd.f32 %v1016_v32, %v877_v22  ;;  %v5250_v40 = vld [vmem:[%s5638_s20 + $0x20] sm:$0xff] }
 0x133   : > { %1200 = vmatmul.f32.gmra.mxu1 %v5710_v38  ;;  %v1489_v22 = vand.u32 4294901760, %v5250_v40 }
 0x134   : > { %1440 = vst [vmem:[%s6077_s18 + $0x10] sm:$0xff] %v791_v51 }
 0x135   : > { %1311 = vmatmul.f32.gmra.mxu2 %v5712_v39  ;;  %1490 = vmatpush.msrb.mxu0 %v1489_v22 }
 0x136   : > { %1390 = vmatmul.f32.gmra.mxu3 %v5712_v39 }
 0x137   : > { %v715_v6 = vpop.f32.mrf.mxu0  ;;  %1812 = vmatpush.msrb.mxu3 %v1489_v22 }
 0x138   : > { %v716_v47 = vadd.f32 %v715_v6, %v5983_v54  ;;  %v794_v0 = vpop.f32.mrf.mxu1  ;;  %v885_v48 = vpop.f32.mrf.mxu2  ;;  %v1633_v54 = vsub.f32 %v5250_v40, %v1489_v22  ;;  %v7438_v6 = vand.u32 4294901760, %v6034_v1 }
 0x139   : > { %v1020_v31 = vpop.f32.mrf.mxu3 }
 0x13a   : > { %v795_v2 = vadd.f32 %v794_v0, %v716_v47  ;;  %1108 = vmatmul.f32.gmra.mxu0 %v5722_v42  ;;  %v6093_v18 = vadd.f32 %v1020_v31, %v885_v48  ;;  %1718 = vmatpush.msrb.mxu2 %v1633_v54  ;;  %v1634_v48 = vand.u32 4294901760, %v1633_v54 }
 0x13b   : > { %1206 = vmatmul.f32.gmra.mxu1 %v5731_v45  ;;  %1921 = vmatpush.msra.mxu0 %v7438_v6 }
 0x13c   : > { %1442 = vst [vmem:[%s6077_s18 + $0x20] sm:$0xff] %v795_v2 }
 0x13d   : > { %1315 = vmatmul.f32.gmra.mxu2 %v5733_v46  ;;  %1925 = vmatpush.msra.mxu0 %v1634_v48 }
 0x13e   : > { %1394 = vmatmul.f32.gmra.mxu3 %v5733_v46  ;;  %v1635_v46 = vsub.f32 %v1633_v54, %v1634_v48 }
 0x13f   : > { %v719_v51 = vpop.f32.mrf.mxu0 }
 0x140   : > { %v720_v32 = vadd.f32 %v719_v51, %v5989_v12  ;;  %v798_v47 = vpop.f32.mrf.mxu1  ;;  %v893_v0 = vpop.f32.mrf.mxu2  ;;  %v1636_v12 = vand.u32 4294901760, %v1635_v46 }
 0x141   : > { %v1024_v31 = vpop.f32.mrf.mxu3 }
 0x142   : > { %v799_v2 = vadd.f32 %v798_v47, %v720_v32  ;;  %1113 = vmatmul.f32.gmra.mxu0 %v5742_v49  ;;  %v6104_v39 = vadd.f32 %v1024_v31, %v893_v0  ;;  %1637 = vmatpush.msrb.mxu1 %v1636_v12 }
 0x143   : > { %1212 = vmatmul.f32.gmra.mxu1 %v5751_v52 }
 0x144   : > { %1444 = vst [vmem:[%s6077_s18 + $0x30] sm:$0xff] %v799_v2  ;;  %2002 = vmatpush.msra.mxu1 %v6030_v7 }
 0x145   : > { %1319 = vmatmul.f32.gmra.mxu2 %v5753_v53 }
 0x146   : > { %1398 = vmatmul.f32.gmra.mxu3 %v5753_v53  ;;  %2004 = vmatpush.msra.mxu1 %v1489_v22 }
 0x147   : > { %v723_v1 = vpop.f32.mrf.mxu0 }
 0x148   : > { %v724_v40 = vadd.f32 %v723_v1, %v5995_v23  ;;  %v802_v51 = vpop.f32.mrf.mxu1  ;;  %v901_v32 = vpop.f32.mrf.mxu2 }
 0x149   : > { %v1028_v54 = vpop.f32.mrf.mxu3 }
 0x14a   : > { %v803_v6 = vadd.f32 %v802_v51, %v724_v40  ;;  %1118 = vmatmul.f32.gmra.mxu0 %v5762_v56  ;;  %v6113_v47 = vadd.f32 %v1028_v54, %v901_v32 }
 0x14b   : > { %1218 = vmatmul.f32.gmra.mxu1 %v5772_v61 }
 0x14c   : > { %1446 = vst [vmem:[%s6077_s18 + $0x40] sm:$0xff] %v803_v6 }
 0x14d   : > { %1323 = vmatmul.f32.gmra.mxu2 %v5774_v62 }
 0x14e   : > { %1402 = vmatmul.f32.gmra.mxu3 %v5774_v62 }
 0x14f   : > { %v727_v46 = vpop.f32.mrf.mxu0 }
 0x150   : > { %v728_v23 = vadd.f32 %v727_v46, %v6001_v63  ;;  %v806_v7 = vpop.f32.mrf.mxu1  ;;  %v909_v0 = vpop.f32.mrf.mxu2 }
 0x151   : > { %v1032_v2 = vpop.f32.mrf.mxu3 }
 0x152   : > { %v807_v48 = vadd.f32 %v806_v7, %v728_v23  ;;  %1123 = vmatmul.f32.gmra.mxu0 %v5785_v3  ;;  %v6121_v22 = vadd.f32 %v1032_v2, %v909_v0 }
 0x153   : > { %1224 = vmatmul.f32.gmra.mxu1 %v5794_v10 }
 0x154   : > { %1448 = vst [vmem:[%s6077_s18 + $0x50] sm:$0xff] %v807_v48 }
 0x155   : > { %1327 = vmatmul.f32.gmra.mxu2 %v5796_v11 }
 0x156   : > { %1406 = vmatmul.f32.gmra.mxu3 %v5796_v11 }
 0x157   : > { %v731_v31 = vpop.f32.mrf.mxu0 }
 0x158   : > { %v732_v12 = vadd.f32 %v731_v31, %v6007_v36  ;;  %v810_v63 = vpop.f32.mrf.mxu1  ;;  %v917_v1 = vpop.f32.mrf.mxu2 }
 0x159   : > { %v1036_v51 = vpop.f32.mrf.mxu3 }
 0x15a   : > { %v811_v40 = vadd.f32 %v810_v63, %v732_v12  ;;  %1128 = vmatmul.f32.gmra.mxu0 %v5806_v16  ;;  %v6129_v32 = vadd.f32 %v1036_v51, %v917_v1 }
 0x15b   : > { %1230 = vmatmul.f32.gmra.mxu1 %v5815_v9 }
 0x15c   : > { %1450 = vst [vmem:[%s6077_s18 + $0x60] sm:$0xff] %v811_v40 }
 0x15d   : > { %1331 = vmatmul.f32.gmra.mxu2 %v5817_v20 }
 0x15e   : > { %1410 = vmatmul.f32.gmra.mxu3 %v5817_v20 }
 0x15f   : > { %v735_v6 = vpop.f32.mrf.mxu0 }
 0x160   : > { %v736_v54 = vadd.f32 %v735_v6, %v6013_v17  ;;  %v814_v36 = vpop.f32.mrf.mxu1  ;;  %v925_v46 = vpop.f32.mrf.mxu2 }
 0x161   : > { %v1040_v7 = vpop.f32.mrf.mxu3 }
 0x162   : > { %v815_v23 = vadd.f32 %v814_v36, %v736_v54  ;;  %1133 = vmatmul.f32.gmra.mxu0 %v5826_v24  ;;  %v6137_v0 = vadd.f32 %v1040_v7, %v925_v46  ;;  %v7439_v7 = vld [vmem:[#allocation50_spill] sm:$0xff] }
 0x163   : > { %1236 = vmatmul.f32.gmra.mxu1 %v5835_v29 }
 0x164   : > { %1452 = vst [vmem:[%s6077_s18 + $0x70] sm:$0xff] %v815_v23 }
 0x165   : > { %1335 = vmatmul.f32.gmra.mxu2 %v5837_v30 }
 0x166   : > { %1414 = vmatmul.f32.gmra.mxu3 %v5837_v30 }
 0x167   : > { %v739_v48 = vpop.f32.mrf.mxu0 }
 0x168   : > { %v740_v2 = vadd.f32 %v739_v48, %v6019_v33  ;;  %v818_v17 = vpop.f32.mrf.mxu1  ;;  %v933_v31 = vpop.f32.mrf.mxu2 }
 0x169   : > { %v1044_v63 = vpop.f32.mrf.mxu3 }
 0x16a   : > { %v819_v12 = vadd.f32 %v818_v17, %v740_v2  ;;  %1138 = vmatmul.f32.gmra.mxu0 %v5846_v34  ;;  %v6145_v1 = vadd.f32 %v1044_v63, %v933_v31  ;;  %v7440_v63 = vld [vmem:[#allocation34_spill] sm:$0xff] }
 0x16b   : > { %1242 = vmatmul.f32.gmra.mxu1 %v5855_v41 }
 0x16c   : > { %1454 = vst [vmem:[%s6077_s18 + $0x80] sm:$0xff] %v819_v12 }
 0x16d   : > { %1339 = vmatmul.f32.gmra.mxu2 %v5857_v43 }
 0x16e   : > { %1418 = vmatmul.f32.gmra.mxu3 %v5857_v43 }
 0x16f   : > { %v743_v40 = vpop.f32.mrf.mxu0 }
 0x170   : > { %v744_v33 = vadd.f32 %v743_v40, %v6025_v13  ;;  %v822_v51 = vpop.f32.mrf.mxu1  ;;  %v941_v6 = vpop.f32.mrf.mxu2  ;;  %v5253_v13 = vld [vmem:[%s5638_s20 + $0x38] sm:$0xff] }
 0x171   : > { %v1048_v36 = vpop.f32.mrf.mxu3  ;;  %v6161_v31 = vand.u32 4294901760, %v5253_v13 }
 0x172   : > { %v823_v54 = vadd.f32 %v822_v51, %v744_v33  ;;  %1143 = vmatmul.f32.gmra.mxu0 %v5866_v50  ;;  %v6153_v46 = vadd.f32 %v1048_v36, %v941_v6  ;;  %v7441_v6 = vld [vmem:[#allocation36_spill] sm:$0xff] }
 0x173   : > { %1248 = vmatmul.f32.gmra.mxu1 %v5875_v57  ;;  %2081 = vmatpush.msra.mxu2 %v6161_v31  ;;  %v6168_v51 = vsub.f32 %v5253_v13, %v6161_v31 }
 0x174   : > { %1456 = vst [vmem:[%s6077_s18 + $0x90] sm:$0xff] %v823_v54 }
 0x175   : > { %1343 = vmatmul.f32.gmra.mxu2 %v5877_v58  ;;  %v7305_v54 = vand.u32 4294901760, %v6168_v51 }
 0x176   : > { %1422 = vmatmul.f32.gmra.mxu3 %v5877_v58 }
 0x177   : > { %v747_v23 = vpop.f32.mrf.mxu0 }
 0x178   : > { %v748_v48 = vadd.f32 %v747_v23, %v7439_v7  ;;  %v826_v2 = vpop.f32.mrf.mxu1  ;;  %v949_v17 = vpop.f32.mrf.mxu2  ;;  %v2222_v23 = vsub.f32 %v6168_v51, %v7305_v54 }
 0x179   : > { %v1052_v40 = vpop.f32.mrf.mxu3 }
 0x17a   : > { %v827_v12 = vadd.f32 %v826_v2, %v748_v48  ;;  %1148 = vmatmul.f32.gmra.mxu0 %v7440_v63  ;;  %v6164_v33 = vadd.f32 %v1052_v40, %v949_v17  ;;  %v2223_v2 = vand.u32 4294901760, %v2222_v23 }
 0x17b   : > { %1254 = vmatmul.f32.gmra.mxu1 %v7441_v6 }
 0x17c   : > { %1458 = vst [vmem:[%s6077_s18 + $0xa0] sm:$0xff] %v827_v12  ;;  %v7442_v12 = vld [vmem:[#allocation38_spill] sm:$0xff]  ;;  %2224 = vmatpush.msra.mxu3 %v2223_v2  ;;  %v7445_v2 = vld [vmem:[#allocation44_spill] sm:$0xff] }
 0x17d   : > { %1347 = vmatmul.f32.gmra.mxu2 %v5897_v5 }
 0x17e   : > { %1426 = vmatmul.f32.gmra.mxu3 %v5897_v5  ;;  %v7443_v5 = vld [vmem:[#allocation40_spill] sm:$0xff] }
 0x17f   : > { %v751_v36 = vpop.f32.mrf.mxu0 }
 0x180   : > { %v752_v7 = vadd.f32 %v751_v36, %v6050_v44  ;;  %v830_v48 = vpop.f32.mrf.mxu1  ;;  %v957_v13 = vpop.f32.mrf.mxu2 }
 0x181   : > { %v1056_v40 = vpop.f32.mrf.mxu3 }
 0x182   : > { %v831_v17 = vadd.f32 %v830_v48, %v752_v7  ;;  %1153 = vmatmul.f32.gmra.mxu0 %v7442_v12  ;;  %v6180_v58 = vadd.f32 %v1056_v40, %v957_v13  ;;  %v7444_v48 = vld [vmem:[#allocation42_spill] sm:$0xff] }
 0x183   : > { %1260 = vmatmul.f32.gmra.mxu1 %v7443_v5 }
 0x184   : > { %1460 = vst [vmem:[%s6077_s18 + $0xb0] sm:$0xff] %v831_v17 }
 0x185   : > { %1351 = vmatmul.f32.gmra.mxu2 %v5917_v25 }
 0x186   : > { %1430 = vmatmul.f32.gmra.mxu3 %v5917_v25 }
 0x187   : > { %v755_v54 = vpop.f32.mrf.mxu0 }
 0x188   : > { %v756_v44 = vadd.f32 %v755_v54, %v6056_v37  ;;  %v834_v36 = vpop.f32.mrf.mxu1  ;;  %v965_v23 = vpop.f32.mrf.mxu2 }
 0x189   : > { %v1060_v12 = vpop.f32.mrf.mxu3 }
 0x18a   : > { %v835_v7 = vadd.f32 %v834_v36, %v756_v44  ;;  %1158 = vmatmul.f32.gmra.mxu0 %v7444_v48  ;;  %v6188_v13 = vadd.f32 %v1060_v12, %v965_v23  ;;  %v7446_v44 = vld [vmem:[#allocation46_spill] sm:$0xff]  ;;  %v7447_v12 = vld [vmem:[#allocation48_spill] sm:$0xff] }
 0x18b   : > { %1266 = vmatmul.f32.gmra.mxu1 %v7445_v2 }
 0x18c   : > { %1462 = vst [vmem:[%s6077_s18 + $0xc0] sm:$0xff] %v835_v7 }
 0x18d   : > { %1355 = vmatmul.f32.gmra.mxu2 %v5937_v59 }
 0x18e   : > { %1434 = vmatmul.f32.gmra.mxu3 %v5937_v59 }
 0x18f   : > { %v759_v17 = vpop.f32.mrf.mxu0 }
 0x190   : > { %v760_v40 = vadd.f32 %v759_v17, %v6062_v60  ;;  %v838_v37 = vpop.f32.mrf.mxu1  ;;  %v973_v54 = vpop.f32.mrf.mxu2 }
 0x191   : > { %v1064_v36 = vpop.f32.mrf.mxu3 }
 0x192   : > { %v839_v25 = vadd.f32 %v838_v37, %v760_v40  ;;  %1163 = vmatmul.f32.gmra.mxu0 %v7446_v44  ;;  %v6196_v48 = vadd.f32 %v1064_v36, %v973_v54  ;;  %v7448_v40 = vld [vmem:[#allocation15_spill] sm:$0xff] }
 0x193   : > { %1272 = vmatmul.f32.gmra.mxu1 %v7447_v12 }
 0x194   : > { %1464 = vst [vmem:[%s6077_s18 + $0xd0] sm:$0xff] %v839_v25 }
 0x195   : > { %1721 = vmatmul.f32.vlgmr.msrb.gmra.mxu2 %v5665_v15 }
 0x196   : > { %1816 = vmatmul.f32.vlgmr.msrb.gmra.mxu3 %v5675_v21 }
 0x197   : > { %v763_v23 = vpop.f32.mrf.mxu0 }
 0x198   : > { %v764_v7 = vadd.f32 %v763_v23, %v6069_v55  ;;  %v842_v60 = vpop.f32.mrf.mxu1  ;;  %v981_v17 = vpop.f32.mrf.mxu2 }
 0x199   : > { %v1068_v37 = vpop.f32.mrf.mxu3 }
 0x19a   : > { %v843_v59 = vadd.f32 %v842_v60, %v764_v7  ;;  %1496 = vmatmul.f32.vlgmr.msrb.gmra.mxu0 %v7448_v40  ;;  %v6204_v44 = vadd.f32 %v1068_v37, %v981_v17  ;;  %v7449_v7 = vld [vmem:[#allocation17_spill] sm:$0xff] }
 0x19b   : > { %2308 = vmatpush.msrb.mxu0 %v6168_v51  ;;  %1639 = vmatmul.f32.vlgmr.msrb.gmra.mxu1 %v5654_v8 }
 0x19c   : > { %1466 = vst [vmem:[%s6077_s18 + $0xe0] sm:$0xff] %v843_v59  ;;  %2403 = vmatpush.msrb.mxu1 %v6161_v31 }
 0x19d   : > { %1726 = vmatmul.f32.gmra.mxu2 %v5671_v19 }
 0x19e   : > { %1822 = vmatmul.f32.gmra.mxu3 %v5686_v27 }
 0x19f   : > { %v1094_v25 = vpop.f32.mrf.mxu0 }
 0x1a0   : > { %v1095_v55 = vadd.f32 %v1094_v25, %v6075_v26  ;;  %v1189_v54 = vpop.f32.mrf.mxu1  ;;  %v1300_v36 = vpop.f32.mrf.mxu2 }
 0x1a1   : > { %v1379_v60 = vpop.f32.mrf.mxu3 }
 0x1a2   : > { %v1190_v23 = vadd.f32 %v1189_v54, %v1095_v55  ;;  %1504 = vmatmul.f32.gmra.mxu0 %v7449_v7  ;;  %v7450_v55 = vld [vmem:[#allocation21_spill] sm:$0xff] }
 0x1a3   : > { %1643 = vmatmul.f32.gmra.mxu1 %v5662_v14 }
 0x1a4   : > { %v1301_v17 = vadd.f32 %v1300_v36, %v1190_v23 }
 0x1a5   : > { %1731 = vmatmul.f32.gmra.mxu2 %v5700_v35 }
 0x1a6   : > { %v1380_v59 = vadd.f32 %v1379_v60, %v1301_v17  ;;  %1828 = vmatmul.f32.gmra.mxu3 %v5710_v38 }
 0x1a7   : > { %v1099_v37 = vpop.f32.mrf.mxu0 }
 0x1a8   : > { %1439 = vst [vmem:[%s6077_s18 + $0x8] sm:$0xff] %v1380_v59  ;;  %v1100_v27 = vadd.f32 %v1099_v37, %v6085_v4  ;;  %v1195_v26 = vpop.f32.mrf.mxu1  ;;  %v1304_v25 = vpop.f32.mrf.mxu2  ;;  %v7451_v59 = vld [vmem:[#allocation25_spill] sm:$0xff] }
 0x1a9   : > { %v1383_v54 = vpop.f32.mrf.mxu3 }
 0x1aa   : > { %v1196_v19 = vadd.f32 %v1195_v26, %v1100_v27  ;;  %1512 = vmatmul.f32.gmra.mxu0 %v7450_v55  ;;  %v7452_v26 = vld [vmem:[#allocation19_spill] sm:$0xff] }
 0x1ab   : > { %1647 = vmatmul.f32.gmra.mxu1 %v5688_v28 }
 0x1ac   : > { %v1305_v21 = vadd.f32 %v1304_v25, %v1196_v19 }
 0x1ad   : > { %1736 = vmatmul.f32.gmra.mxu2 %v5722_v42 }
 0x1ae   : > { %v1384_v36 = vadd.f32 %v1383_v54, %v1305_v21  ;;  %1834 = vmatmul.f32.gmra.mxu3 %v5731_v45 }
 0x1af   : > { %v1104_v23 = vpop.f32.mrf.mxu0 }
 0x1b0   : > { %1441 = vst [vmem:[%s6077_s18 + $0x18] sm:$0xff] %v1384_v36  ;;  %v1105_v4 = vadd.f32 %v1104_v23, %v6093_v18  ;;  %v1201_v60 = vpop.f32.mrf.mxu1  ;;  %v1308_v17 = vpop.f32.mrf.mxu2  ;;  %v5251_v36 = vld [vmem:[%s5638_s20 + $0x28] sm:$0xff] }
 0x1b1   : > { %v1387_v37 = vpop.f32.mrf.mxu3  ;;  %v2082_v45 = vand.u32 4294901760, %v5251_v36 }
 0x1b2   : > { %v1202_v27 = vadd.f32 %v1201_v60, %v1105_v4  ;;  %1520 = vmatmul.f32.gmra.mxu0 %v7451_v59  ;;  %v7453_v60 = vld [vmem:[#allocation27_spill] sm:$0xff] }
 0x1b3   : > { %1651 = vmatmul.f32.gmra.mxu1 %v7452_v26  ;;  %2083 = vmatpush.msra.mxu2 %v2082_v45 }
 0x1b4   : > { %v1309_v19 = vadd.f32 %v1308_v17, %v1202_v27  ;;  %v2226_v27 = vsub.f32 %v5251_v36, %v2082_v45  ;;  %2405 = vmatpush.msrb.mxu1 %v2082_v45 }
 0x1b5   : > { %1741 = vmatmul.f32.gmra.mxu2 %v5742_v49 }
 0x1b6   : > { %v1388_v21 = vadd.f32 %v1387_v37, %v1309_v19  ;;  %1840 = vmatmul.f32.gmra.mxu3 %v5751_v52  ;;  %v7454_v19 = vld [vmem:[#allocation23_spill] sm:$0xff]  ;;  %v7455_v52 = vand.u32 4294901760, %v6168_v51  ;;  %2311 = vmatpush.msrb.mxu0 %v2226_v27  ;;  %v7456_v51 = vld [vmem:[#allocation28_spill] sm:$0xff] }
 0x1b7   : > { %v1109_v25 = vpop.f32.mrf.mxu0 }
 0x1b8   : > { %1443 = vst [vmem:[%s6077_s18 + $0x28] sm:$0xff] %v1388_v21  ;;  %v1110_v54 = vadd.f32 %v1109_v25, %v6104_v39  ;;  %v1207_v18 = vpop.f32.mrf.mxu1  ;;  %v1312_v23 = vpop.f32.mrf.mxu2  ;;  %2514 = vmatpush.msrb.mxu2 %v7455_v52  ;;  %v2227_v21 = vand.u32 4294901760, %v2226_v27 }
 0x1b9   : > { %v1391_v17 = vpop.f32.mrf.mxu3 }
 0x1ba   : > { %v1208_v4 = vadd.f32 %v1207_v18, %v1110_v54  ;;  %1528 = vmatmul.f32.gmra.mxu0 %v7453_v60  ;;  %v2228_v54 = vsub.f32 %v2226_v27, %v2227_v21  ;;  %2518 = vmatpush.msrb.mxu2 %v2227_v21 }
 0x1bb   : > { %1655 = vmatmul.f32.gmra.mxu1 %v7454_v19 }
 0x1bc   : > { %v1313_v37 = vadd.f32 %v1312_v23, %v1208_v4  ;;  %v2229_v4 = vand.u32 4294901760, %v2228_v54  ;;  %v7457_v54 = vld [vmem:[#allocation29_spill] sm:$0xff] }
 0x1bd   : > { %1746 = vmatmul.f32.gmra.mxu2 %v5762_v56 }
 0x1be   : > { %v1392_v39 = vadd.f32 %v1391_v17, %v1313_v37  ;;  %1846 = vmatmul.f32.gmra.mxu3 %v5772_v61 }
 0x1bf   : > { %v1114_v25 = vpop.f32.mrf.mxu0  ;;  %2230 = vmatpush.msra.mxu3 %v2229_v4 }
 0x1c0   : > { %1445 = vst [vmem:[%s6077_s18 + $0x38] sm:$0xff] %v1392_v39  ;;  %v1115_v36 = vadd.f32 %v1114_v25, %v6113_v47  ;;  %v1213_v18 = vpop.f32.mrf.mxu1  ;;  %v1316_v23 = vpop.f32.mrf.mxu2 }
 0x1c1   : > { %v1395_v52 = vpop.f32.mrf.mxu3  ;;  %2595 = vmatpush.msrb.mxu3 %v6161_v31 }
 0x1c2   : > { %v1214_v49 = vadd.f32 %v1213_v18, %v1115_v36  ;;  %1536 = vmatmul.f32.gmra.mxu0 %v7456_v51 }
 0x1c3   : > { %1659 = vmatmul.f32.gmra.mxu1 %v5753_v53  ;;  %2597 = vmatpush.msrb.mxu3 %v2082_v45 }
 0x1c4   : > { %v1317_v17 = vadd.f32 %v1316_v23, %v1214_v49 }
 0x1c5   : > { %1751 = vmatmul.f32.gmra.mxu2 %v5785_v3 }
 0x1c6   : > { %v1396_v37 = vadd.f32 %v1395_v52, %v1317_v17  ;;  %1852 = vmatmul.f32.gmra.mxu3 %v5794_v10  ;;  %v7458_v52 = vld [vmem:[#allocation30_spill] sm:$0xff] }
 0x1c7   : > { %v1119_v47 = vpop.f32.mrf.mxu0 }
 0x1c8   : > { %1447 = vst [vmem:[%s6077_s18 + $0x48] sm:$0xff] %v1396_v37  ;;  %v1120_v27 = vadd.f32 %v1119_v47, %v6121_v22  ;;  %v1219_v21 = vpop.f32.mrf.mxu1  ;;  %v1320_v39 = vpop.f32.mrf.mxu2 }
 0x1c9   : > { %v1399_v49 = vpop.f32.mrf.mxu3 }
 0x1ca   : > { %v1220_v25 = vadd.f32 %v1219_v21, %v1120_v27  ;;  %1544 = vmatmul.f32.gmra.mxu0 %v7457_v54 }
 0x1cb   : > { %1663 = vmatmul.f32.gmra.mxu1 %v5774_v62 }
 0x1cc   : > { %v1321_v36 = vadd.f32 %v1320_v39, %v1220_v25 }
 0x1cd   : > { %1756 = vmatmul.f32.gmra.mxu2 %v5806_v16 }
 0x1ce   : > { %v1400_v31 = vadd.f32 %v1399_v49, %v1321_v36  ;;  %1858 = vmatmul.f32.gmra.mxu3 %v5815_v9  ;;  %v7459_v49 = vld [vmem:[#allocation31_spill] sm:$0xff] }
 0x1cf   : > { %v1124_v18 = vpop.f32.mrf.mxu0 }
 0x1d0   : > { %1449 = vst [vmem:[%s6077_s18 + $0x58] sm:$0xff] %v1400_v31  ;;  %v1125_v45 = vadd.f32 %v1124_v18, %v6129_v32  ;;  %v1225_v22 = vpop.f32.mrf.mxu1  ;;  %v1324_v23 = vpop.f32.mrf.mxu2 }
 0x1d1   : > { %v1403_v17 = vpop.f32.mrf.mxu3 }
 0x1d2   : > { %v1226_v4 = vadd.f32 %v1225_v22, %v1125_v45  ;;  %1552 = vmatmul.f32.gmra.mxu0 %v7458_v52 }
 0x1d3   : > { %1667 = vmatmul.f32.gmra.mxu1 %v5796_v11 }
 0x1d4   : > { %v1325_v37 = vadd.f32 %v1324_v23, %v1226_v4 }
 0x1d5   : > { %1761 = vmatmul.f32.gmra.mxu2 %v5826_v24 }
 0x1d6   : > { %v1404_v47 = vadd.f32 %v1403_v17, %v1325_v37  ;;  %1864 = vmatmul.f32.gmra.mxu3 %v5835_v29  ;;  %v7460_v17 = vld [vmem:[#allocation32_spill] sm:$0xff] }
 0x1d7   : > { %v1129_v27 = vpop.f32.mrf.mxu0 }
 0x1d8   : > { %1451 = vst [vmem:[%s6077_s18 + $0x68] sm:$0xff] %v1404_v47  ;;  %v1130_v21 = vadd.f32 %v1129_v27, %v6137_v0  ;;  %v1231_v32 = vpop.f32.mrf.mxu1  ;;  %v1328_v39 = vpop.f32.mrf.mxu2 }
 0x1d9   : > { %v1407_v36 = vpop.f32.mrf.mxu3 }
 0x1da   : > { %v1232_v25 = vadd.f32 %v1231_v32, %v1130_v21  ;;  %1560 = vmatmul.f32.gmra.mxu0 %v7459_v49 }
 0x1db   : > { %1671 = vmatmul.f32.gmra.mxu1 %v5817_v20 }
 0x1dc   : > { %v1329_v31 = vadd.f32 %v1328_v39, %v1232_v25 }
 0x1dd   : > { %1766 = vmatmul.f32.gmra.mxu2 %v5846_v34 }
 0x1de   : > { %v1408_v18 = vadd.f32 %v1407_v36, %v1329_v31  ;;  %1870 = vmatmul.f32.gmra.mxu3 %v5855_v41  ;;  %v7461_v36 = vld [vmem:[#allocation35_spill] sm:$0xff] }
 0x1df   : > { %v1134_v45 = vpop.f32.mrf.mxu0 }
 0x1e0   : > { %1453 = vst [vmem:[%s6077_s18 + $0x78] sm:$0xff] %v1408_v18  ;;  %v1135_v22 = vadd.f32 %v1134_v45, %v6145_v1  ;;  %v1237_v0 = vpop.f32.mrf.mxu1  ;;  %v1332_v23 = vpop.f32.mrf.mxu2 }
 0x1e1   : > { %v1411_v37 = vpop.f32.mrf.mxu3 }
 0x1e2   : > { %v1238_v4 = vadd.f32 %v1237_v0, %v1135_v22  ;;  %1568 = vmatmul.f32.gmra.mxu0 %v7460_v17 }
 0x1e3   : > { %1675 = vmatmul.f32.gmra.mxu1 %v5837_v30 }
 0x1e4   : > { %v1333_v47 = vadd.f32 %v1332_v23, %v1238_v4 }
 0x1e5   : > { %1771 = vmatmul.f32.gmra.mxu2 %v5866_v50 }
 0x1e6   : > { %v1412_v27 = vadd.f32 %v1411_v37, %v1333_v47  ;;  %1876 = vmatmul.f32.gmra.mxu3 %v5875_v57  ;;  %v7462_v37 = vld [vmem:[#allocation39_spill] sm:$0xff] }
 0x1e7   : > { %v1139_v21 = vpop.f32.mrf.mxu0 }
 0x1e8   : > { %1455 = vst [vmem:[%s6077_s18 + $0x88] sm:$0xff] %v1412_v27  ;;  %v1140_v32 = vadd.f32 %v1139_v21, %v6153_v46  ;;  %v1243_v1 = vpop.f32.mrf.mxu1  ;;  %v1336_v39 = vpop.f32.mrf.mxu2  ;;  %v7463_v21 = vld [vmem:[#allocation33_spill] sm:$0xff] }
 0x1e9   : > { %v1415_v31 = vpop.f32.mrf.mxu3 }
 0x1ea   : > { %v1244_v25 = vadd.f32 %v1243_v1, %v1140_v32  ;;  %1576 = vmatmul.f32.gmra.mxu0 %v7461_v36  ;;  %v7464_v1 = vld [vmem:[#allocation38_spill] sm:$0xff] }
 0x1eb   : > { %1679 = vmatmul.f32.gmra.mxu1 %v5857_v43 }
 0x1ec   : > { %v1337_v18 = vadd.f32 %v1336_v39, %v1244_v25 }
 0x1ed   : > { %1776 = vmatmul.f32.gmra.mxu2 %v7440_v63 }
 0x1ee   : > { %v1416_v45 = vadd.f32 %v1415_v31, %v1337_v18  ;;  %1882 = vmatmul.f32.gmra.mxu3 %v7441_v6 }
 0x1ef   : > { %v1144_v22 = vpop.f32.mrf.mxu0 }
 0x1f0   : > { %1457 = vst [vmem:[%s6077_s18 + $0x98] sm:$0xff] %v1416_v45  ;;  %v1145_v0 = vadd.f32 %v1144_v22, %v6164_v33  ;;  %v1249_v46 = vpop.f32.mrf.mxu1  ;;  %v1340_v23 = vpop.f32.mrf.mxu2  ;;  %v7465_v45 = vld [vmem:[#allocation43_spill] sm:$0xff] }
 0x1f1   : > { %v1419_v47 = vpop.f32.mrf.mxu3 }
 0x1f2   : > { %v1250_v4 = vadd.f32 %v1249_v46, %v1145_v0  ;;  %1584 = vmatmul.f32.gmra.mxu0 %v7462_v37  ;;  %v7466_v46 = vld [vmem:[#allocation37_spill] sm:$0xff] }
 0x1f3   : > { %1683 = vmatmul.f32.gmra.mxu1 %v7463_v21 }
 0x1f4   : > { %v1341_v27 = vadd.f32 %v1340_v23, %v1250_v4  ;;  %v7467_v4 = vld [vmem:[#allocation42_spill] sm:$0xff] }
 0x1f5   : > { %1781 = vmatmul.f32.gmra.mxu2 %v7464_v1 }
 0x1f6   : > { %v1420_v32 = vadd.f32 %v1419_v47, %v1341_v27  ;;  %1888 = vmatmul.f32.gmra.mxu3 %v7443_v5 }
 0x1f7   : > { %v1149_v39 = vpop.f32.mrf.mxu0 }
 0x1f8   : > { %1459 = vst [vmem:[%s6077_s18 + $0xa8] sm:$0xff] %v1420_v32  ;;  %v1150_v25 = vadd.f32 %v1149_v39, %v6180_v58  ;;  %v1255_v33 = vpop.f32.mrf.mxu1  ;;  %v1344_v31 = vpop.f32.mrf.mxu2 }
 0x1f9   : > { %v1423_v22 = vpop.f32.mrf.mxu3 }
 0x1fa   : > { %v1256_v18 = vadd.f32 %v1255_v33, %v1150_v25  ;;  %1592 = vmatmul.f32.gmra.mxu0 %v7465_v45  ;;  %v7468_v25 = vld [vmem:[#allocation47_spill] sm:$0xff] }
 0x1fb   : > { %1687 = vmatmul.f32.gmra.mxu1 %v7466_v46 }
 0x1fc   : > { %v1345_v0 = vadd.f32 %v1344_v31, %v1256_v18  ;;  %v7469_v31 = vld [vmem:[#allocation41_spill] sm:$0xff] }
 0x1fd   : > { %1786 = vmatmul.f32.gmra.mxu2 %v7467_v4 }
 0x1fe   : > { %v1424_v23 = vadd.f32 %v1423_v22, %v1345_v0  ;;  %1894 = vmatmul.f32.gmra.mxu3 %v7445_v2  ;;  %v7470_v22 = vld [vmem:[#allocation46_spill] sm:$0xff] }
 0x1ff   : > { %v1154_v47 = vpop.f32.mrf.mxu0 }
 0x200   : > { %1461 = vst [vmem:[%s6077_s18 + $0xb8] sm:$0xff] %v1424_v23  ;;  %v1155_v27 = vadd.f32 %v1154_v47, %v6188_v13  ;;  %v1261_v58 = vpop.f32.mrf.mxu1  ;;  %v1348_v32 = vpop.f32.mrf.mxu2 }
 0x201   : > { %v1427_v33 = vpop.f32.mrf.mxu3 }
 0x202   : > { %v1262_v39 = vadd.f32 %v1261_v58, %v1155_v27  ;;  %1600 = vmatmul.f32.gmra.mxu0 %v7468_v25  ;;  %v7471_v27 = vld [vmem:[#allocation49_spill] sm:$0xff] }
 0x203   : > { %1691 = vmatmul.f32.gmra.mxu1 %v7469_v31 }
 0x204   : > { %v1349_v5 = vadd.f32 %v1348_v32, %v1262_v39  ;;  %v7472_v32 = vld [vmem:[#allocation45_spill] sm:$0xff] }
 0x205   : > { %1791 = vmatmul.f32.gmra.mxu2 %v7470_v22 }
 0x206   : > { %v1428_v18 = vadd.f32 %v1427_v33, %v1349_v5  ;;  %1900 = vmatmul.f32.gmra.mxu3 %v7447_v12 }
 0x207   : > { %v1159_v0 = vpop.f32.mrf.mxu0 }
 0x208   : > { %1463 = vst [vmem:[%s6077_s18 + $0xc8] sm:$0xff] %v1428_v18  ;;  %v1160_v23 = vadd.f32 %v1159_v0, %v6196_v48  ;;  %v1267_v13 = vpop.f32.mrf.mxu1  ;;  %v1352_v47 = vpop.f32.mrf.mxu2 }
 0x209   : > { %v1431_v58 = vpop.f32.mrf.mxu3 }
 0x20a   : > { %v1268_v2 = vadd.f32 %v1267_v13, %v1160_v23  ;;  %1608 = vmatmul.f32.gmra.mxu0 %v7471_v27 }
 0x20b   : > { %1695 = vmatmul.f32.gmra.mxu1 %v7472_v32 }
 0x20c   : > { %v1353_v4 = vadd.f32 %v1352_v47, %v1268_v2 }
 0x20d   : > { %2089 = vmatmul.f32.vlgmr.msra.gmra.mxu2 %v7448_v40 }
 0x20e   : > { %v1432_v39 = vadd.f32 %v1431_v58, %v1353_v4  ;;  %2232 = vmatmul.f32.vlgmr.msra.gmra.mxu3 %v5654_v8 }
 0x20f   : > { %v1164_v5 = vpop.f32.mrf.mxu0 }
 0x210   : > { %1465 = vst [vmem:[%s6077_s18 + $0xd8] sm:$0xff] %v1432_v39  ;;  %v1165_v33 = vadd.f32 %v1164_v5, %v6204_v44  ;;  %v1273_v48 = vpop.f32.mrf.mxu1  ;;  %v1356_v18 = vpop.f32.mrf.mxu2 }
 0x211   : > { %v1435_v23 = vpop.f32.mrf.mxu3 }
 0x212   : > { %v1274_v0 = vadd.f32 %v1273_v48, %v1165_v33  ;;  %1927 = vmatmul.f32.vlgmr.msra.gmra.mxu0 %v5654_v8 }
 0x213   : > { %2006 = vmatmul.f32.vlgmr.msra.gmra.mxu1 %v5654_v8 }
 0x214   : > { %v1357_v13 = vadd.f32 %v1356_v18, %v1274_v0 }
 0x215   : > { %2097 = vmatmul.f32.gmra.mxu2 %v7449_v7 }
 0x216   : > { %v1436_v2 = vadd.f32 %v1435_v23, %v1357_v13  ;;  %2236 = vmatmul.f32.gmra.mxu3 %v5662_v14 }
 0x217   : > { %v1497_v4 = vpop.f32.mrf.mxu0 }
 0x218   : > { %1467 = vst [vmem:[%s6077_s18 + $0xe8] sm:$0xff] %v1436_v2  ;;  %v1640_v47 = vpop.f32.mrf.mxu1  ;;  %v1722_v58 = vpop.f32.mrf.mxu2 }
 0x219   : > { %v1641_v39 = vadd.f32 %v1640_v47, %v1497_v4  ;;  %v1817_v44 = vpop.f32.mrf.mxu3 }
 0x21a   : > { %1931 = vmatmul.f32.gmra.mxu0 %v5662_v14 }
 0x21b   : > { %v1723_v5 = vadd.f32 %v1722_v58, %v1641_v39  ;;  %2010 = vmatmul.f32.gmra.mxu1 %v5662_v14 }
 0x21d   : > { %v6308_v33 = vadd.f32 %v1817_v44, %v1723_v5  ;;  %2105 = vmatmul.f32.gmra.mxu2 %v7450_v55 }
 0x21e   : > { %2240 = vmatmul.f32.gmra.mxu3 %v5688_v28 }
 0x21f   : > { %v1505_v48 = vpop.f32.mrf.mxu0 }
 0x220   : > { %v1644_v18 = vpop.f32.mrf.mxu1  ;;  %v1727_v0 = vpop.f32.mrf.mxu2 }
 0x221   : > { %v1645_v23 = vadd.f32 %v1644_v18, %v1505_v48  ;;  %v1823_v13 = vpop.f32.mrf.mxu3 }
 0x222   : > { %1935 = vmatmul.f32.gmra.mxu0 %v5688_v28 }
 0x223   : > { %v1728_v2 = vadd.f32 %v1727_v0, %v1645_v23  ;;  %2014 = vmatmul.f32.gmra.mxu1 %v5688_v28 }
 0x225   : > { %v6314_v4 = vadd.f32 %v1823_v13, %v1728_v2  ;;  %2113 = vmatmul.f32.gmra.mxu2 %v7451_v59 }
 0x226   : > { %2244 = vmatmul.f32.gmra.mxu3 %v7452_v26 }
 0x227   : > { %v1513_v47 = vpop.f32.mrf.mxu0 }
 0x228   : > { %v1648_v58 = vpop.f32.mrf.mxu1  ;;  %v1732_v39 = vpop.f32.mrf.mxu2 }
 0x229   : > { %v1649_v44 = vadd.f32 %v1648_v58, %v1513_v47  ;;  %v1829_v5 = vpop.f32.mrf.mxu3 }
 0x22a   : > { %1939 = vmatmul.f32.gmra.mxu0 %v7452_v26 }
 0x22b   : > { %v1733_v48 = vadd.f32 %v1732_v39, %v1649_v44  ;;  %2018 = vmatmul.f32.gmra.mxu1 %v7452_v26 }
 0x22d   : > { %v6320_v18 = vadd.f32 %v1829_v5, %v1733_v48  ;;  %2121 = vmatmul.f32.gmra.mxu2 %v7453_v60 }
 0x22e   : > { %2248 = vmatmul.f32.gmra.mxu3 %v7454_v19 }
 0x22f   : > { %v1521_v0 = vpop.f32.mrf.mxu0 }
 0x230   : > { %v1652_v23 = vpop.f32.mrf.mxu1  ;;  %v1737_v13 = vpop.f32.mrf.mxu2 }
 0x231   : > { %v1653_v2 = vadd.f32 %v1652_v23, %v1521_v0  ;;  %v1835_v59 = vpop.f32.mrf.mxu3 }
 0x232   : > { %1943 = vmatmul.f32.gmra.mxu0 %v7454_v19 }
 0x233   : > { %v1738_v47 = vadd.f32 %v1737_v13, %v1653_v2  ;;  %2022 = vmatmul.f32.gmra.mxu1 %v7454_v19 }
 0x235   : > { %v6326_v58 = vadd.f32 %v1835_v59, %v1738_v47  ;;  %2129 = vmatmul.f32.gmra.mxu2 %v7456_v51 }
 0x236   : > { %2252 = vmatmul.f32.gmra.mxu3 %v5753_v53 }
 0x237   : > { %v1529_v39 = vpop.f32.mrf.mxu0 }
 0x238   : > { %v1656_v44 = vpop.f32.mrf.mxu1  ;;  %v1742_v5 = vpop.f32.mrf.mxu2 }
 0x239   : > { %v1657_v48 = vadd.f32 %v1656_v44, %v1529_v39  ;;  %v1841_v60 = vpop.f32.mrf.mxu3 }
 0x23a   : > { %1947 = vmatmul.f32.gmra.mxu0 %v5753_v53 }
 0x23b   : > { %v1743_v0 = vadd.f32 %v1742_v5, %v1657_v48  ;;  %2026 = vmatmul.f32.gmra.mxu1 %v5753_v53 }
 0x23d   : > { %v6332_v23 = vadd.f32 %v1841_v60, %v1743_v0  ;;  %2137 = vmatmul.f32.gmra.mxu2 %v7457_v54 }
 0x23e   : > { %2256 = vmatmul.f32.gmra.mxu3 %v5774_v62 }
 0x23f   : > { %v1537_v59 = vpop.f32.mrf.mxu0 }
 0x240   : > { %v1660_v13 = vpop.f32.mrf.mxu1  ;;  %v1747_v2 = vpop.f32.mrf.mxu2 }
 0x241   : > { %v1661_v47 = vadd.f32 %v1660_v13, %v1537_v59  ;;  %v1847_v51 = vpop.f32.mrf.mxu3 }
 0x242   : > { %1951 = vmatmul.f32.gmra.mxu0 %v5774_v62 }
 0x243   : > { %v1748_v39 = vadd.f32 %v1747_v2, %v1661_v47  ;;  %2030 = vmatmul.f32.gmra.mxu1 %v5774_v62 }
 0x245   : > { %v6338_v44 = vadd.f32 %v1847_v51, %v1748_v39  ;;  %2145 = vmatmul.f32.gmra.mxu2 %v7458_v52 }
 0x246   : > { %2260 = vmatmul.f32.gmra.mxu3 %v5796_v11 }
 0x247   : > { %v1545_v60 = vpop.f32.mrf.mxu0 }
 0x248   : > { %v1664_v5 = vpop.f32.mrf.mxu1  ;;  %v1752_v48 = vpop.f32.mrf.mxu2 }
 0x249   : > { %v1665_v0 = vadd.f32 %v1664_v5, %v1545_v60  ;;  %v1853_v54 = vpop.f32.mrf.mxu3 }
 0x24a   : > { %1955 = vmatmul.f32.gmra.mxu0 %v5796_v11 }
 0x24b   : > { %v1753_v59 = vadd.f32 %v1752_v48, %v1665_v0  ;;  %2034 = vmatmul.f32.gmra.mxu1 %v5796_v11 }
 0x24d   : > { %v6344_v13 = vadd.f32 %v1853_v54, %v1753_v59  ;;  %2153 = vmatmul.f32.gmra.mxu2 %v7459_v49 }
 0x24e   : > { %2264 = vmatmul.f32.gmra.mxu3 %v5817_v20 }
 0x24f   : > { %v1553_v51 = vpop.f32.mrf.mxu0 }
 0x250   : > { %v1668_v2 = vpop.f32.mrf.mxu1  ;;  %v1757_v47 = vpop.f32.mrf.mxu2 }
 0x251   : > { %v1669_v39 = vadd.f32 %v1668_v2, %v1553_v51  ;;  %v1859_v52 = vpop.f32.mrf.mxu3 }
 0x252   : > { %1959 = vmatmul.f32.gmra.mxu0 %v5817_v20 }
 0x253   : > { %v1758_v60 = vadd.f32 %v1757_v47, %v1669_v39  ;;  %2038 = vmatmul.f32.gmra.mxu1 %v5817_v20 }
 0x255   : > { %v6350_v5 = vadd.f32 %v1859_v52, %v1758_v60  ;;  %2161 = vmatmul.f32.gmra.mxu2 %v7460_v17 }
 0x256   : > { %2268 = vmatmul.f32.gmra.mxu3 %v5837_v30 }
 0x257   : > { %v1561_v54 = vpop.f32.mrf.mxu0 }
 0x258   : > { %v1672_v48 = vpop.f32.mrf.mxu1  ;;  %v1762_v0 = vpop.f32.mrf.mxu2 }
 0x259   : > { %v1673_v59 = vadd.f32 %v1672_v48, %v1561_v54  ;;  %v1865_v49 = vpop.f32.mrf.mxu3 }
 0x25a   : > { %1963 = vmatmul.f32.gmra.mxu0 %v5837_v30 }
 0x25b   : > { %v1763_v51 = vadd.f32 %v1762_v0, %v1673_v59  ;;  %2042 = vmatmul.f32.gmra.mxu1 %v5837_v30  ;;  %v5286_v59 = vld [vmem:[%s5638_s20 + $0x50] sm:$0xff] }
 0x25d   : > { %v6356_v2 = vadd.f32 %v1865_v49, %v1763_v51  ;;  %2169 = vmatmul.f32.gmra.mxu2 %v7461_v36  ;;  %v6367_v51 = vand.u32 4294901760, %v5286_v59 }
 0x25e   : > { %2272 = vmatmul.f32.gmra.mxu3 %v5857_v43 }
 0x25f   : > { %v1569_v52 = vpop.f32.mrf.mxu0  ;;  %3032 = vmatpush.msra.mxu3 %v6367_v51  ;;  %2710 = vmatpush.msra.mxu0 %v6367_v51 }
 0x260   : > { %v1676_v47 = vpop.f32.mrf.mxu1  ;;  %v1767_v39 = vpop.f32.mrf.mxu2 }
 0x261   : > { %v1677_v60 = vadd.f32 %v1676_v47, %v1569_v52  ;;  %v1871_v54 = vpop.f32.mrf.mxu3  ;;  %v6371_v47 = vsub.f32 %v5286_v59, %v6367_v51 }
 0x262   : > { %1967 = vmatmul.f32.gmra.mxu0 %v5857_v43 }
 0x263   : > { %v1768_v48 = vadd.f32 %v1767_v39, %v1677_v60  ;;  %2046 = vmatmul.f32.gmra.mxu1 %v5857_v43  ;;  %2937 = vmatpush.msra.mxu2 %v6371_v47 }
 0x265   : > { %v6362_v0 = vadd.f32 %v1871_v54, %v1768_v48  ;;  %2177 = vmatmul.f32.gmra.mxu2 %v7462_v37 }
 0x266   : > { %2276 = vmatmul.f32.gmra.mxu3 %v7463_v21 }
 0x267   : > { %v1577_v49 = vpop.f32.mrf.mxu0 }
 0x268   : > { %v1680_v36 = vpop.f32.mrf.mxu1  ;;  %v1772_v17 = vpop.f32.mrf.mxu2 }
 0x269   : > { %v1681_v55 = vadd.f32 %v1680_v36, %v1577_v49  ;;  %v1877_v52 = vpop.f32.mrf.mxu3  ;;  %v7336_v36 = vand.u32 4294901760, %v6371_v47 }
 0x26a   : > { %1971 = vmatmul.f32.gmra.mxu0 %v7463_v21 }
 0x26b   : > { %v1773_v39 = vadd.f32 %v1772_v17, %v1681_v55  ;;  %2050 = vmatmul.f32.gmra.mxu1 %v7463_v21  ;;  %v2851_v48 = vsub.f32 %v6371_v47, %v7336_v36 }
 0x26d   : > { %v6377_v60 = vadd.f32 %v1877_v52, %v1773_v39  ;;  %2185 = vmatmul.f32.gmra.mxu2 %v7465_v45  ;;  %v2852_v37 = vand.u32 4294901760, %v2851_v48 }
 0x26e   : > { %2280 = vmatmul.f32.gmra.mxu3 %v7466_v46 }
 0x26f   : > { %v1585_v54 = vpop.f32.mrf.mxu0  ;;  %2853 = vmatpush.msra.mxu1 %v2852_v37 }
 0x270   : > { %v1684_v49 = vpop.f32.mrf.mxu1  ;;  %v1777_v59 = vpop.f32.mrf.mxu2 }
 0x271   : > { %v1685_v55 = vadd.f32 %v1684_v49, %v1585_v54  ;;  %v1883_v17 = vpop.f32.mrf.mxu3 }
 0x272   : > { %1975 = vmatmul.f32.gmra.mxu0 %v7466_v46 }
 0x273   : > { %v1778_v52 = vadd.f32 %v1777_v59, %v1685_v55  ;;  %2054 = vmatmul.f32.gmra.mxu1 %v7466_v46 }
 0x275   : > { %v6387_v39 = vadd.f32 %v1883_v17, %v1778_v52  ;;  %2193 = vmatmul.f32.gmra.mxu2 %v7468_v25 }
 0x276   : > { %2284 = vmatmul.f32.gmra.mxu3 %v7469_v31 }
 0x277   : > { %v1593_v45 = vpop.f32.mrf.mxu0 }
 0x278   : > { %v1688_v7 = vpop.f32.mrf.mxu1  ;;  %v1782_v36 = vpop.f32.mrf.mxu2 }
 0x279   : > { %v1689_v40 = vadd.f32 %v1688_v7, %v1593_v45  ;;  %v1889_v54 = vpop.f32.mrf.mxu3 }
 0x27a   : > { %1979 = vmatmul.f32.gmra.mxu0 %v7469_v31 }
 0x27b   : > { %v1783_v49 = vadd.f32 %v1782_v36, %v1689_v40  ;;  %2058 = vmatmul.f32.gmra.mxu1 %v7469_v31 }
 0x27d   : > { %v6393_v48 = vadd.f32 %v1889_v54, %v1783_v49  ;;  %2201 = vmatmul.f32.gmra.mxu2 %v7471_v27  ;;  %v7473_v27 = vld [vmem:[#allocation12_spill] sm:$0xff] }
 0x27e   : > { %2288 = vmatmul.f32.gmra.mxu3 %v7472_v32 }
 0x27f   : > { %v1601_v37 = vpop.f32.mrf.mxu0 }
 0x280   : > { %v1692_v59 = vpop.f32.mrf.mxu1  ;;  %v1787_v55 = vpop.f32.mrf.mxu2 }
 0x281   : > { %v1693_v17 = vadd.f32 %v1692_v59, %v1601_v37  ;;  %v1895_v52 = vpop.f32.mrf.mxu3 }
 0x282   : > { %1983 = vmatmul.f32.gmra.mxu0 %v7472_v32 }
 0x283   : > { %v1788_v7 = vadd.f32 %v1787_v55, %v1693_v17  ;;  %2062 = vmatmul.f32.gmra.mxu1 %v7472_v32 }
 0x285   : > { %v6399_v45 = vadd.f32 %v1895_v52, %v1788_v7  ;;  %2520 = vmatmul.f32.vlgmr.msrb.gmra.mxu2 %v5654_v8 }
 0x286   : > { %2599 = vmatmul.f32.vlgmr.msrb.gmra.mxu3 %v5654_v8 }
 0x287   : > { %v1609_v40 = vpop.f32.mrf.mxu0 }
 0x288   : > { %v1696_v36 = vpop.f32.mrf.mxu1  ;;  %v1792_v54 = vpop.f32.mrf.mxu2 }
 0x289   : > { %v1697_v49 = vadd.f32 %v1696_v36, %v1609_v40  ;;  %v1901_v37 = vpop.f32.mrf.mxu3  ;;  %v7474_v40 = vld [vmem:[#allocation11_spill] sm:$0xff] }
 0x28a   : > { %2314 = vmatmul.f32.vlgmr.msrb.gmra.mxu0 %v5665_v15 }
 0x28b   : > { %v1793_v59 = vadd.f32 %v1792_v54, %v1697_v49  ;;  %2409 = vmatmul.f32.vlgmr.msrb.gmra.mxu1 %v7473_v27  ;;  %v7475_v54 = vld [vmem:[#allocation13_spill] sm:$0xff] }
 0x28d   : > { %v6405_v55 = vadd.f32 %v1901_v37, %v1793_v59  ;;  %2524 = vmatmul.f32.gmra.mxu2 %v5662_v14 }
 0x28e   : > { %2603 = vmatmul.f32.gmra.mxu3 %v5662_v14 }
 0x28f   : > { %v1928_v17 = vpop.f32.mrf.mxu0 }
 0x290   : > { %v1929_v52 = vadd.f32 %v1928_v17, %v6308_v33  ;;  %v2007_v7 = vpop.f32.mrf.mxu1  ;;  %v2090_v25 = vpop.f32.mrf.mxu2 }
 0x291   : > { %v2233_v36 = vpop.f32.mrf.mxu3 }
 0x292   : > { %v2008_v8 = vadd.f32 %v2007_v7, %v1929_v52  ;;  %2319 = vmatmul.f32.gmra.mxu0 %v7474_v40  ;;  %v6411_v15 = vadd.f32 %v2233_v36, %v2090_v25 }
 0x293   : > { %2415 = vmatmul.f32.gmra.mxu1 %v7475_v54 }
 0x294   : > { %5254 = vst [vmem:[%s6077_s18 + $0xf0] sm:$0xff] %v2008_v8 }
 0x295   : > { %2528 = vmatmul.f32.gmra.mxu2 %v5688_v28 }
 0x296   : > { %2607 = vmatmul.f32.gmra.mxu3 %v5688_v28 }
 0x297   : > { %v1932_v49 = vpop.f32.mrf.mxu0 }
 0x298   : > { %v1933_v37 = vadd.f32 %v1932_v49, %v6314_v4  ;;  %v2011_v33 = vpop.f32.mrf.mxu1  ;;  %v2098_v59 = vpop.f32.mrf.mxu2 }
 0x299   : > { %v2237_v52 = vpop.f32.mrf.mxu3 }
 0x29a   : > { %v2012_v17 = vadd.f32 %v2011_v33, %v1933_v37  ;;  %2324 = vmatmul.f32.gmra.mxu0 %v5700_v35  ;;  %v6419_v25 = vadd.f32 %v2237_v52, %v2098_v59  ;;  %v7477_v59 = vld [vmem:[#allocation22_spill] sm:$0xff] }
 0x29b   : > { %2421 = vmatmul.f32.gmra.mxu1 %v5710_v38 }
 0x29c   : > { %5256 = vst [vmem:[%s6077_s18 + $0x100] sm:$0xff] %v2012_v17  ;;  %v5284_v17 = vld [vmem:[%s5638_s20 + $0x40] sm:$0xff] }
 0x29d   : > { %2532 = vmatmul.f32.gmra.mxu2 %v7452_v26  ;;  %v2711_v52 = vand.u32 4294901760, %v5284_v17 }
 0x29e   : > { %2611 = vmatmul.f32.gmra.mxu3 %v7452_v26 }
 0x29f   : > { %v1936_v8 = vpop.f32.mrf.mxu0  ;;  %2712 = vmatpush.msra.mxu0 %v2711_v52  ;;  %3034 = vmatpush.msra.mxu3 %v2711_v52 }
 0x2a0   : > { %v1937_v4 = vadd.f32 %v1936_v8, %v6320_v18  ;;  %v2015_v7 = vpop.f32.mrf.mxu1  ;;  %v2106_v36 = vpop.f32.mrf.mxu2  ;;  %v2855_v18 = vsub.f32 %v5284_v17, %v2711_v52  ;;  %v7480_v17 = vld [vmem:[#allocation26_spill] sm:$0xff] }
 0x2a1   : > { %v2241_v37 = vpop.f32.mrf.mxu3 }
 0x2a2   : > { %v2016_v49 = vadd.f32 %v2015_v7, %v1937_v4  ;;  %2329 = vmatmul.f32.gmra.mxu0 %v5722_v42  ;;  %v6427_v33 = vadd.f32 %v2241_v37, %v2106_v36  ;;  %v7478_v4 = vand.u32 4294901760, %v6371_v47  ;;  %2940 = vmatpush.msra.mxu2 %v2855_v18 }
 0x2a3   : > { %2427 = vmatmul.f32.gmra.mxu1 %v7477_v59 }
 0x2a4   : > { %7476 = vst [vmem:[#allocation50_spill] sm:$0xff] %v6427_v33  ;;  %3143 = vmatpush.msrb.mxu0 %v7478_v4  ;;  %v7479_v33 = vld [vmem:[#allocation24_spill] sm:$0xff] }
 0x2a5   : > { %5258 = vst [vmem:[%s6077_s18 + $0x110] sm:$0xff] %v2016_v49  ;;  %2536 = vmatmul.f32.gmra.mxu2 %v7454_v19  ;;  %v2856_v49 = vand.u32 4294901760, %v2855_v18 }
 0x2a6   : > { %2615 = vmatmul.f32.gmra.mxu3 %v7454_v19 }
 0x2a7   : > { %v1940_v26 = vpop.f32.mrf.mxu0  ;;  %v2857_v19 = vsub.f32 %v2855_v18, %v2856_v49  ;;  %3147 = vmatpush.msrb.mxu0 %v2856_v49 }
 0x2a8   : > { %v1941_v8 = vadd.f32 %v1940_v26, %v6326_v58  ;;  %v2019_v7 = vpop.f32.mrf.mxu1  ;;  %v2114_v36 = vpop.f32.mrf.mxu2 }
 0x2a9   : > { %v2245_v59 = vpop.f32.mrf.mxu3  ;;  %v2858_v26 = vand.u32 4294901760, %v2857_v19 }
 0x2aa   : > { %v2020_v37 = vadd.f32 %v2019_v7, %v1941_v8  ;;  %2334 = vmatmul.f32.gmra.mxu0 %v7479_v33  ;;  %v6438_v42 = vadd.f32 %v2245_v59, %v2114_v36 }
 0x2ab   : > { %2433 = vmatmul.f32.gmra.mxu1 %v7480_v17 }
 0x2ac   : > { %5260 = vst [vmem:[%s6077_s18 + $0x120] sm:$0xff] %v2020_v37  ;;  %2859 = vmatpush.msra.mxu1 %v2858_v26 }
 0x2ad   : > { %2540 = vmatmul.f32.gmra.mxu2 %v5753_v53 }
 0x2ae   : > { %2619 = vmatmul.f32.gmra.mxu3 %v5753_v53  ;;  %3224 = vmatpush.msrb.mxu1 %v6367_v51 }
 0x2af   : > { %v1944_v58 = vpop.f32.mrf.mxu0 }
 0x2b0   : > { %v1945_v47 = vadd.f32 %v1944_v58, %v6332_v23  ;;  %v2023_v8 = vpop.f32.mrf.mxu1  ;;  %v2122_v59 = vpop.f32.mrf.mxu2  ;;  %3226 = vmatpush.msrb.mxu1 %v2711_v52 }
 0x2b1   : > { %v2249_v18 = vpop.f32.mrf.mxu3 }
 0x2b2   : > { %v2024_v4 = vadd.f32 %v2023_v8, %v1945_v47  ;;  %2339 = vmatmul.f32.gmra.mxu0 %v5762_v56  ;;  %v6447_v7 = vadd.f32 %v2249_v18, %v2122_v59 }
 0x2b3   : > { %2439 = vmatmul.f32.gmra.mxu1 %v5772_v61 }
 0x2b4   : > { %5262 = vst [vmem:[%s6077_s18 + $0x130] sm:$0xff] %v2024_v4 }
 0x2b5   : > { %2544 = vmatmul.f32.gmra.mxu2 %v5774_v62 }
 0x2b6   : > { %2623 = vmatmul.f32.gmra.mxu3 %v5774_v62 }
 0x2b7   : > { %v1948_v19 = vpop.f32.mrf.mxu0 }
 0x2b8   : > { %v1949_v23 = vadd.f32 %v1948_v19, %v6338_v44  ;;  %v2027_v51 = vpop.f32.mrf.mxu1  ;;  %v2130_v36 = vpop.f32.mrf.mxu2 }
 0x2b9   : > { %v2253_v37 = vpop.f32.mrf.mxu3 }
 0x2ba   : > { %v2028_v49 = vadd.f32 %v2027_v51, %v1949_v23  ;;  %2344 = vmatmul.f32.gmra.mxu0 %v5785_v3  ;;  %v6455_v52 = vadd.f32 %v2253_v37, %v2130_v36 }
 0x2bb   : > { %2445 = vmatmul.f32.gmra.mxu1 %v5794_v10 }
 0x2bc   : > { %5264 = vst [vmem:[%s6077_s18 + $0x140] sm:$0xff] %v2028_v49 }
 0x2bd   : > { %2548 = vmatmul.f32.gmra.mxu2 %v5796_v11 }
 0x2be   : > { %2627 = vmatmul.f32.gmra.mxu3 %v5796_v11 }
 0x2bf   : > { %v1952_v26 = vpop.f32.mrf.mxu0 }
 0x2c0   : > { %v1953_v58 = vadd.f32 %v1952_v26, %v6344_v13  ;;  %v2031_v44 = vpop.f32.mrf.mxu1  ;;  %v2138_v47 = vpop.f32.mrf.mxu2 }
 0x2c1   : > { %v2257_v59 = vpop.f32.mrf.mxu3 }
 0x2c2   : > { %v2032_v8 = vadd.f32 %v2031_v44, %v1953_v58  ;;  %2349 = vmatmul.f32.gmra.mxu0 %v5806_v16  ;;  %v6463_v4 = vadd.f32 %v2257_v59, %v2138_v47 }
 0x2c3   : > { %2451 = vmatmul.f32.gmra.mxu1 %v5815_v9 }
 0x2c4   : > { %5266 = vst [vmem:[%s6077_s18 + $0x150] sm:$0xff] %v2032_v8 }
 0x2c5   : > { %2552 = vmatmul.f32.gmra.mxu2 %v5817_v20 }
 0x2c6   : > { %2631 = vmatmul.f32.gmra.mxu3 %v5817_v20 }
 0x2c7   : > { %v1956_v18 = vpop.f32.mrf.mxu0 }
 0x2c8   : > { %v1957_v19 = vadd.f32 %v1956_v18, %v6350_v5  ;;  %v2035_v13 = vpop.f32.mrf.mxu1  ;;  %v2146_v23 = vpop.f32.mrf.mxu2 }
 0x2c9   : > { %v2261_v36 = vpop.f32.mrf.mxu3 }
 0x2ca   : > { %v2036_v51 = vadd.f32 %v2035_v13, %v1957_v19  ;;  %2354 = vmatmul.f32.gmra.mxu0 %v5826_v24  ;;  %v6471_v49 = vadd.f32 %v2261_v36, %v2146_v23 }
 0x2cb   : > { %2457 = vmatmul.f32.gmra.mxu1 %v5835_v29 }
 0x2cc   : > { %5268 = vst [vmem:[%s6077_s18 + $0x160] sm:$0xff] %v2036_v51 }
 0x2cd   : > { %2556 = vmatmul.f32.gmra.mxu2 %v5837_v30 }
 0x2ce   : > { %2635 = vmatmul.f32.gmra.mxu3 %v5837_v30 }
 0x2cf   : > { %v1960_v37 = vpop.f32.mrf.mxu0 }
 0x2d0   : > { %v1961_v26 = vadd.f32 %v1960_v37, %v6356_v2  ;;  %v2039_v5 = vpop.f32.mrf.mxu1  ;;  %v2154_v58 = vpop.f32.mrf.mxu2 }
 0x2d1   : > { %v2265_v47 = vpop.f32.mrf.mxu3 }
 0x2d2   : > { %v2040_v44 = vadd.f32 %v2039_v5, %v1961_v26  ;;  %2359 = vmatmul.f32.gmra.mxu0 %v5846_v34  ;;  %v6479_v8 = vadd.f32 %v2265_v47, %v2154_v58 }
 0x2d3   : > { %2463 = vmatmul.f32.gmra.mxu1 %v5855_v41 }
 0x2d4   : > { %5270 = vst [vmem:[%s6077_s18 + $0x170] sm:$0xff] %v2040_v44 }
 0x2d5   : > { %2560 = vmatmul.f32.gmra.mxu2 %v5857_v43 }
 0x2d6   : > { %2639 = vmatmul.f32.gmra.mxu3 %v5857_v43 }
 0x2d7   : > { %v1964_v59 = vpop.f32.mrf.mxu0 }
 0x2d8   : > { %v1965_v2 = vadd.f32 %v1964_v59, %v6362_v0  ;;  %v2043_v18 = vpop.f32.mrf.mxu1  ;;  %v2162_v19 = vpop.f32.mrf.mxu2  ;;  %v5287_v0 = vld [vmem:[%s5638_s20 + $0x58] sm:$0xff] }
 0x2d9   : > { %v2269_v23 = vpop.f32.mrf.mxu3  ;;  %v6495_v58 = vand.u32 4294901760, %v5287_v0 }
 0x2da   : > { %v2044_v13 = vadd.f32 %v2043_v18, %v1965_v2  ;;  %2364 = vmatmul.f32.gmra.mxu0 %v5866_v50  ;;  %v6487_v51 = vadd.f32 %v2269_v23, %v2162_v19 }
 0x2db   : > { %2469 = vmatmul.f32.gmra.mxu1 %v5875_v57  ;;  %3303 = vmatpush.msrb.mxu2 %v6495_v58  ;;  %v6502_v2 = vsub.f32 %v5287_v0, %v6495_v58 }
 0x2dc   : > { %5272 = vst [vmem:[%s6077_s18 + $0x180] sm:$0xff] %v2044_v13 }
 0x2dd   : > { %2564 = vmatmul.f32.gmra.mxu2 %v7463_v21 }
 0x2de   : > { %2643 = vmatmul.f32.gmra.mxu3 %v7463_v21 }
 0x2df   : > { %v1968_v36 = vpop.f32.mrf.mxu0 }
 0x2e0   : > { %v1969_v37 = vadd.f32 %v1968_v36, %v6377_v60  ;;  %v2047_v26 = vpop.f32.mrf.mxu1  ;;  %v2170_v5 = vpop.f32.mrf.mxu2  ;;  %v7348_v60 = vand.u32 4294901760, %v6502_v2 }
 0x2e1   : > { %v2273_v47 = vpop.f32.mrf.mxu3 }
 0x2e2   : > { %v2048_v44 = vadd.f32 %v2047_v26, %v1969_v37  ;;  %2369 = vmatmul.f32.gmra.mxu0 %v7440_v63  ;;  %v6498_v59 = vadd.f32 %v2273_v47, %v2170_v5  ;;  %v3444_v19 = vsub.f32 %v6502_v2, %v7348_v60 }
 0x2e3   : > { %2475 = vmatmul.f32.gmra.mxu1 %v7441_v6 }
 0x2e4   : > { %5274 = vst [vmem:[%s6077_s18 + $0x190] sm:$0xff] %v2048_v44  ;;  %v3445_v37 = vand.u32 4294901760, %v3444_v19  ;;  %v7481_v44 = vld [vmem:[#allocation40_spill] sm:$0xff] }
 0x2e5   : > { %2568 = vmatmul.f32.gmra.mxu2 %v7466_v46 }
 0x2e6   : > { %2647 = vmatmul.f32.gmra.mxu3 %v7466_v46 }
 0x2e7   : > { %v1972_v18 = vpop.f32.mrf.mxu0  ;;  %3446 = vmatpush.msrb.mxu3 %v3445_v37  ;;  %v7483_v37 = vld [vmem:[#allocation44_spill] sm:$0xff] }
 0x2e8   : > { %v1973_v13 = vadd.f32 %v1972_v18, %v6387_v39  ;;  %v2051_v23 = vpop.f32.mrf.mxu1  ;;  %v2178_v36 = vpop.f32.mrf.mxu2 }
 0x2e9   : > { %v2277_v26 = vpop.f32.mrf.mxu3 }
 0x2ea   : > { %v2052_v0 = vadd.f32 %v2051_v23, %v1973_v13  ;;  %2374 = vmatmul.f32.gmra.mxu0 %v7464_v1  ;;  %v6514_v5 = vadd.f32 %v2277_v26, %v2178_v36  ;;  %v7482_v23 = vld [vmem:[#allocation42_spill] sm:$0xff] }
 0x2eb   : > { %2481 = vmatmul.f32.gmra.mxu1 %v7481_v44 }
 0x2ec   : > { %5276 = vst [vmem:[%s6077_s18 + $0x1a0] sm:$0xff] %v2052_v0 }
 0x2ed   : > { %2572 = vmatmul.f32.gmra.mxu2 %v7469_v31 }
 0x2ee   : > { %2651 = vmatmul.f32.gmra.mxu3 %v7469_v31 }
 0x2ef   : > { %v1976_v47 = vpop.f32.mrf.mxu0 }
 0x2f0   : > { %v1977_v39 = vadd.f32 %v1976_v47, %v6393_v48  ;;  %v2055_v18 = vpop.f32.mrf.mxu1  ;;  %v2186_v19 = vpop.f32.mrf.mxu2 }
 0x2f1   : > { %v2281_v60 = vpop.f32.mrf.mxu3 }
 0x2f2   : > { %v2056_v13 = vadd.f32 %v2055_v18, %v1977_v39  ;;  %2379 = vmatmul.f32.gmra.mxu0 %v7482_v23  ;;  %v6522_v36 = vadd.f32 %v2281_v60, %v2186_v19  ;;  %v7484_v60 = vld [vmem:[#allocation10_spill] sm:$0xff] }
 0x2f3   : > { %2487 = vmatmul.f32.gmra.mxu1 %v7483_v37 }
 0x2f4   : > { %5278 = vst [vmem:[%s6077_s18 + $0x1b0] sm:$0xff] %v2056_v13 }
 0x2f5   : > { %2576 = vmatmul.f32.gmra.mxu2 %v7472_v32 }
 0x2f6   : > { %2655 = vmatmul.f32.gmra.mxu3 %v7472_v32 }
 0x2f7   : > { %v1980_v0 = vpop.f32.mrf.mxu0 }
 0x2f8   : > { %v1981_v26 = vadd.f32 %v1980_v0, %v6399_v45  ;;  %v2059_v48 = vpop.f32.mrf.mxu1  ;;  %v2194_v47 = vpop.f32.mrf.mxu2 }
 0x2f9   : > { %v2285_v39 = vpop.f32.mrf.mxu3 }
 0x2fa   : > { %v2060_v31 = vadd.f32 %v2059_v48, %v1981_v26  ;;  %2384 = vmatmul.f32.gmra.mxu0 %v7470_v22  ;;  %v6530_v18 = vadd.f32 %v2285_v39, %v2194_v47  ;;  %v7485_v26 = vld [vmem:[#allocation15_spill] sm:$0xff] }
 0x2fb   : > { %2493 = vmatmul.f32.gmra.mxu1 %v7447_v12 }
 0x2fc   : > { %5280 = vst [vmem:[%s6077_s18 + $0x1c0] sm:$0xff] %v2060_v31  ;;  %v7486_v31 = vld [vmem:[#allocation8_spill] sm:$0xff] }
 0x2fd   : > { %2943 = vmatmul.f32.vlgmr.msra.gmra.mxu2 %v7484_v60 }
 0x2fe   : > { %3038 = vmatmul.f32.vlgmr.msra.gmra.mxu3 %v7473_v27 }
 0x2ff   : > { %v1984_v19 = vpop.f32.mrf.mxu0 }
 0x300   : > { %v1985_v13 = vadd.f32 %v1984_v19, %v6405_v55  ;;  %v2063_v45 = vpop.f32.mrf.mxu1  ;;  %v2202_v0 = vpop.f32.mrf.mxu2 }
 0x301   : > { %v2289_v48 = vpop.f32.mrf.mxu3 }
 0x302   : > { %v2064_v32 = vadd.f32 %v2063_v45, %v1985_v13  ;;  %2718 = vmatmul.f32.vlgmr.msra.gmra.mxu0 %v7485_v26  ;;  %v6538_v22 = vadd.f32 %v2289_v48, %v2202_v0  ;;  %v7487_v45 = vld [vmem:[#allocation17_spill] sm:$0xff] }
 0x303   : > { %3530 = vmatpush.msra.mxu0 %v6502_v2  ;;  %2861 = vmatmul.f32.vlgmr.msra.gmra.mxu1 %v7486_v31 }
 0x304   : > { %5282 = vst [vmem:[%s6077_s18 + $0x1d0] sm:$0xff] %v2064_v32  ;;  %3625 = vmatpush.msra.mxu1 %v6495_v58 }
 0x305   : > { %2948 = vmatmul.f32.gmra.mxu2 %v7474_v40 }
 0x306   : > { %3044 = vmatmul.f32.gmra.mxu3 %v7475_v54 }
 0x307   : > { %v2315_v55 = vpop.f32.mrf.mxu0 }
 0x308   : > { %v2316_v47 = vadd.f32 %v2315_v55, %v6411_v15  ;;  %v2410_v39 = vpop.f32.mrf.mxu1  ;;  %v2521_v19 = vpop.f32.mrf.mxu2 }
 0x309   : > { %v2600_v0 = vpop.f32.mrf.mxu3 }
 0x30a   : > { %v2411_v13 = vadd.f32 %v2410_v39, %v2316_v47  ;;  %2726 = vmatmul.f32.gmra.mxu0 %v7487_v45  ;;  %v7488_v47 = vld [vmem:[#allocation21_spill] sm:$0xff] }
 0x30b   : > { %2865 = vmatmul.f32.gmra.mxu1 %v5662_v14 }
 0x30c   : > { %v2522_v48 = vadd.f32 %v2521_v19, %v2411_v13  ;;  %v7489_v13 = vld [vmem:[#allocation20_spill] sm:$0xff] }
 0x30d   : > { %2953 = vmatmul.f32.gmra.mxu2 %v5700_v35 }
 0x30e   : > { %v2601_v32 = vadd.f32 %v2600_v0, %v2522_v48  ;;  %3050 = vmatmul.f32.gmra.mxu3 %v5710_v38  ;;  %v7490_v0 = vld [vmem:[#allocation22_spill] sm:$0xff] }
 0x30f   : > { %v2320_v40 = vpop.f32.mrf.mxu0 }
 0x310   : > { %5255 = vst [vmem:[%s6077_s18 + $0xf8] sm:$0xff] %v2601_v32  ;;  %v2321_v54 = vadd.f32 %v2320_v40, %v6419_v25  ;;  %v2416_v15 = vpop.f32.mrf.mxu1  ;;  %v2525_v55 = vpop.f32.mrf.mxu2  ;;  %v7491_v32 = vld [vmem:[#allocation50_spill] sm:$0xff] }
 0x311   : > { %v2604_v39 = vpop.f32.mrf.mxu3 }
 0x312   : > { %v2417_v27 = vadd.f32 %v2416_v15, %v2321_v54  ;;  %2734 = vmatmul.f32.gmra.mxu0 %v7488_v47  ;;  %v7492_v15 = vld [vmem:[#allocation25_spill] sm:$0xff] }
 0x313   : > { %2869 = vmatmul.f32.gmra.mxu1 %v5688_v28 }
 0x314   : > { %v2526_v60 = vadd.f32 %v2525_v55, %v2417_v27  ;;  %v7493_v55 = vld [vmem:[#allocation19_spill] sm:$0xff] }
 0x315   : > { %2958 = vmatmul.f32.gmra.mxu2 %v7489_v13 }
 0x316   : > { %v2605_v19 = vadd.f32 %v2604_v39, %v2526_v60  ;;  %3056 = vmatmul.f32.gmra.mxu3 %v7490_v0  ;;  %v5285_v0 = vld [vmem:[%s5638_s20 + $0x48] sm:$0xff] }
 0x317   : > { %v2325_v48 = vpop.f32.mrf.mxu0  ;;  %v3304_v13 = vand.u32 4294901760, %v5285_v0 }
 0x318   : > { %5257 = vst [vmem:[%s6077_s18 + $0x108] sm:$0xff] %v2605_v19  ;;  %v2326_v40 = vadd.f32 %v2325_v48, %v7491_v32  ;;  %v2422_v25 = vpop.f32.mrf.mxu1  ;;  %v2529_v38 = vpop.f32.mrf.mxu2 }
 0x319   : > { %v2608_v35 = vpop.f32.mrf.mxu3  ;;  %3305 = vmatpush.msrb.mxu2 %v3304_v13  ;;  %3627 = vmatpush.msra.mxu1 %v3304_v13 }
 0x31a   : > { %v2423_v54 = vadd.f32 %v2422_v25, %v2326_v40  ;;  %2742 = vmatmul.f32.gmra.mxu0 %v7492_v15  ;;  %v7494_v25 = vld [vmem:[#allocation27_spill] sm:$0xff] }
 0x31b   : > { %2873 = vmatmul.f32.gmra.mxu1 %v7493_v55 }
 0x31c   : > { %v2530_v27 = vadd.f32 %v2529_v38, %v2423_v54  ;;  %v3448_v54 = vsub.f32 %v5285_v0, %v3304_v13 }
 0x31d   : > { %2963 = vmatmul.f32.gmra.mxu2 %v7479_v33 }
 0x31e   : > { %v2609_v60 = vadd.f32 %v2608_v35, %v2530_v27  ;;  %3062 = vmatmul.f32.gmra.mxu3 %v7480_v17  ;;  %v7495_v27 = vld [vmem:[#allocation23_spill] sm:$0xff]  ;;  %v7496_v17 = vand.u32 4294901760, %v6502_v2  ;;  %3533 = vmatpush.msra.mxu0 %v3448_v54  ;;  %v7497_v2 = vld [vmem:[#allocation28_spill] sm:$0xff] }
 0x31f   : > { %v2330_v39 = vpop.f32.mrf.mxu0 }
 0x320   : > { %5259 = vst [vmem:[%s6077_s18 + $0x118] sm:$0xff] %v2609_v60  ;;  %v2331_v19 = vadd.f32 %v2330_v39, %v6438_v42  ;;  %v2428_v48 = vpop.f32.mrf.mxu1  ;;  %v2533_v32 = vpop.f32.mrf.mxu2  ;;  %3736 = vmatpush.msra.mxu2 %v7496_v17  ;;  %v3449_v60 = vand.u32 4294901760, %v3448_v54 }
 0x321   : > { %v2612_v38 = vpop.f32.mrf.mxu3 }
 0x322   : > { %v2429_v40 = vadd.f32 %v2428_v48, %v2331_v19  ;;  %2750 = vmatmul.f32.gmra.mxu0 %v7494_v25  ;;  %v3450_v19 = vsub.f32 %v3448_v54, %v3449_v60  ;;  %3740 = vmatpush.msra.mxu2 %v3449_v60 }
 0x323   : > { %2877 = vmatmul.f32.gmra.mxu1 %v7495_v27 }
 0x324   : > { %v2534_v35 = vadd.f32 %v2533_v32, %v2429_v40  ;;  %v3451_v40 = vand.u32 4294901760, %v3450_v19  ;;  %v7498_v19 = vld [vmem:[#allocation29_spill] sm:$0xff] }
 0x325   : > { %2968 = vmatmul.f32.gmra.mxu2 %v5762_v56 }
 0x326   : > { %v2613_v42 = vadd.f32 %v2612_v38, %v2534_v35  ;;  %3068 = vmatmul.f32.gmra.mxu3 %v5772_v61 }
 0x327   : > { %v2335_v39 = vpop.f32.mrf.mxu0  ;;  %3452 = vmatpush.msrb.mxu3 %v3451_v40 }
 0x328   : > { %5261 = vst [vmem:[%s6077_s18 + $0x128] sm:$0xff] %v2613_v42  ;;  %v2336_v0 = vadd.f32 %v2335_v39, %v6447_v7  ;;  %v2434_v48 = vpop.f32.mrf.mxu1  ;;  %v2537_v32 = vpop.f32.mrf.mxu2 }
 0x329   : > { %v2616_v17 = vpop.f32.mrf.mxu3  ;;  %3817 = vmatpush.msra.mxu3 %v6495_v58 }
 0x32a   : > { %v2435_v33 = vadd.f32 %v2434_v48, %v2336_v0  ;;  %2758 = vmatmul.f32.gmra.mxu0 %v7497_v2 }
 0x32b   : > { %2881 = vmatmul.f32.gmra.mxu1 %v5753_v53  ;;  %3819 = vmatpush.msra.mxu3 %v3304_v13 }
 0x32c   : > { %v2538_v38 = vadd.f32 %v2537_v32, %v2435_v33 }
 0x32d   : > { %2973 = vmatmul.f32.gmra.mxu2 %v5785_v3 }
 0x32e   : > { %v2617_v35 = vadd.f32 %v2616_v17, %v2538_v38  ;;  %3074 = vmatmul.f32.gmra.mxu3 %v5794_v10  ;;  %v7499_v17 = vld [vmem:[#allocation30_spill] sm:$0xff] }
 0x32f   : > { %v2340_v7 = vpop.f32.mrf.mxu0 }
 0x330   : > { %5263 = vst [vmem:[%s6077_s18 + $0x138] sm:$0xff] %v2617_v35  ;;  %v2341_v54 = vadd.f32 %v2340_v7, %v6455_v52  ;;  %v2440_v60 = vpop.f32.mrf.mxu1  ;;  %v2541_v42 = vpop.f32.mrf.mxu2 }
 0x331   : > { %v2620_v33 = vpop.f32.mrf.mxu3 }
 0x332   : > { %v2441_v39 = vadd.f32 %v2440_v60, %v2341_v54  ;;  %2766 = vmatmul.f32.gmra.mxu0 %v7498_v19 }
 0x333   : > { %2885 = vmatmul.f32.gmra.mxu1 %v5774_v62 }
 0x334   : > { %v2542_v0 = vadd.f32 %v2541_v42, %v2441_v39 }
 0x335   : > { %2978 = vmatmul.f32.gmra.mxu2 %v5806_v16 }
 0x336   : > { %v2621_v58 = vadd.f32 %v2620_v33, %v2542_v0  ;;  %3080 = vmatmul.f32.gmra.mxu3 %v5815_v9  ;;  %v7500_v33 = vld [vmem:[#allocation31_spill] sm:$0xff] }
 0x337   : > { %v2345_v48 = vpop.f32.mrf.mxu0 }
 0x338   : > { %5265 = vst [vmem:[%s6077_s18 + $0x148] sm:$0xff] %v2621_v58  ;;  %v2346_v13 = vadd.f32 %v2345_v48, %v6463_v4  ;;  %v2446_v52 = vpop.f32.mrf.mxu1  ;;  %v2545_v32 = vpop.f32.mrf.mxu2 }
 0x339   : > { %v2624_v38 = vpop.f32.mrf.mxu3 }
 0x33a   : > { %v2447_v40 = vadd.f32 %v2446_v52, %v2346_v13  ;;  %2774 = vmatmul.f32.gmra.mxu0 %v7499_v17 }
 0x33b   : > { %2889 = vmatmul.f32.gmra.mxu1 %v5796_v11 }
 0x33c   : > { %v2546_v35 = vadd.f32 %v2545_v32, %v2447_v40 }
 0x33d   : > { %2983 = vmatmul.f32.gmra.mxu2 %v5826_v24 }
 0x33e   : > { %v2625_v7 = vadd.f32 %v2624_v38, %v2546_v35  ;;  %3086 = vmatmul.f32.gmra.mxu3 %v5835_v29  ;;  %v7501_v38 = vld [vmem:[#allocation32_spill] sm:$0xff] }
 0x33f   : > { %v2350_v54 = vpop.f32.mrf.mxu0 }
 0x340   : > { %5267 = vst [vmem:[%s6077_s18 + $0x158] sm:$0xff] %v2625_v7  ;;  %v2351_v60 = vadd.f32 %v2350_v54, %v6471_v49  ;;  %v2452_v4 = vpop.f32.mrf.mxu1  ;;  %v2549_v42 = vpop.f32.mrf.mxu2 }
 0x341   : > { %v2628_v0 = vpop.f32.mrf.mxu3 }
 0x342   : > { %v2453_v39 = vadd.f32 %v2452_v4, %v2351_v60  ;;  %2782 = vmatmul.f32.gmra.mxu0 %v7500_v33 }
 0x343   : > { %2893 = vmatmul.f32.gmra.mxu1 %v5817_v20 }
 0x344   : > { %v2550_v58 = vadd.f32 %v2549_v42, %v2453_v39 }
 0x345   : > { %2988 = vmatmul.f32.gmra.mxu2 %v5846_v34 }
 0x346   : > { %v2629_v48 = vadd.f32 %v2628_v0, %v2550_v58  ;;  %3092 = vmatmul.f32.gmra.mxu3 %v5855_v41  ;;  %v7502_v0 = vld [vmem:[#allocation35_spill] sm:$0xff] }
 0x347   : > { %v2355_v13 = vpop.f32.mrf.mxu0 }
 0x348   : > { %5269 = vst [vmem:[%s6077_s18 + $0x168] sm:$0xff] %v2629_v48  ;;  %v2356_v52 = vadd.f32 %v2355_v13, %v6479_v8  ;;  %v2458_v49 = vpop.f32.mrf.mxu1  ;;  %v2553_v32 = vpop.f32.mrf.mxu2 }
 0x349   : > { %v2632_v35 = vpop.f32.mrf.mxu3 }
 0x34a   : > { %v2459_v40 = vadd.f32 %v2458_v49, %v2356_v52  ;;  %2790 = vmatmul.f32.gmra.mxu0 %v7501_v38 }
 0x34b   : > { %2897 = vmatmul.f32.gmra.mxu1 %v5837_v30 }
 0x34c   : > { %v2554_v7 = vadd.f32 %v2553_v32, %v2459_v40 }
 0x34d   : > { %2993 = vmatmul.f32.gmra.mxu2 %v5866_v50 }
 0x34e   : > { %v2633_v54 = vadd.f32 %v2632_v35, %v2554_v7  ;;  %3098 = vmatmul.f32.gmra.mxu3 %v5875_v57  ;;  %v7503_v35 = vld [vmem:[#allocation39_spill] sm:$0xff] }
 0x34f   : > { %v2360_v60 = vpop.f32.mrf.mxu0 }
 0x350   : > { %5271 = vst [vmem:[%s6077_s18 + $0x178] sm:$0xff] %v2633_v54  ;;  %v2361_v4 = vadd.f32 %v2360_v60, %v6487_v51  ;;  %v2464_v8 = vpop.f32.mrf.mxu1  ;;  %v2557_v42 = vpop.f32.mrf.mxu2 }
 0x351   : > { %v2636_v58 = vpop.f32.mrf.mxu3 }
 0x352   : > { %v2465_v39 = vadd.f32 %v2464_v8, %v2361_v4  ;;  %2798 = vmatmul.f32.gmra.mxu0 %v7502_v0 }
 0x353   : > { %2901 = vmatmul.f32.gmra.mxu1 %v5857_v43 }
 0x354   : > { %v2558_v48 = vadd.f32 %v2557_v42, %v2465_v39 }
 0x355   : > { %2998 = vmatmul.f32.gmra.mxu2 %v7440_v63 }
 0x356   : > { %v2637_v13 = vadd.f32 %v2636_v58, %v2558_v48  ;;  %3104 = vmatmul.f32.gmra.mxu3 %v7441_v6  ;;  %v7504_v58 = vld [vmem:[#allocation43_spill] sm:$0xff] }
 0x357   : > { %v2365_v52 = vpop.f32.mrf.mxu0 }
 0x358   : > { %5273 = vst [vmem:[%s6077_s18 + $0x188] sm:$0xff] %v2637_v13  ;;  %v2366_v49 = vadd.f32 %v2365_v52, %v6498_v59  ;;  %v2470_v51 = vpop.f32.mrf.mxu1  ;;  %v2561_v32 = vpop.f32.mrf.mxu2 }
 0x359   : > { %v2640_v7 = vpop.f32.mrf.mxu3 }
 0x35a   : > { %v2471_v40 = vadd.f32 %v2470_v51, %v2366_v49  ;;  %2806 = vmatmul.f32.gmra.mxu0 %v7503_v35 }
 0x35b   : > { %2905 = vmatmul.f32.gmra.mxu1 %v7463_v21 }
 0x35c   : > { %v2562_v54 = vadd.f32 %v2561_v32, %v2471_v40 }
 0x35d   : > { %3003 = vmatmul.f32.gmra.mxu2 %v7464_v1 }
 0x35e   : > { %v2641_v60 = vadd.f32 %v2640_v7, %v2562_v54  ;;  %3110 = vmatmul.f32.gmra.mxu3 %v7481_v44  ;;  %v7505_v7 = vld [vmem:[#allocation47_spill] sm:$0xff] }
 0x35f   : > { %v2370_v4 = vpop.f32.mrf.mxu0 }
 0x360   : > { %5275 = vst [vmem:[%s6077_s18 + $0x198] sm:$0xff] %v2641_v60  ;;  %v2371_v8 = vadd.f32 %v2370_v4, %v6514_v5  ;;  %v2476_v59 = vpop.f32.mrf.mxu1  ;;  %v2565_v42 = vpop.f32.mrf.mxu2  ;;  %v7506_v4 = vld [vmem:[#allocation41_spill] sm:$0xff] }
 0x361   : > { %v2644_v48 = vpop.f32.mrf.mxu3 }
 0x362   : > { %v2477_v39 = vadd.f32 %v2476_v59, %v2371_v8  ;;  %2814 = vmatmul.f32.gmra.mxu0 %v7504_v58  ;;  %v7507_v59 = vld [vmem:[#allocation46_spill] sm:$0xff] }
 0x363   : > { %2909 = vmatmul.f32.gmra.mxu1 %v7466_v46 }
 0x364   : > { %v2566_v13 = vadd.f32 %v2565_v42, %v2477_v39 }
 0x365   : > { %3008 = vmatmul.f32.gmra.mxu2 %v7482_v23 }
 0x366   : > { %v2645_v52 = vadd.f32 %v2644_v48, %v2566_v13  ;;  %3116 = vmatmul.f32.gmra.mxu3 %v7483_v37 }
 0x367   : > { %v2375_v49 = vpop.f32.mrf.mxu0 }
 0x368   : > { %5277 = vst [vmem:[%s6077_s18 + $0x1a8] sm:$0xff] %v2645_v52  ;;  %v2376_v51 = vadd.f32 %v2375_v49, %v6522_v36  ;;  %v2482_v5 = vpop.f32.mrf.mxu1  ;;  %v2569_v32 = vpop.f32.mrf.mxu2  ;;  %v7508_v52 = vld [vmem:[#allocation49_spill] sm:$0xff] }
 0x369   : > { %v2648_v54 = vpop.f32.mrf.mxu3 }
 0x36a   : > { %v2483_v40 = vadd.f32 %v2482_v5, %v2376_v51  ;;  %2822 = vmatmul.f32.gmra.mxu0 %v7505_v7  ;;  %v7509_v5 = vld [vmem:[#allocation45_spill] sm:$0xff] }
 0x36b   : > { %2913 = vmatmul.f32.gmra.mxu1 %v7506_v4 }
 0x36c   : > { %v2570_v60 = vadd.f32 %v2569_v32, %v2483_v40 }
 0x36d   : > { %3013 = vmatmul.f32.gmra.mxu2 %v7507_v59 }
 0x36e   : > { %v2649_v8 = vadd.f32 %v2648_v54, %v2570_v60  ;;  %3122 = vmatmul.f32.gmra.mxu3 %v7447_v12 }
 0x36f   : > { %v2380_v42 = vpop.f32.mrf.mxu0 }
 0x370   : > { %5279 = vst [vmem:[%s6077_s18 + $0x1b8] sm:$0xff] %v2649_v8  ;;  %v2381_v39 = vadd.f32 %v2380_v42, %v6530_v18  ;;  %v2488_v36 = vpop.f32.mrf.mxu1  ;;  %v2573_v48 = vpop.f32.mrf.mxu2 }
 0x371   : > { %v2652_v49 = vpop.f32.mrf.mxu3 }
 0x372   : > { %v2489_v13 = vadd.f32 %v2488_v36, %v2381_v39  ;;  %2830 = vmatmul.f32.gmra.mxu0 %v7508_v52 }
 0x373   : > { %2917 = vmatmul.f32.gmra.mxu1 %v7509_v5 }
 0x374   : > { %v2574_v51 = vadd.f32 %v2573_v48, %v2489_v13 }
 0x375   : > { %3311 = vmatmul.f32.vlgmr.msrb.gmra.mxu2 %v7485_v26 }
 0x376   : > { %v2653_v32 = vadd.f32 %v2652_v49, %v2574_v51  ;;  %3454 = vmatmul.f32.vlgmr.msrb.gmra.mxu3 %v7486_v31 }
 0x377   : > { %v2385_v40 = vpop.f32.mrf.mxu0 }
 0x378   : > { %5281 = vst [vmem:[%s6077_s18 + $0x1c8] sm:$0xff] %v2653_v32  ;;  %v2386_v54 = vadd.f32 %v2385_v40, %v6538_v22  ;;  %v2494_v18 = vpop.f32.mrf.mxu1  ;;  %v2577_v60 = vpop.f32.mrf.mxu2 }
 0x379   : > { %v2656_v42 = vpop.f32.mrf.mxu3 }
 0x37a   : > { %v2495_v8 = vadd.f32 %v2494_v18, %v2386_v54  ;;  %3149 = vmatmul.f32.vlgmr.msrb.gmra.mxu0 %v7486_v31 }
 0x37b   : > { %3228 = vmatmul.f32.vlgmr.msrb.gmra.mxu1 %v7486_v31 }
 0x37c   : > { %v2578_v39 = vadd.f32 %v2577_v60, %v2495_v8 }
 0x37d   : > { %3319 = vmatmul.f32.gmra.mxu2 %v7487_v45 }
 0x37e   : > { %v2657_v36 = vadd.f32 %v2656_v42, %v2578_v39  ;;  %3458 = vmatmul.f32.gmra.mxu3 %v5662_v14 }
 0x37f   : > { %v2719_v48 = vpop.f32.mrf.mxu0 }
 0x380   : > { %5283 = vst [vmem:[%s6077_s18 + $0x1d8] sm:$0xff] %v2657_v36  ;;  %v2862_v13 = vpop.f32.mrf.mxu1  ;;  %v2944_v49 = vpop.f32.mrf.mxu2 }
 0x381   : > { %v2863_v51 = vadd.f32 %v2862_v13, %v2719_v48  ;;  %v3039_v22 = vpop.f32.mrf.mxu3 }
 0x382   : > { %3153 = vmatmul.f32.gmra.mxu0 %v5662_v14 }
 0x383   : > { %v2945_v32 = vadd.f32 %v2944_v49, %v2863_v51  ;;  %3232 = vmatmul.f32.gmra.mxu1 %v5662_v14 }
 0x385   : > { %v6642_v40 = vadd.f32 %v3039_v22, %v2945_v32  ;;  %3327 = vmatmul.f32.gmra.mxu2 %v7488_v47 }
 0x386   : > { %3462 = vmatmul.f32.gmra.mxu3 %v5688_v28 }
 0x387   : > { %v2727_v54 = vpop.f32.mrf.mxu0 }
 0x388   : > { %v2866_v18 = vpop.f32.mrf.mxu1  ;;  %v2949_v60 = vpop.f32.mrf.mxu2 }
 0x389   : > { %v2867_v8 = vadd.f32 %v2866_v18, %v2727_v54  ;;  %v3045_v42 = vpop.f32.mrf.mxu3 }
 0x38a   : > { %3157 = vmatmul.f32.gmra.mxu0 %v5688_v28 }
 0x38b   : > { %v2950_v39 = vadd.f32 %v2949_v60, %v2867_v8  ;;  %3236 = vmatmul.f32.gmra.mxu1 %v5688_v28 }
 0x38d   : > { %v6648_v36 = vadd.f32 %v3045_v42, %v2950_v39  ;;  %3335 = vmatmul.f32.gmra.mxu2 %v7492_v15 }
 0x38e   : > { %3466 = vmatmul.f32.gmra.mxu3 %v7493_v55 }
 0x38f   : > { %v2735_v48 = vpop.f32.mrf.mxu0 }
 0x390   : > { %v2870_v13 = vpop.f32.mrf.mxu1  ;;  %v2954_v49 = vpop.f32.mrf.mxu2 }
 0x391   : > { %v2871_v51 = vadd.f32 %v2870_v13, %v2735_v48  ;;  %v3051_v22 = vpop.f32.mrf.mxu3 }
 0x392   : > { %3161 = vmatmul.f32.gmra.mxu0 %v7493_v55 }
 0x393   : > { %v2955_v32 = vadd.f32 %v2954_v49, %v2871_v51  ;;  %3240 = vmatmul.f32.gmra.mxu1 %v7493_v55 }
 0x395   : > { %v6654_v54 = vadd.f32 %v3051_v22, %v2955_v32  ;;  %3343 = vmatmul.f32.gmra.mxu2 %v7494_v25 }
 0x396   : > { %3470 = vmatmul.f32.gmra.mxu3 %v7495_v27 }
 0x397   : > { %v2743_v18 = vpop.f32.mrf.mxu0 }
 0x398   : > { %v2874_v60 = vpop.f32.mrf.mxu1  ;;  %v2959_v8 = vpop.f32.mrf.mxu2 }
 0x399   : > { %v2875_v42 = vadd.f32 %v2874_v60, %v2743_v18  ;;  %v3057_v39 = vpop.f32.mrf.mxu3 }
 0x39a   : > { %3165 = vmatmul.f32.gmra.mxu0 %v7495_v27 }
 0x39b   : > { %v2960_v48 = vadd.f32 %v2959_v8, %v2875_v42  ;;  %3244 = vmatmul.f32.gmra.mxu1 %v7495_v27 }
 0x39d   : > { %v6660_v13 = vadd.f32 %v3057_v39, %v2960_v48  ;;  %3351 = vmatmul.f32.gmra.mxu2 %v7497_v2 }
 0x39e   : > { %3474 = vmatmul.f32.gmra.mxu3 %v5753_v53 }
 0x39f   : > { %v2751_v49 = vpop.f32.mrf.mxu0 }
 0x3a0   : > { %v2878_v51 = vpop.f32.mrf.mxu1  ;;  %v2964_v22 = vpop.f32.mrf.mxu2 }
 0x3a1   : > { %v2879_v32 = vadd.f32 %v2878_v51, %v2751_v49  ;;  %v3063_v25 = vpop.f32.mrf.mxu3 }
 0x3a2   : > { %3169 = vmatmul.f32.gmra.mxu0 %v5753_v53 }
 0x3a3   : > { %v2965_v18 = vadd.f32 %v2964_v22, %v2879_v32  ;;  %3248 = vmatmul.f32.gmra.mxu1 %v5753_v53 }
 0x3a5   : > { %v6666_v60 = vadd.f32 %v3063_v25, %v2965_v18  ;;  %3359 = vmatmul.f32.gmra.mxu2 %v7498_v19 }
 0x3a6   : > { %3478 = vmatmul.f32.gmra.mxu3 %v5774_v62 }
 0x3a7   : > { %v2759_v8 = vpop.f32.mrf.mxu0 }
 0x3a8   : > { %v2882_v42 = vpop.f32.mrf.mxu1  ;;  %v2969_v39 = vpop.f32.mrf.mxu2 }
 0x3a9   : > { %v2883_v48 = vadd.f32 %v2882_v42, %v2759_v8  ;;  %v3069_v2 = vpop.f32.mrf.mxu3 }
 0x3aa   : > { %3173 = vmatmul.f32.gmra.mxu0 %v5774_v62 }
 0x3ab   : > { %v2970_v49 = vadd.f32 %v2969_v39, %v2883_v48  ;;  %3252 = vmatmul.f32.gmra.mxu1 %v5774_v62 }
 0x3ad   : > { %v6672_v51 = vadd.f32 %v3069_v2, %v2970_v49  ;;  %3367 = vmatmul.f32.gmra.mxu2 %v7499_v17 }
 0x3ae   : > { %3482 = vmatmul.f32.gmra.mxu3 %v5796_v11 }
 0x3af   : > { %v2767_v25 = vpop.f32.mrf.mxu0 }
 0x3b0   : > { %v2886_v22 = vpop.f32.mrf.mxu1  ;;  %v2974_v32 = vpop.f32.mrf.mxu2 }
 0x3b1   : > { %v2887_v18 = vadd.f32 %v2886_v22, %v2767_v25  ;;  %v3075_v19 = vpop.f32.mrf.mxu3 }
 0x3b2   : > { %3177 = vmatmul.f32.gmra.mxu0 %v5796_v11 }
 0x3b3   : > { %v2975_v8 = vadd.f32 %v2974_v32, %v2887_v18  ;;  %3256 = vmatmul.f32.gmra.mxu1 %v5796_v11 }
 0x3b5   : > { %v6678_v42 = vadd.f32 %v3075_v19, %v2975_v8  ;;  %3375 = vmatmul.f32.gmra.mxu2 %v7500_v33 }
 0x3b6   : > { %3486 = vmatmul.f32.gmra.mxu3 %v5817_v20 }
 0x3b7   : > { %v2775_v2 = vpop.f32.mrf.mxu0 }
 0x3b8   : > { %v2890_v39 = vpop.f32.mrf.mxu1  ;;  %v2979_v48 = vpop.f32.mrf.mxu2 }
 0x3b9   : > { %v2891_v49 = vadd.f32 %v2890_v39, %v2775_v2  ;;  %v3081_v17 = vpop.f32.mrf.mxu3 }
 0x3ba   : > { %3181 = vmatmul.f32.gmra.mxu0 %v5817_v20 }
 0x3bb   : > { %v2980_v25 = vadd.f32 %v2979_v48, %v2891_v49  ;;  %3260 = vmatmul.f32.gmra.mxu1 %v5817_v20 }
 0x3bd   : > { %v6684_v22 = vadd.f32 %v3081_v17, %v2980_v25  ;;  %3383 = vmatmul.f32.gmra.mxu2 %v7501_v38 }
 0x3be   : > { %3490 = vmatmul.f32.gmra.mxu3 %v5837_v30 }
 0x3bf   : > { %v2783_v19 = vpop.f32.mrf.mxu0 }
 0x3c0   : > { %v2894_v32 = vpop.f32.mrf.mxu1  ;;  %v2984_v18 = vpop.f32.mrf.mxu2 }
 0x3c1   : > { %v2895_v8 = vadd.f32 %v2894_v32, %v2783_v19  ;;  %v3087_v33 = vpop.f32.mrf.mxu3 }
 0x3c2   : > { %3185 = vmatmul.f32.gmra.mxu0 %v5837_v30 }
 0x3c3   : > { %v2985_v2 = vadd.f32 %v2984_v18, %v2895_v8  ;;  %3264 = vmatmul.f32.gmra.mxu1 %v5837_v30  ;;  %v5320_v8 = vld [vmem:[%s5638_s20 + $0x70] sm:$0xff] }
 0x3c5   : > { %v6690_v39 = vadd.f32 %v3087_v33, %v2985_v2  ;;  %3391 = vmatmul.f32.gmra.mxu2 %v7502_v0  ;;  %v6701_v2 = vand.u32 4294901760, %v5320_v8 }
 0x3c6   : > { %3494 = vmatmul.f32.gmra.mxu3 %v5857_v43 }
 0x3c7   : > { %v2791_v17 = vpop.f32.mrf.mxu0  ;;  %4254 = vmatpush.msrb.mxu3 %v6701_v2  ;;  %3932 = vmatpush.msrb.mxu0 %v6701_v2 }
 0x3c8   : > { %v2898_v48 = vpop.f32.mrf.mxu1  ;;  %v2989_v49 = vpop.f32.mrf.mxu2 }
 0x3c9   : > { %v2899_v25 = vadd.f32 %v2898_v48, %v2791_v17  ;;  %v3093_v19 = vpop.f32.mrf.mxu3  ;;  %v6705_v48 = vsub.f32 %v5320_v8, %v6701_v2 }
 0x3ca   : > { %3189 = vmatmul.f32.gmra.mxu0 %v5857_v43 }
 0x3cb   : > { %v2990_v32 = vadd.f32 %v2989_v49, %v2899_v25  ;;  %3268 = vmatmul.f32.gmra.mxu1 %v5857_v43  ;;  %4159 = vmatpush.msrb.mxu2 %v6705_v48 }
 0x3cd   : > { %v6696_v18 = vadd.f32 %v3093_v19, %v2990_v32  ;;  %3399 = vmatmul.f32.gmra.mxu2 %v7503_v35 }
 0x3ce   : > { %3498 = vmatmul.f32.gmra.mxu3 %v7463_v21 }
 0x3cf   : > { %v2799_v33 = vpop.f32.mrf.mxu0 }
 0x3d0   : > { %v2902_v0 = vpop.f32.mrf.mxu1  ;;  %v2994_v38 = vpop.f32.mrf.mxu2 }
 0x3d1   : > { %v2903_v15 = vadd.f32 %v2902_v0, %v2799_v33  ;;  %v3099_v17 = vpop.f32.mrf.mxu3  ;;  %v7372_v0 = vand.u32 4294901760, %v6705_v48 }
 0x3d2   : > { %3193 = vmatmul.f32.gmra.mxu0 %v7463_v21 }
 0x3d3   : > { %v2995_v49 = vadd.f32 %v2994_v38, %v2903_v15  ;;  %3272 = vmatmul.f32.gmra.mxu1 %v7463_v21  ;;  %v4073_v32 = vsub.f32 %v6705_v48, %v7372_v0 }
 0x3d5   : > { %v6711_v25 = vadd.f32 %v3099_v17, %v2995_v49  ;;  %3407 = vmatmul.f32.gmra.mxu2 %v7504_v58  ;;  %v4074_v35 = vand.u32 4294901760, %v4073_v32 }
 0x3d6   : > { %3502 = vmatmul.f32.gmra.mxu3 %v7466_v46 }
 0x3d7   : > { %v2807_v19 = vpop.f32.mrf.mxu0  ;;  %4075 = vmatpush.msrb.mxu1 %v4074_v35 }
 0x3d8   : > { %v2906_v33 = vpop.f32.mrf.mxu1  ;;  %v2999_v8 = vpop.f32.mrf.mxu2 }
 0x3d9   : > { %v2907_v15 = vadd.f32 %v2906_v33, %v2807_v19  ;;  %v3105_v38 = vpop.f32.mrf.mxu3 }
 0x3da   : > { %3197 = vmatmul.f32.gmra.mxu0 %v7466_v46 }
 0x3db   : > { %v3000_v17 = vadd.f32 %v2999_v8, %v2907_v15  ;;  %3276 = vmatmul.f32.gmra.mxu1 %v7466_v46 }
 0x3dd   : > { %v6721_v49 = vadd.f32 %v3105_v38, %v3000_v17  ;;  %3415 = vmatmul.f32.gmra.mxu2 %v7505_v7  ;;  %v7511_v7 = vld [vmem:[#allocation12_spill] sm:$0xff] }
 0x3de   : > { %3506 = vmatmul.f32.gmra.mxu3 %v7506_v4 }
 0x3df   : > { %v2815_v58 = vpop.f32.mrf.mxu0 }
 0x3e0   : > { %v2910_v47 = vpop.f32.mrf.mxu1  ;;  %v3004_v0 = vpop.f32.mrf.mxu2 }
 0x3e1   : > { %v2911_v45 = vadd.f32 %v2910_v47, %v2815_v58  ;;  %v3111_v19 = vpop.f32.mrf.mxu3 }
 0x3e2   : > { %3201 = vmatmul.f32.gmra.mxu0 %v7506_v4 }
 0x3e3   : > { %v3005_v33 = vadd.f32 %v3004_v0, %v2911_v45  ;;  %3280 = vmatmul.f32.gmra.mxu1 %v7506_v4 }
 0x3e5   : > { %v6727_v32 = vadd.f32 %v3111_v19, %v3005_v33  ;;  %3423 = vmatmul.f32.gmra.mxu2 %v7508_v52  ;;  %v7510_v52 = vld [vmem:[#allocation10_spill] sm:$0xff] }
 0x3e6   : > { %3510 = vmatmul.f32.gmra.mxu3 %v7509_v5 }
 0x3e7   : > { %v2823_v35 = vpop.f32.mrf.mxu0 }
 0x3e8   : > { %v2914_v8 = vpop.f32.mrf.mxu1  ;;  %v3009_v15 = vpop.f32.mrf.mxu2 }
 0x3e9   : > { %v2915_v38 = vadd.f32 %v2914_v8, %v2823_v35  ;;  %v3117_v17 = vpop.f32.mrf.mxu3 }
 0x3ea   : > { %3205 = vmatmul.f32.gmra.mxu0 %v7509_v5 }
 0x3eb   : > { %v3010_v47 = vadd.f32 %v3009_v15, %v2915_v38  ;;  %3284 = vmatmul.f32.gmra.mxu1 %v7509_v5 }
 0x3ed   : > { %v6733_v58 = vadd.f32 %v3117_v17, %v3010_v47  ;;  %3742 = vmatmul.f32.vlgmr.msra.gmra.mxu2 %v7486_v31 }
 0x3ee   : > { %3821 = vmatmul.f32.vlgmr.msra.gmra.mxu3 %v7486_v31 }
 0x3ef   : > { %v2831_v45 = vpop.f32.mrf.mxu0 }
 0x3f0   : > { %v2918_v0 = vpop.f32.mrf.mxu1  ;;  %v3014_v19 = vpop.f32.mrf.mxu2 }
 0x3f1   : > { %v2919_v33 = vadd.f32 %v2918_v0, %v2831_v45  ;;  %v3123_v35 = vpop.f32.mrf.mxu3  ;;  %v7512_v45 = vld [vmem:[#allocation11_spill] sm:$0xff] }
 0x3f2   : > { %3536 = vmatmul.f32.vlgmr.msra.gmra.mxu0 %v7510_v52 }
 0x3f3   : > { %v3015_v8 = vadd.f32 %v3014_v19, %v2919_v33  ;;  %3631 = vmatmul.f32.vlgmr.msra.gmra.mxu1 %v7511_v7  ;;  %v7513_v19 = vld [vmem:[#allocation13_spill] sm:$0xff] }
 0x3f5   : > { %v6739_v15 = vadd.f32 %v3123_v35, %v3015_v8  ;;  %3746 = vmatmul.f32.gmra.mxu2 %v5662_v14 }
 0x3f6   : > { %3825 = vmatmul.f32.gmra.mxu3 %v5662_v14 }
 0x3f7   : > { %v3150_v38 = vpop.f32.mrf.mxu0 }
 0x3f8   : > { %v3151_v17 = vadd.f32 %v3150_v38, %v6642_v40  ;;  %v3229_v47 = vpop.f32.mrf.mxu1  ;;  %v3312_v31 = vpop.f32.mrf.mxu2 }
 0x3f9   : > { %v3455_v0 = vpop.f32.mrf.mxu3 }
 0x3fa   : > { %v3230_v26 = vadd.f32 %v3229_v47, %v3151_v17  ;;  %3541 = vmatmul.f32.gmra.mxu0 %v7512_v45  ;;  %v6745_v52 = vadd.f32 %v3455_v0, %v3312_v31  ;;  %v7514_v17 = vld [vmem:[#allocation16_spill] sm:$0xff] }
 0x3fb   : > { %3637 = vmatmul.f32.gmra.mxu1 %v7513_v19 }
 0x3fc   : > { %5288 = vst [vmem:[%s6077_s18 + $0x1e0] sm:$0xff] %v3230_v26  ;;  %v7515_v26 = vld [vmem:[#allocation18_spill] sm:$0xff] }
 0x3fd   : > { %3750 = vmatmul.f32.gmra.mxu2 %v5688_v28 }
 0x3fe   : > { %3829 = vmatmul.f32.gmra.mxu3 %v5688_v28 }
 0x3ff   : > { %v3154_v33 = vpop.f32.mrf.mxu0 }
 0x400   : > { %v3155_v35 = vadd.f32 %v3154_v33, %v6648_v36  ;;  %v3233_v40 = vpop.f32.mrf.mxu1  ;;  %v3320_v8 = vpop.f32.mrf.mxu2 }
 0x401   : > { %v3459_v47 = vpop.f32.mrf.mxu3 }
 0x402   : > { %v3234_v38 = vadd.f32 %v3233_v40, %v3155_v35  ;;  %3546 = vmatmul.f32.gmra.mxu0 %v7514_v17  ;;  %v6753_v31 = vadd.f32 %v3459_v47, %v3320_v8  ;;  %v7516_v40 = vld [vmem:[#allocation20_spill] sm:$0xff]  ;;  %v7518_v8 = vld [vmem:[#allocation22_spill] sm:$0xff] }
 0x403   : > { %3643 = vmatmul.f32.gmra.mxu1 %v7515_v26 }
 0x404   : > { %5290 = vst [vmem:[%s6077_s18 + $0x1f0] sm:$0xff] %v3234_v38  ;;  %v5318_v38 = vld [vmem:[%s5638_s20 + $0x60] sm:$0xff] }
 0x405   : > { %3754 = vmatmul.f32.gmra.mxu2 %v7493_v55  ;;  %v3933_v47 = vand.u32 4294901760, %v5318_v38 }
 0x406   : > { %3833 = vmatmul.f32.gmra.mxu3 %v7493_v55 }
 0x407   : > { %v3158_v0 = vpop.f32.mrf.mxu0  ;;  %3934 = vmatpush.msrb.mxu0 %v3933_v47  ;;  %4256 = vmatpush.msrb.mxu3 %v3933_v47 }
 0x408   : > { %v3159_v36 = vadd.f32 %v3158_v0, %v6654_v54  ;;  %v3237_v33 = vpop.f32.mrf.mxu1  ;;  %v3328_v28 = vpop.f32.mrf.mxu2  ;;  %v4077_v54 = vsub.f32 %v5318_v38, %v3933_v47  ;;  %v7521_v38 = vld [vmem:[#allocation26_spill] sm:$0xff] }
 0x409   : > { %v3463_v17 = vpop.f32.mrf.mxu3 }
 0x40a   : > { %v3238_v35 = vadd.f32 %v3237_v33, %v3159_v36  ;;  %3551 = vmatmul.f32.gmra.mxu0 %v7516_v40  ;;  %v6761_v14 = vadd.f32 %v3463_v17, %v3328_v28  ;;  %v7519_v36 = vand.u32 4294901760, %v6705_v48  ;;  %4162 = vmatpush.msrb.mxu2 %v4077_v54  ;;  %v4078_v33 = vand.u32 4294901760, %v4077_v54 }
 0x40b   : > { %3649 = vmatmul.f32.gmra.mxu1 %v7518_v8 }
 0x40c   : > { %7517 = vst [vmem:[#allocation34_spill] sm:$0xff] %v6761_v14  ;;  %4365 = vmatpush.msra.mxu0 %v7519_v36  ;;  %v7520_v14 = vld [vmem:[#allocation24_spill] sm:$0xff] }
 0x40d   : > { %5292 = vst [vmem:[%s6077_s18 + $0x200] sm:$0xff] %v3238_v35  ;;  %3758 = vmatmul.f32.gmra.mxu2 %v7495_v27 }
 0x40e   : > { %3837 = vmatmul.f32.gmra.mxu3 %v7495_v27  ;;  %v4079_v27 = vsub.f32 %v4077_v54, %v4078_v33  ;;  %4369 = vmatpush.msra.mxu0 %v4078_v33 }
 0x40f   : > { %v3162_v55 = vpop.f32.mrf.mxu0 }
 0x410   : > { %v3163_v0 = vadd.f32 %v3162_v55, %v6660_v13  ;;  %v3241_v28 = vpop.f32.mrf.mxu1  ;;  %v3336_v17 = vpop.f32.mrf.mxu2  ;;  %v4080_v55 = vand.u32 4294901760, %v4079_v27 }
 0x411   : > { %v3467_v8 = vpop.f32.mrf.mxu3 }
 0x412   : > { %v3242_v35 = vadd.f32 %v3241_v28, %v3163_v0  ;;  %3556 = vmatmul.f32.gmra.mxu0 %v7520_v14  ;;  %v6772_v40 = vadd.f32 %v3467_v8, %v3336_v17  ;;  %4081 = vmatpush.msrb.mxu1 %v4080_v55 }
 0x413   : > { %3655 = vmatmul.f32.gmra.mxu1 %v7521_v38 }
 0x414   : > { %5294 = vst [vmem:[%s6077_s18 + $0x210] sm:$0xff] %v3242_v35  ;;  %4446 = vmatpush.msra.mxu1 %v6701_v2 }
 0x415   : > { %3762 = vmatmul.f32.gmra.mxu2 %v5753_v53 }
 0x416   : > { %3841 = vmatmul.f32.gmra.mxu3 %v5753_v53  ;;  %4448 = vmatpush.msra.mxu1 %v3933_v47 }
 0x417   : > { %v3166_v13 = vpop.f32.mrf.mxu0 }
 0x418   : > { %v3167_v48 = vadd.f32 %v3166_v13, %v6666_v60  ;;  %v3245_v0 = vpop.f32.mrf.mxu1  ;;  %v3344_v8 = vpop.f32.mrf.mxu2 }
 0x419   : > { %v3471_v54 = vpop.f32.mrf.mxu3 }
 0x41a   : > { %v3246_v36 = vadd.f32 %v3245_v0, %v3167_v48  ;;  %3561 = vmatmul.f32.gmra.mxu0 %v5762_v56  ;;  %v6781_v28 = vadd.f32 %v3471_v54, %v3344_v8 }
 0x41b   : > { %3661 = vmatmul.f32.gmra.mxu1 %v5772_v61 }
 0x41c   : > { %5296 = vst [vmem:[%s6077_s18 + $0x220] sm:$0xff] %v3246_v36 }
 0x41d   : > { %3766 = vmatmul.f32.gmra.mxu2 %v5774_v62 }
 0x41e   : > { %3845 = vmatmul.f32.gmra.mxu3 %v5774_v62 }
 0x41f   : > { %v3170_v27 = vpop.f32.mrf.mxu0 }
 0x420   : > { %v3171_v60 = vadd.f32 %v3170_v27, %v6672_v51  ;;  %v3249_v2 = vpop.f32.mrf.mxu1  ;;  %v3352_v17 = vpop.f32.mrf.mxu2 }
 0x421   : > { %v3475_v35 = vpop.f32.mrf.mxu3 }
 0x422   : > { %v3250_v33 = vadd.f32 %v3249_v2, %v3171_v60  ;;  %3566 = vmatmul.f32.gmra.mxu0 %v5785_v3  ;;  %v6789_v47 = vadd.f32 %v3475_v35, %v3352_v17 }
 0x423   : > { %3667 = vmatmul.f32.gmra.mxu1 %v5794_v10 }
 0x424   : > { %5298 = vst [vmem:[%s6077_s18 + $0x230] sm:$0xff] %v3250_v33 }
 0x425   : > { %3770 = vmatmul.f32.gmra.mxu2 %v5796_v11 }
 0x426   : > { %3849 = vmatmul.f32.gmra.mxu3 %v5796_v11 }
 0x427   : > { %v3174_v55 = vpop.f32.mrf.mxu0 }
 0x428   : > { %v3175_v13 = vadd.f32 %v3174_v55, %v6678_v42  ;;  %v3253_v51 = vpop.f32.mrf.mxu1  ;;  %v3360_v48 = vpop.f32.mrf.mxu2 }
 0x429   : > { %v3479_v8 = vpop.f32.mrf.mxu3 }
 0x42a   : > { %v3254_v0 = vadd.f32 %v3253_v51, %v3175_v13  ;;  %3571 = vmatmul.f32.gmra.mxu0 %v5806_v16  ;;  %v6797_v36 = vadd.f32 %v3479_v8, %v3360_v48 }
 0x42b   : > { %3673 = vmatmul.f32.gmra.mxu1 %v5815_v9 }
 0x42c   : > { %5300 = vst [vmem:[%s6077_s18 + $0x240] sm:$0xff] %v3254_v0 }
 0x42d   : > { %3774 = vmatmul.f32.gmra.mxu2 %v5817_v20 }
 0x42e   : > { %3853 = vmatmul.f32.gmra.mxu3 %v5817_v20 }
 0x42f   : > { %v3178_v54 = vpop.f32.mrf.mxu0 }
 0x430   : > { %v3179_v27 = vadd.f32 %v3178_v54, %v6684_v22  ;;  %v3257_v42 = vpop.f32.mrf.mxu1  ;;  %v3368_v60 = vpop.f32.mrf.mxu2 }
 0x431   : > { %v3483_v17 = vpop.f32.mrf.mxu3 }
 0x432   : > { %v3258_v2 = vadd.f32 %v3257_v42, %v3179_v27  ;;  %3576 = vmatmul.f32.gmra.mxu0 %v5826_v24  ;;  %v6805_v33 = vadd.f32 %v3483_v17, %v3368_v60 }
 0x433   : > { %3679 = vmatmul.f32.gmra.mxu1 %v5835_v29 }
 0x434   : > { %5302 = vst [vmem:[%s6077_s18 + $0x250] sm:$0xff] %v3258_v2 }
 0x435   : > { %3778 = vmatmul.f32.gmra.mxu2 %v5837_v30 }
 0x436   : > { %3857 = vmatmul.f32.gmra.mxu3 %v5837_v30 }
 0x437   : > { %v3182_v35 = vpop.f32.mrf.mxu0 }
 0x438   : > { %v3183_v55 = vadd.f32 %v3182_v35, %v6690_v39  ;;  %v3261_v22 = vpop.f32.mrf.mxu1  ;;  %v3376_v13 = vpop.f32.mrf.mxu2 }
 0x439   : > { %v3487_v48 = vpop.f32.mrf.mxu3 }
 0x43a   : > { %v3262_v51 = vadd.f32 %v3261_v22, %v3183_v55  ;;  %3581 = vmatmul.f32.gmra.mxu0 %v5846_v34  ;;  %v6813_v0 = vadd.f32 %v3487_v48, %v3376_v13 }
 0x43b   : > { %3685 = vmatmul.f32.gmra.mxu1 %v5855_v41 }
 0x43c   : > { %5304 = vst [vmem:[%s6077_s18 + $0x260] sm:$0xff] %v3262_v51 }
 0x43d   : > { %3782 = vmatmul.f32.gmra.mxu2 %v5857_v43 }
 0x43e   : > { %3861 = vmatmul.f32.gmra.mxu3 %v5857_v43 }
 0x43f   : > { %v3186_v8 = vpop.f32.mrf.mxu0 }
 0x440   : > { %v3187_v39 = vadd.f32 %v3186_v8, %v6696_v18  ;;  %v3265_v54 = vpop.f32.mrf.mxu1  ;;  %v3384_v27 = vpop.f32.mrf.mxu2  ;;  %v5321_v18 = vld [vmem:[%s5638_s20 + $0x78] sm:$0xff] }
 0x441   : > { %v3491_v60 = vpop.f32.mrf.mxu3  ;;  %v6829_v13 = vand.u32 4294901760, %v5321_v18 }
 0x442   : > { %v3266_v42 = vadd.f32 %v3265_v54, %v3187_v39  ;;  %3586 = vmatmul.f32.gmra.mxu0 %v5866_v50  ;;  %v6821_v2 = vadd.f32 %v3491_v60, %v3384_v27 }
 0x443   : > { %3691 = vmatmul.f32.gmra.mxu1 %v5875_v57  ;;  %4525 = vmatpush.msra.mxu2 %v6829_v13  ;;  %v6836_v39 = vsub.f32 %v5321_v18, %v6829_v13 }
 0x444   : > { %5306 = vst [vmem:[%s6077_s18 + $0x270] sm:$0xff] %v3266_v42 }
 0x445   : > { %3786 = vmatmul.f32.gmra.mxu2 %v7463_v21 }
 0x446   : > { %3865 = vmatmul.f32.gmra.mxu3 %v7463_v21 }
 0x447   : > { %v3190_v17 = vpop.f32.mrf.mxu0 }
 0x448   : > { %v3191_v35 = vadd.f32 %v3190_v17, %v6711_v25  ;;  %v3269_v55 = vpop.f32.mrf.mxu1  ;;  %v3392_v22 = vpop.f32.mrf.mxu2  ;;  %v7384_v25 = vand.u32 4294901760, %v6836_v39 }
 0x449   : > { %v3495_v48 = vpop.f32.mrf.mxu3 }
 0x44a   : > { %v3270_v51 = vadd.f32 %v3269_v55, %v3191_v35  ;;  %3591 = vmatmul.f32.gmra.mxu0 %v7440_v63  ;;  %v6832_v8 = vadd.f32 %v3495_v48, %v3392_v22  ;;  %v4666_v27 = vsub.f32 %v6836_v39, %v7384_v25 }
 0x44b   : > { %3697 = vmatmul.f32.gmra.mxu1 %v7441_v6 }
 0x44c   : > { %5308 = vst [vmem:[%s6077_s18 + $0x280] sm:$0xff] %v3270_v51  ;;  %v4667_v35 = vand.u32 4294901760, %v4666_v27 }
 0x44d   : > { %3790 = vmatmul.f32.gmra.mxu2 %v7466_v46 }
 0x44e   : > { %3869 = vmatmul.f32.gmra.mxu3 %v7466_v46 }
 0x44f   : > { %v3194_v54 = vpop.f32.mrf.mxu0  ;;  %4668 = vmatpush.msra.mxu3 %v4667_v35 }
 0x450   : > { %v3195_v42 = vadd.f32 %v3194_v54, %v6721_v49  ;;  %v3273_v60 = vpop.f32.mrf.mxu1  ;;  %v3400_v17 = vpop.f32.mrf.mxu2 }
 0x451   : > { %v3499_v55 = vpop.f32.mrf.mxu3 }
 0x452   : > { %v3274_v18 = vadd.f32 %v3273_v60, %v3195_v42  ;;  %3596 = vmatmul.f32.gmra.mxu0 %v7464_v1  ;;  %v6848_v22 = vadd.f32 %v3499_v55, %v3400_v17 }
 0x453   : > { %3703 = vmatmul.f32.gmra.mxu1 %v7481_v44 }
 0x454   : > { %5310 = vst [vmem:[%s6077_s18 + $0x290] sm:$0xff] %v3274_v18 }
 0x455   : > { %3794 = vmatmul.f32.gmra.mxu2 %v7506_v4 }
 0x456   : > { %3873 = vmatmul.f32.gmra.mxu3 %v7506_v4 }
 0x457   : > { %v3198_v51 = vpop.f32.mrf.mxu0 }
 0x458   : > { %v3199_v49 = vadd.f32 %v3198_v51, %v6727_v32  ;;  %v3277_v48 = vpop.f32.mrf.mxu1  ;;  %v3408_v54 = vpop.f32.mrf.mxu2 }
 0x459   : > { %v3503_v42 = vpop.f32.mrf.mxu3 }
 0x45a   : > { %v3278_v27 = vadd.f32 %v3277_v48, %v3199_v49  ;;  %3601 = vmatmul.f32.gmra.mxu0 %v7482_v23  ;;  %v6856_v60 = vadd.f32 %v3503_v42, %v3408_v54  ;;  %v7522_v48 = vld [vmem:[#allocation10_spill] sm:$0xff] }
 0x45b   : > { %3709 = vmatmul.f32.gmra.mxu1 %v7483_v37 }
 0x45c   : > { %5312 = vst [vmem:[%s6077_s18 + $0x2a0] sm:$0xff] %v3278_v27 }
 0x45d   : > { %3798 = vmatmul.f32.gmra.mxu2 %v7509_v5 }
 0x45e   : > { %3877 = vmatmul.f32.gmra.mxu3 %v7509_v5 }
 0x45f   : > { %v3202_v17 = vpop.f32.mrf.mxu0 }
 0x460   : > { %v3203_v35 = vadd.f32 %v3202_v17, %v6733_v58  ;;  %v3281_v32 = vpop.f32.mrf.mxu1  ;;  %v3416_v18 = vpop.f32.mrf.mxu2 }
 0x461   : > { %v3507_v51 = vpop.f32.mrf.mxu3 }
 0x462   : > { %v3282_v55 = vadd.f32 %v3281_v32, %v3203_v35  ;;  %3606 = vmatmul.f32.gmra.mxu0 %v7507_v59  ;;  %v6864_v49 = vadd.f32 %v3507_v51, %v3416_v18  ;;  %v7523_v35 = vld [vmem:[#allocation15_spill] sm:$0xff]  ;;  %v7525_v18 = vld [vmem:[#allocation8_spill] sm:$0xff] }
 0x463   : > { %3715 = vmatmul.f32.gmra.mxu1 %v7447_v12 }
 0x464   : > { %5314 = vst [vmem:[%s6077_s18 + $0x2b0] sm:$0xff] %v3282_v55 }
 0x465   : > { %4165 = vmatmul.f32.vlgmr.msrb.gmra.mxu2 %v7522_v48  ;;  %v7528_v48 = vld [vmem:[#allocation16_spill] sm:$0xff] }
 0x466   : > { %4260 = vmatmul.f32.vlgmr.msrb.gmra.mxu3 %v7511_v7 }
 0x467   : > { %v3206_v54 = vpop.f32.mrf.mxu0 }
 0x468   : > { %v3207_v27 = vadd.f32 %v3206_v54, %v6739_v15  ;;  %v3285_v58 = vpop.f32.mrf.mxu1  ;;  %v3424_v42 = vpop.f32.mrf.mxu2 }
 0x469   : > { %v3511_v32 = vpop.f32.mrf.mxu3 }
 0x46a   : > { %v3286_v17 = vadd.f32 %v3285_v58, %v3207_v27  ;;  %3940 = vmatmul.f32.vlgmr.msrb.gmra.mxu0 %v7523_v35  ;;  %v6872_v25 = vadd.f32 %v3511_v32, %v3424_v42  ;;  %v7526_v58 = vld [vmem:[#allocation17_spill] sm:$0xff] }
 0x46b   : > { %4752 = vmatpush.msrb.mxu0 %v6836_v39  ;;  %4083 = vmatmul.f32.vlgmr.msrb.gmra.mxu1 %v7525_v18 }
 0x46c   : > { %7524 = vst [vmem:[#allocation36_spill] sm:$0xff] %v6872_v25  ;;  %4847 = vmatpush.msrb.mxu1 %v6829_v13 }
 0x46d   : > { %5316 = vst [vmem:[%s6077_s18 + $0x2c0] sm:$0xff] %v3286_v17  ;;  %4170 = vmatmul.f32.gmra.mxu2 %v7512_v45  ;;  %v7527_v17 = vld [vmem:[#allocation9_spill] sm:$0xff] }
 0x46e   : > { %4266 = vmatmul.f32.gmra.mxu3 %v7513_v19 }
 0x46f   : > { %v3537_v15 = vpop.f32.mrf.mxu0 }
 0x470   : > { %v3538_v55 = vadd.f32 %v3537_v15, %v6745_v52  ;;  %v3632_v51 = vpop.f32.mrf.mxu1  ;;  %v3743_v54 = vpop.f32.mrf.mxu2 }
 0x471   : > { %v3822_v42 = vpop.f32.mrf.mxu3 }
 0x472   : > { %v3633_v27 = vadd.f32 %v3632_v51, %v3538_v55  ;;  %3948 = vmatmul.f32.gmra.mxu0 %v7526_v58  ;;  %v7529_v55 = vld [vmem:[#allocation21_spill] sm:$0xff] }
 0x473   : > { %4087 = vmatmul.f32.gmra.mxu1 %v7527_v17 }
 0x474   : > { %v3744_v32 = vadd.f32 %v3743_v54, %v3633_v27  ;;  %v7530_v54 = vld [vmem:[#allocation14_spill] sm:$0xff] }
 0x475   : > { %4175 = vmatmul.f32.gmra.mxu2 %v7528_v48 }
 0x476   : > { %v3823_v7 = vadd.f32 %v3822_v42, %v3744_v32  ;;  %4272 = vmatmul.f32.gmra.mxu3 %v7515_v26  ;;  %v7531_v42 = vld [vmem:[#allocation20_spill] sm:$0xff]  ;;  %v7532_v32 = vld [vmem:[#allocation22_spill] sm:$0xff] }
 0x477   : > { %v3542_v45 = vpop.f32.mrf.mxu0 }
 0x478   : > { %5289 = vst [vmem:[%s6077_s18 + $0x1e8] sm:$0xff] %v3823_v7  ;;  %v3543_v19 = vadd.f32 %v3542_v45, %v6753_v31  ;;  %v3638_v52 = vpop.f32.mrf.mxu1  ;;  %v3747_v15 = vpop.f32.mrf.mxu2  ;;  %v7533_v7 = vld [vmem:[#allocation34_spill] sm:$0xff] }
 0x479   : > { %v3826_v51 = vpop.f32.mrf.mxu3 }
 0x47a   : > { %v3639_v25 = vadd.f32 %v3638_v52, %v3543_v19  ;;  %3956 = vmatmul.f32.gmra.mxu0 %v7529_v55  ;;  %v7534_v52 = vld [vmem:[#allocation25_spill] sm:$0xff] }
 0x47b   : > { %4091 = vmatmul.f32.gmra.mxu1 %v7530_v54 }
 0x47c   : > { %v3748_v58 = vadd.f32 %v3747_v15, %v3639_v25  ;;  %v7535_v15 = vld [vmem:[#allocation19_spill] sm:$0xff] }
 0x47d   : > { %4180 = vmatmul.f32.gmra.mxu2 %v7531_v42 }
 0x47e   : > { %v3827_v27 = vadd.f32 %v3826_v51, %v3748_v58  ;;  %4278 = vmatmul.f32.gmra.mxu3 %v7532_v32  ;;  %v5319_v32 = vld [vmem:[%s5638_s20 + $0x68] sm:$0xff]  ;;  %s5360_s20 = smul.u32 960, %s5531_s12  ;;  %s5135_s12 = scalar_lea.sflag [#allocation4], %s5634_s15 }
 0x47f   : > { %v3547_v26 = vpop.f32.mrf.mxu0  ;;  %v4526_v42 = vand.u32 4294901760, %v5319_v32 }
 0x480   : > { %5291 = vst [vmem:[%s6077_s18 + $0x1f8] sm:$0xff] %v3827_v27  ;;  %v3548_v45 = vadd.f32 %v3547_v26, %v7533_v7  ;;  %v3644_v31 = vpop.f32.mrf.mxu1  ;;  %v3751_v48 = vpop.f32.mrf.mxu2  ;;  %s5149_s26 = scalar_lea.hbm %s7249_s2, %s5360_s20 }
 0x481   : > { %v3830_v55 = vpop.f32.mrf.mxu3  ;;  %4527 = vmatpush.msra.mxu2 %v4526_v42  ;;  %4849 = vmatpush.msrb.mxu1 %v4526_v42  ;;  %s5152_s21 = sshll.u32 %s5149_s26, 4  ;;  %s5153_s21 = int_to_ptr.hbm [resolvable:$true] %s5152_s21 }
 0x482   : > { %v3645_v19 = vadd.f32 %v3644_v31, %v3548_v45  ;;  %3964 = vmatmul.f32.gmra.mxu0 %v7534_v52  ;;  %v7536_v31 = vld [vmem:[#allocation27_spill] sm:$0xff]  ;;  %s5471_s28 = sshra.s32 %s5153_s21, 4  ;;  %s5472_s28 = int_to_ptr.hbm [resolvable:$true] %s5471_s28 }
 0x483   : > { %4095 = vmatmul.f32.gmra.mxu1 %v7535_v15  ;;  %s5473_s29 = scalar_lea.hbm %s5472_s28, 960  ;;  %p5478_p7 = scmp.lt.s32.totalorder %s5472_s28, %s7249_s2 }
 0x484   : > { %v3752_v25 = vadd.f32 %v3751_v48, %v3645_v19  ;;  %v4670_v19 = vsub.f32 %v5319_v32, %v4526_v42  ;;  %p5474_p4 = scmp.ne.s32.totalorder %s5472_s28, %s5473_s29  ;;  %p5479_p8 = scmp.lt.s32.totalorder %s5477_s4, %s5473_s29 }
 0x485   : > { %4185 = vmatmul.f32.gmra.mxu2 %v7520_v14 }
 0x486   : > { %v3831_v58 = vadd.f32 %v3830_v55, %v3752_v25  ;;  %4284 = vmatmul.f32.gmra.mxu3 %v7521_v38  ;;  %v7537_v25 = vld [vmem:[#allocation23_spill] sm:$0xff]  ;;  %v7538_v38 = vand.u32 4294901760, %v6836_v39  ;;  %4755 = vmatpush.msrb.mxu0 %v4670_v19  ;;  %v7539_v39 = vld [vmem:[#allocation28_spill] sm:$0xff]  ;;  %p5475_p5 = pnand %p5474_p4, %p5611_p9  ;;  %p5480_p10 = por %p5479_p8, %p5478_p7 }
 0x487   : > { %v3552_v51 = vpop.f32.mrf.mxu0 }
 0x488   : > { %5293 = vst [vmem:[%s6077_s18 + $0x208] sm:$0xff] %v3831_v58  ;;  %v3553_v27 = vadd.f32 %v3552_v51, %v6772_v40  ;;  %v3650_v26 = vpop.f32.mrf.mxu1  ;;  %v3755_v7 = vpop.f32.mrf.mxu2  ;;  %4958 = vmatpush.msrb.mxu2 %v7538_v38  ;;  %v4671_v58 = vand.u32 4294901760, %v4670_v19  ;;  %p5476_p6 = pneg %p5475_p5 }
 0x489   : > { %v3834_v48 = vpop.f32.mrf.mxu3 }
 0x48a   : > { %v3651_v45 = vadd.f32 %v3650_v26, %v3553_v27  ;;  %3972 = vmatmul.f32.gmra.mxu0 %v7536_v31  ;;  %v4672_v27 = vsub.f32 %v4670_v19, %v4671_v58  ;;  %4962 = vmatpush.msrb.mxu2 %v4671_v58  ;;  %p5481_p13 = pnand %p5480_p10, %p5476_p6 }
 0x48b   : > { %4099 = vmatmul.f32.gmra.mxu1 %v7537_v25 }
 0x48c   : > { %v3756_v55 = vadd.f32 %v3755_v7, %v3651_v45  ;;  %v4673_v45 = vand.u32 4294901760, %v4672_v27  ;;  %v7540_v27 = vld [vmem:[#allocation29_spill] sm:$0xff] }
 0x48d   : > { %4190 = vmatmul.f32.gmra.mxu2 %v5762_v56 }
 0x48e   : > { %v3835_v40 = vadd.f32 %v3834_v48, %v3756_v55  ;;  %4290 = vmatmul.f32.gmra.mxu3 %v5772_v61 }
 0x48f   : > { %v3557_v51 = vpop.f32.mrf.mxu0  ;;  %4674 = vmatpush.msra.mxu3 %v4673_v45 }
 0x490   : > { %5295 = vst [vmem:[%s6077_s18 + $0x218] sm:$0xff] %v3835_v40  ;;  %v3558_v32 = vadd.f32 %v3557_v51, %v6781_v28  ;;  %v3656_v26 = vpop.f32.mrf.mxu1  ;;  %v3759_v7 = vpop.f32.mrf.mxu2 }
 0x491   : > { %v3838_v38 = vpop.f32.mrf.mxu3  ;;  %5039 = vmatpush.msrb.mxu3 %v6829_v13 }
 0x492   : > { %v3657_v14 = vadd.f32 %v3656_v26, %v3558_v32  ;;  %3980 = vmatmul.f32.gmra.mxu0 %v7539_v39 }
 0x493   : > { %4103 = vmatmul.f32.gmra.mxu1 %v5753_v53  ;;  %5041 = vmatpush.msrb.mxu3 %v4526_v42 }
 0x494   : > { %v3760_v48 = vadd.f32 %v3759_v7, %v3657_v14 }
 0x495   : > { %4195 = vmatmul.f32.gmra.mxu2 %v5785_v3 }
 0x496   : > { %v3839_v55 = vadd.f32 %v3838_v38, %v3760_v48  ;;  %4296 = vmatmul.f32.gmra.mxu3 %v5794_v10  ;;  %v7541_v38 = vld [vmem:[#allocation30_spill] sm:$0xff] }
 0x497   : > { %v3562_v28 = vpop.f32.mrf.mxu0 }
 0x498   : > { %5297 = vst [vmem:[%s6077_s18 + $0x228] sm:$0xff] %v3839_v55  ;;  %v3563_v19 = vadd.f32 %v3562_v28, %v6789_v47  ;;  %v3662_v58 = vpop.f32.mrf.mxu1  ;;  %v3763_v40 = vpop.f32.mrf.mxu2 }
 0x499   : > { %v3842_v14 = vpop.f32.mrf.mxu3 }
 0x49a   : > { %v3663_v51 = vadd.f32 %v3662_v58, %v3563_v19  ;;  %3988 = vmatmul.f32.gmra.mxu0 %v7540_v27 }
 0x49b   : > { %4107 = vmatmul.f32.gmra.mxu1 %v5774_v62 }
 0x49c   : > { %v3764_v32 = vadd.f32 %v3763_v40, %v3663_v51 }
 0x49d   : > { %4200 = vmatmul.f32.gmra.mxu2 %v5806_v16 }
 0x49e   : > { %v3843_v13 = vadd.f32 %v3842_v14, %v3764_v32  ;;  %4302 = vmatmul.f32.gmra.mxu3 %v5815_v9  ;;  %v7542_v14 = vld [vmem:[#allocation31_spill] sm:$0xff] }
 0x49f   : > { %v3567_v26 = vpop.f32.mrf.mxu0 }
 0x4a0   : > { %5299 = vst [vmem:[%s6077_s18 + $0x238] sm:$0xff] %v3843_v13  ;;  %v3568_v42 = vadd.f32 %v3567_v26, %v6797_v36  ;;  %v3668_v47 = vpop.f32.mrf.mxu1  ;;  %v3767_v7 = vpop.f32.mrf.mxu2 }
 0x4a1   : > { %v3846_v48 = vpop.f32.mrf.mxu3 }
 0x4a2   : > { %v3669_v45 = vadd.f32 %v3668_v47, %v3568_v42  ;;  %3996 = vmatmul.f32.gmra.mxu0 %v7541_v38 }
 0x4a3   : > { %4111 = vmatmul.f32.gmra.mxu1 %v5796_v11 }
 0x4a4   : > { %v3768_v55 = vadd.f32 %v3767_v7, %v3669_v45 }
 0x4a5   : > { %4205 = vmatmul.f32.gmra.mxu2 %v5826_v24 }
 0x4a6   : > { %v3847_v28 = vadd.f32 %v3846_v48, %v3768_v55  ;;  %4308 = vmatmul.f32.gmra.mxu3 %v5835_v29  ;;  %v7543_v48 = vld [vmem:[#allocation32_spill] sm:$0xff] }
 0x4a7   : > { %v3572_v19 = vpop.f32.mrf.mxu0 }
 0x4a8   : > { %5301 = vst [vmem:[%s6077_s18 + $0x248] sm:$0xff] %v3847_v28  ;;  %v3573_v58 = vadd.f32 %v3572_v19, %v6805_v33  ;;  %v3674_v36 = vpop.f32.mrf.mxu1  ;;  %v3771_v40 = vpop.f32.mrf.mxu2 }
 0x4a9   : > { %v3850_v32 = vpop.f32.mrf.mxu3 }
 0x4aa   : > { %v3675_v51 = vadd.f32 %v3674_v36, %v3573_v58  ;;  %4004 = vmatmul.f32.gmra.mxu0 %v7542_v14 }
 0x4ab   : > { %4115 = vmatmul.f32.gmra.mxu1 %v5817_v20 }
 0x4ac   : > { %v3772_v13 = vadd.f32 %v3771_v40, %v3675_v51 }
 0x4ad   : > { %4210 = vmatmul.f32.gmra.mxu2 %v5846_v34 }
 0x4ae   : > { %v3851_v26 = vadd.f32 %v3850_v32, %v3772_v13  ;;  %4314 = vmatmul.f32.gmra.mxu3 %v5855_v41  ;;  %v7544_v32 = vld [vmem:[#allocation35_spill] sm:$0xff] }
 0x4af   : > { %v3577_v42 = vpop.f32.mrf.mxu0 }
 0x4b0   : > { %5303 = vst [vmem:[%s6077_s18 + $0x258] sm:$0xff] %v3851_v26  ;;  %v3578_v47 = vadd.f32 %v3577_v42, %v6813_v0  ;;  %v3680_v33 = vpop.f32.mrf.mxu1  ;;  %v3775_v7 = vpop.f32.mrf.mxu2 }
 0x4b1   : > { %v3854_v55 = vpop.f32.mrf.mxu3 }
 0x4b2   : > { %v3681_v45 = vadd.f32 %v3680_v33, %v3578_v47  ;;  %4012 = vmatmul.f32.gmra.mxu0 %v7543_v48 }
 0x4b3   : > { %4119 = vmatmul.f32.gmra.mxu1 %v5837_v30 }
 0x4b4   : > { %v3776_v28 = vadd.f32 %v3775_v7, %v3681_v45 }
 0x4b5   : > { %4215 = vmatmul.f32.gmra.mxu2 %v5866_v50 }
 0x4b6   : > { %v3855_v19 = vadd.f32 %v3854_v55, %v3776_v28  ;;  %4320 = vmatmul.f32.gmra.mxu3 %v5875_v57  ;;  %v7545_v55 = vld [vmem:[#allocation39_spill] sm:$0xff] }
 0x4b7   : > { %v3582_v58 = vpop.f32.mrf.mxu0 }
 0x4b8   : > { %5305 = vst [vmem:[%s6077_s18 + $0x268] sm:$0xff] %v3855_v19  ;;  %v3583_v36 = vadd.f32 %v3582_v58, %v6821_v2  ;;  %v3686_v0 = vpop.f32.mrf.mxu1  ;;  %v3779_v40 = vpop.f32.mrf.mxu2 }
 0x4b9   : > { %v3858_v13 = vpop.f32.mrf.mxu3 }
 0x4ba   : > { %v3687_v51 = vadd.f32 %v3686_v0, %v3583_v36  ;;  %4020 = vmatmul.f32.gmra.mxu0 %v7544_v32 }
 0x4bb   : > { %4123 = vmatmul.f32.gmra.mxu1 %v5857_v43 }
 0x4bc   : > { %v3780_v26 = vadd.f32 %v3779_v40, %v3687_v51 }
 0x4bd   : > { %4220 = vmatmul.f32.gmra.mxu2 %v7440_v63 }
 0x4be   : > { %v3859_v42 = vadd.f32 %v3858_v13, %v3780_v26  ;;  %4326 = vmatmul.f32.gmra.mxu3 %v7441_v6  ;;  %v7546_v13 = vld [vmem:[#allocation43_spill] sm:$0xff] }
 0x4bf   : > { %v3587_v47 = vpop.f32.mrf.mxu0 }
 0x4c0   : > { %5307 = vst [vmem:[%s6077_s18 + $0x278] sm:$0xff] %v3859_v42  ;;  %v3588_v33 = vadd.f32 %v3587_v47, %v6832_v8  ;;  %v3692_v2 = vpop.f32.mrf.mxu1  ;;  %v3783_v7 = vpop.f32.mrf.mxu2 }
 0x4c1   : > { %v3862_v28 = vpop.f32.mrf.mxu3 }
 0x4c2   : > { %v3693_v45 = vadd.f32 %v3692_v2, %v3588_v33  ;;  %4028 = vmatmul.f32.gmra.mxu0 %v7545_v55 }
 0x4c3   : > { %4127 = vmatmul.f32.gmra.mxu1 %v7463_v21 }
 0x4c4   : > { %v3784_v19 = vadd.f32 %v3783_v7, %v3693_v45 }
 0x4c5   : > { %4225 = vmatmul.f32.gmra.mxu2 %v7464_v1 }
 0x4c6   : > { %v3863_v58 = vadd.f32 %v3862_v28, %v3784_v19  ;;  %4332 = vmatmul.f32.gmra.mxu3 %v7481_v44  ;;  %v7547_v28 = vld [vmem:[#allocation47_spill] sm:$0xff] }
 0x4c7   : > { %v3592_v36 = vpop.f32.mrf.mxu0 }
 0x4c8   : > { %5309 = vst [vmem:[%s6077_s18 + $0x288] sm:$0xff] %v3863_v58  ;;  %v3593_v0 = vadd.f32 %v3592_v36, %v6848_v22  ;;  %v3698_v8 = vpop.f32.mrf.mxu1  ;;  %v3787_v40 = vpop.f32.mrf.mxu2 }
 0x4c9   : > { %v3866_v26 = vpop.f32.mrf.mxu3 }
 0x4ca   : > { %v3699_v51 = vadd.f32 %v3698_v8, %v3593_v0  ;;  %4036 = vmatmul.f32.gmra.mxu0 %v7546_v13 }
 0x4cb   : > { %4131 = vmatmul.f32.gmra.mxu1 %v7466_v46 }
 0x4cc   : > { %v3788_v42 = vadd.f32 %v3787_v40, %v3699_v51 }
 0x4cd   : > { %4230 = vmatmul.f32.gmra.mxu2 %v7482_v23 }
 0x4ce   : > { %v3867_v47 = vadd.f32 %v3866_v26, %v3788_v42  ;;  %4338 = vmatmul.f32.gmra.mxu3 %v7483_v37  ;;  %v7548_v26 = vld [vmem:[#allocation49_spill] sm:$0xff] }
 0x4cf   : > { %v3597_v33 = vpop.f32.mrf.mxu0 }
 0x4d0   : > { %5311 = vst [vmem:[%s6077_s18 + $0x298] sm:$0xff] %v3867_v47  ;;  %v3598_v2 = vadd.f32 %v3597_v33, %v6856_v60  ;;  %v3704_v22 = vpop.f32.mrf.mxu1  ;;  %v3791_v7 = vpop.f32.mrf.mxu2 }
 0x4d1   : > { %v3870_v19 = vpop.f32.mrf.mxu3 }
 0x4d2   : > { %v3705_v45 = vadd.f32 %v3704_v22, %v3598_v2  ;;  %4044 = vmatmul.f32.gmra.mxu0 %v7547_v28  ;;  %v7549_v22 = vld [vmem:[#allocation36_spill] sm:$0xff] }
 0x4d3   : > { %4135 = vmatmul.f32.gmra.mxu1 %v7506_v4 }
 0x4d4   : > { %v3792_v58 = vadd.f32 %v3791_v7, %v3705_v45 }
 0x4d5   : > { %4235 = vmatmul.f32.gmra.mxu2 %v7507_v59 }
 0x4d6   : > { %v3871_v36 = vadd.f32 %v3870_v19, %v3792_v58  ;;  %4344 = vmatmul.f32.gmra.mxu3 %v7447_v12 }
 0x4d7   : > { %v3602_v0 = vpop.f32.mrf.mxu0 }
 0x4d8   : > { %5313 = vst [vmem:[%s6077_s18 + $0x2a8] sm:$0xff] %v3871_v36  ;;  %v3603_v8 = vadd.f32 %v3602_v0, %v6864_v49  ;;  %v3710_v60 = vpop.f32.mrf.mxu1  ;;  %v3795_v40 = vpop.f32.mrf.mxu2 }
 0x4d9   : > { %v3874_v42 = vpop.f32.mrf.mxu3 }
 0x4da   : > { %v3711_v51 = vadd.f32 %v3710_v60, %v3603_v8  ;;  %4052 = vmatmul.f32.gmra.mxu0 %v7548_v26  ;;  %v7550_v8 = vld [vmem:[#allocation17_spill] sm:$0xff] }
 0x4db   : > { %4139 = vmatmul.f32.gmra.mxu1 %v7509_v5 }
 0x4dc   : > { %v3796_v47 = vadd.f32 %v3795_v40, %v3711_v51 }
 0x4dd   : > { %4533 = vmatmul.f32.vlgmr.msra.gmra.mxu2 %v7523_v35 }
 0x4de   : > { %v3875_v33 = vadd.f32 %v3874_v42, %v3796_v47  ;;  %4676 = vmatmul.f32.vlgmr.msra.gmra.mxu3 %v7525_v18 }
 0x4df   : > { %v3607_v2 = vpop.f32.mrf.mxu0 }
 0x4e0   : > { %5315 = vst [vmem:[%s6077_s18 + $0x2b8] sm:$0xff] %v3875_v33  ;;  %v3608_v7 = vadd.f32 %v3607_v2, %v7549_v22  ;;  %v3716_v49 = vpop.f32.mrf.mxu1  ;;  %v3799_v45 = vpop.f32.mrf.mxu2  ;;  %v7551_v2 = vld [vmem:[#allocation21_spill] sm:$0xff] }
 0x4e1   : > { %v3878_v58 = vpop.f32.mrf.mxu3 }
 0x4e2   : > { %v3717_v19 = vadd.f32 %v3716_v49, %v3608_v7  ;;  %4371 = vmatmul.f32.vlgmr.msra.gmra.mxu0 %v7525_v18 }
 0x4e3   : > { %4450 = vmatmul.f32.vlgmr.msra.gmra.mxu1 %v7525_v18 }
 0x4e4   : > { %v3800_v36 = vadd.f32 %v3799_v45, %v3717_v19 }
 0x4e5   : > { %4541 = vmatmul.f32.gmra.mxu2 %v7550_v8 }
 0x4e6   : > { %v3879_v0 = vadd.f32 %v3878_v58, %v3800_v36  ;;  %4680 = vmatmul.f32.gmra.mxu3 %v7527_v17 }
 0x4e7   : > { %v3941_v35 = vpop.f32.mrf.mxu0 }
 0x4e8   : > { %5317 = vst [vmem:[%s6077_s18 + $0x2c8] sm:$0xff] %v3879_v0  ;;  %v4084_v60 = vpop.f32.mrf.mxu1  ;;  %v4166_v40 = vpop.f32.mrf.mxu2 }
 0x4e9   : > { %v4085_v51 = vadd.f32 %v4084_v60, %v3941_v35  ;;  %v4261_v42 = vpop.f32.mrf.mxu3 }
 0x4ea   : > { %4375 = vmatmul.f32.gmra.mxu0 %v7527_v17 }
 0x4eb   : > { %v4167_v47 = vadd.f32 %v4166_v40, %v4085_v51  ;;  %4454 = vmatmul.f32.gmra.mxu1 %v7527_v17 }
 0x4ed   : > { %v6976_v33 = vadd.f32 %v4261_v42, %v4167_v47  ;;  %4549 = vmatmul.f32.gmra.mxu2 %v7551_v2 }
 0x4ee   : > { %4684 = vmatmul.f32.gmra.mxu3 %v7530_v54 }
 0x4ef   : > { %v3949_v22 = vpop.f32.mrf.mxu0 }
 0x4f0   : > { %v4088_v7 = vpop.f32.mrf.mxu1  ;;  %v4171_v49 = vpop.f32.mrf.mxu2 }
 0x4f1   : > { %v4089_v45 = vadd.f32 %v4088_v7, %v3949_v22  ;;  %v4267_v19 = vpop.f32.mrf.mxu3 }
 0x4f2   : > { %4379 = vmatmul.f32.gmra.mxu0 %v7530_v54 }
 0x4f3   : > { %v4172_v58 = vadd.f32 %v4171_v49, %v4089_v45  ;;  %4458 = vmatmul.f32.gmra.mxu1 %v7530_v54 }
 0x4f5   : > { %v6982_v36 = vadd.f32 %v4267_v19, %v4172_v58  ;;  %4557 = vmatmul.f32.gmra.mxu2 %v7534_v52 }
 0x4f6   : > { %4688 = vmatmul.f32.gmra.mxu3 %v7535_v15 }
 0x4f7   : > { %v3957_v0 = vpop.f32.mrf.mxu0 }
 0x4f8   : > { %v4092_v8 = vpop.f32.mrf.mxu1  ;;  %v4176_v35 = vpop.f32.mrf.mxu2 }
 0x4f9   : > { %v4093_v60 = vadd.f32 %v4092_v8, %v3957_v0  ;;  %v4273_v40 = vpop.f32.mrf.mxu3 }
 0x4fa   : > { %4383 = vmatmul.f32.gmra.mxu0 %v7535_v15 }
 0x4fb   : > { %v4177_v51 = vadd.f32 %v4176_v35, %v4093_v60  ;;  %4462 = vmatmul.f32.gmra.mxu1 %v7535_v15 }
 0x4fd   : > { %v6988_v42 = vadd.f32 %v4273_v40, %v4177_v51  ;;  %4565 = vmatmul.f32.gmra.mxu2 %v7536_v31 }
 0x4fe   : > { %4692 = vmatmul.f32.gmra.mxu3 %v7537_v25 }
 0x4ff   : > { %v3965_v47 = vpop.f32.mrf.mxu0 }
 0x500   : > { %v4096_v52 = vpop.f32.mrf.mxu1  ;;  %v4181_v2 = vpop.f32.mrf.mxu2 }
 0x501   : > { %v4097_v22 = vadd.f32 %v4096_v52, %v3965_v47  ;;  %v4279_v7 = vpop.f32.mrf.mxu3 }
 0x502   : > { %4387 = vmatmul.f32.gmra.mxu0 %v7537_v25 }
 0x503   : > { %v4182_v49 = vadd.f32 %v4181_v2, %v4097_v22  ;;  %4466 = vmatmul.f32.gmra.mxu1 %v7537_v25 }
 0x505   : > { %v6994_v45 = vadd.f32 %v4279_v7, %v4182_v49  ;;  %4573 = vmatmul.f32.gmra.mxu2 %v7539_v39 }
 0x506   : > { %4696 = vmatmul.f32.gmra.mxu3 %v5753_v53 }
 0x507   : > { %v3973_v19 = vpop.f32.mrf.mxu0 }
 0x508   : > { %v4100_v31 = vpop.f32.mrf.mxu1  ;;  %v4186_v58 = vpop.f32.mrf.mxu2 }
 0x509   : > { %v4101_v0 = vadd.f32 %v4100_v31, %v3973_v19  ;;  %v4285_v8 = vpop.f32.mrf.mxu3 }
 0x50a   : > { %4391 = vmatmul.f32.gmra.mxu0 %v5753_v53 }
 0x50b   : > { %v4187_v35 = vadd.f32 %v4186_v58, %v4101_v0  ;;  %4470 = vmatmul.f32.gmra.mxu1 %v5753_v53 }
 0x50d   : > { %v7000_v60 = vadd.f32 %v4285_v8, %v4187_v35  ;;  %4581 = vmatmul.f32.gmra.mxu2 %v7540_v27 }
 0x50e   : > { %4700 = vmatmul.f32.gmra.mxu3 %v5774_v62 }
 0x50f   : > { %v3981_v40 = vpop.f32.mrf.mxu0 }
 0x510   : > { %v4104_v39 = vpop.f32.mrf.mxu1  ;;  %v4191_v51 = vpop.f32.mrf.mxu2 }
 0x511   : > { %v4105_v47 = vadd.f32 %v4104_v39, %v3981_v40  ;;  %v4291_v52 = vpop.f32.mrf.mxu3 }
 0x512   : > { %4395 = vmatmul.f32.gmra.mxu0 %v5774_v62 }
 0x513   : > { %v4192_v2 = vadd.f32 %v4191_v51, %v4105_v47  ;;  %4474 = vmatmul.f32.gmra.mxu1 %v5774_v62 }
 0x515   : > { %v7006_v22 = vadd.f32 %v4291_v52, %v4192_v2  ;;  %4589 = vmatmul.f32.gmra.mxu2 %v7541_v38 }
 0x516   : > { %4704 = vmatmul.f32.gmra.mxu3 %v5796_v11 }
 0x517   : > { %v3989_v7 = vpop.f32.mrf.mxu0 }
 0x518   : > { %v4108_v27 = vpop.f32.mrf.mxu1  ;;  %v4196_v49 = vpop.f32.mrf.mxu2 }
 0x519   : > { %v4109_v19 = vadd.f32 %v4108_v27, %v3989_v7  ;;  %v4297_v31 = vpop.f32.mrf.mxu3 }
 0x51a   : > { %4399 = vmatmul.f32.gmra.mxu0 %v5796_v11 }
 0x51b   : > { %v4197_v58 = vadd.f32 %v4196_v49, %v4109_v19  ;;  %4478 = vmatmul.f32.gmra.mxu1 %v5796_v11 }
 0x51d   : > { %v7012_v0 = vadd.f32 %v4297_v31, %v4197_v58  ;;  %4597 = vmatmul.f32.gmra.mxu2 %v7542_v14 }
 0x51e   : > { %4708 = vmatmul.f32.gmra.mxu3 %v5817_v20 }
 0x51f   : > { %v3997_v8 = vpop.f32.mrf.mxu0 }
 0x520   : > { %v4112_v38 = vpop.f32.mrf.mxu1  ;;  %v4201_v35 = vpop.f32.mrf.mxu2 }
 0x521   : > { %v4113_v40 = vadd.f32 %v4112_v38, %v3997_v8  ;;  %v4303_v39 = vpop.f32.mrf.mxu3 }
 0x522   : > { %4403 = vmatmul.f32.gmra.mxu0 %v5817_v20 }
 0x523   : > { %v4202_v51 = vadd.f32 %v4201_v35, %v4113_v40  ;;  %4482 = vmatmul.f32.gmra.mxu1 %v5817_v20 }
 0x525   : > { %v7018_v47 = vadd.f32 %v4303_v39, %v4202_v51  ;;  %4605 = vmatmul.f32.gmra.mxu2 %v7543_v48 }
 0x526   : > { %4712 = vmatmul.f32.gmra.mxu3 %v5837_v30 }
 0x527   : > { %v4005_v52 = vpop.f32.mrf.mxu0 }
 0x528   : > { %v4116_v14 = vpop.f32.mrf.mxu1  ;;  %v4206_v2 = vpop.f32.mrf.mxu2 }
 0x529   : > { %v4117_v7 = vadd.f32 %v4116_v14, %v4005_v52  ;;  %v4309_v27 = vpop.f32.mrf.mxu3 }
 0x52a   : > { %4407 = vmatmul.f32.gmra.mxu0 %v5837_v30 }
 0x52b   : > { %v4207_v49 = vadd.f32 %v4206_v2, %v4117_v7  ;;  %4486 = vmatmul.f32.gmra.mxu1 %v5837_v30 }
 0x52d   : > { %v7024_v19 = vadd.f32 %v4309_v27, %v4207_v49  ;;  %4613 = vmatmul.f32.gmra.mxu2 %v7544_v32 }
 0x52e   : > { %4716 = vmatmul.f32.gmra.mxu3 %v5857_v43 }
 0x52f   : > { %v4013_v31 = vpop.f32.mrf.mxu0 }
 0x530   : > { %v4120_v48 = vpop.f32.mrf.mxu1  ;;  %v4211_v58 = vpop.f32.mrf.mxu2 }
 0x531   : > { %v4121_v8 = vadd.f32 %v4120_v48, %v4013_v31  ;;  %v4315_v38 = vpop.f32.mrf.mxu3 }
 0x532   : > { %4411 = vmatmul.f32.gmra.mxu0 %v5857_v43 }
 0x533   : > { %v4212_v35 = vadd.f32 %v4211_v58, %v4121_v8  ;;  %4490 = vmatmul.f32.gmra.mxu1 %v5857_v43 }
 0x535   : > { %v7030_v40 = vadd.f32 %v4315_v38, %v4212_v35  ;;  %4621 = vmatmul.f32.gmra.mxu2 %v7545_v55 }
 0x536   : > { %4720 = vmatmul.f32.gmra.mxu3 %v7463_v21 }
 0x537   : > { %v4021_v39 = vpop.f32.mrf.mxu0 }
 0x538   : > { %v4124_v32 = vpop.f32.mrf.mxu1  ;;  %v4216_v51 = vpop.f32.mrf.mxu2 }
 0x539   : > { %v4125_v52 = vadd.f32 %v4124_v32, %v4021_v39  ;;  %v4321_v14 = vpop.f32.mrf.mxu3 }
 0x53a   : > { %4415 = vmatmul.f32.gmra.mxu0 %v7463_v21 }
 0x53b   : > { %v4217_v2 = vadd.f32 %v4216_v51, %v4125_v52  ;;  %4494 = vmatmul.f32.gmra.mxu1 %v7463_v21 }
 0x53d   : > { %v7036_v7 = vadd.f32 %v4321_v14, %v4217_v2  ;;  %4629 = vmatmul.f32.gmra.mxu2 %v7546_v13 }
 0x53e   : > { %4724 = vmatmul.f32.gmra.mxu3 %v7466_v46 }
 0x53f   : > { %v4029_v27 = vpop.f32.mrf.mxu0 }
 0x540   : > { %v4128_v55 = vpop.f32.mrf.mxu1  ;;  %v4221_v49 = vpop.f32.mrf.mxu2 }
 0x541   : > { %v4129_v31 = vadd.f32 %v4128_v55, %v4029_v27  ;;  %v4327_v48 = vpop.f32.mrf.mxu3 }
 0x542   : > { %4419 = vmatmul.f32.gmra.mxu0 %v7466_v46 }
 0x543   : > { %v4222_v58 = vadd.f32 %v4221_v49, %v4129_v31  ;;  %4498 = vmatmul.f32.gmra.mxu1 %v7466_v46 }
 0x545   : > { %v7042_v8 = vadd.f32 %v4327_v48, %v4222_v58  ;;  %4637 = vmatmul.f32.gmra.mxu2 %v7547_v28 }
 0x546   : > { %4728 = vmatmul.f32.gmra.mxu3 %v7506_v4 }
 0x547   : > { %v4037_v38 = vpop.f32.mrf.mxu0 }
 0x548   : > { %v4132_v13 = vpop.f32.mrf.mxu1  ;;  %v4226_v35 = vpop.f32.mrf.mxu2 }
 0x549   : > { %v4133_v39 = vadd.f32 %v4132_v13, %v4037_v38  ;;  %v4333_v32 = vpop.f32.mrf.mxu3  ;;  %v7552_v13 = vld [vmem:[#allocation10_spill] sm:$0xff] }
 0x54a   : > { %4423 = vmatmul.f32.gmra.mxu0 %v7506_v4 }
 0x54b   : > { %v4227_v51 = vadd.f32 %v4226_v35, %v4133_v39  ;;  %4502 = vmatmul.f32.gmra.mxu1 %v7506_v4 }
 0x54d   : > { %v7048_v52 = vadd.f32 %v4333_v32, %v4227_v51  ;;  %4645 = vmatmul.f32.gmra.mxu2 %v7548_v26  ;;  %v7553_v32 = vld [vmem:[#allocation12_spill] sm:$0xff] }
 0x54e   : > { %4732 = vmatmul.f32.gmra.mxu3 %v7509_v5 }
 0x54f   : > { %v4045_v14 = vpop.f32.mrf.mxu0 }
 0x550   : > { %v4136_v28 = vpop.f32.mrf.mxu1  ;;  %v4231_v2 = vpop.f32.mrf.mxu2 }
 0x551   : > { %v4137_v27 = vadd.f32 %v4136_v28, %v4045_v14  ;;  %v4339_v55 = vpop.f32.mrf.mxu3 }
 0x552   : > { %4427 = vmatmul.f32.gmra.mxu0 %v7509_v5 }
 0x553   : > { %v4232_v49 = vadd.f32 %v4231_v2, %v4137_v27  ;;  %4506 = vmatmul.f32.gmra.mxu1 %v7509_v5 }
 0x555   : > { %v7054_v31 = vadd.f32 %v4339_v55, %v4232_v49  ;;  %4964 = vmatmul.f32.vlgmr.msrb.gmra.mxu2 %v7525_v18  ;;  %v7554_v55 = vld [vmem:[#allocation11_spill] sm:$0xff] }
 0x556   : > { %5043 = vmatmul.f32.vlgmr.msrb.gmra.mxu3 %v7525_v18 }
 0x557   : > { %v4053_v48 = vpop.f32.mrf.mxu0 }
 0x558   : > { %v4140_v26 = vpop.f32.mrf.mxu1  ;;  %v4236_v58 = vpop.f32.mrf.mxu2 }
 0x559   : > { %v4141_v38 = vadd.f32 %v4140_v26, %v4053_v48  ;;  %v4345_v35 = vpop.f32.mrf.mxu3  ;;  %v7555_v26 = vld [vmem:[#allocation13_spill] sm:$0xff] }
 0x55a   : > { %4758 = vmatmul.f32.vlgmr.msrb.gmra.mxu0 %v7552_v13 }
 0x55b   : > { %v4237_v39 = vadd.f32 %v4236_v58, %v4141_v38  ;;  %4853 = vmatmul.f32.vlgmr.msrb.gmra.mxu1 %v7553_v32 }
 0x55d   : > { %v7060_v51 = vadd.f32 %v4345_v35, %v4237_v39  ;;  %4968 = vmatmul.f32.gmra.mxu2 %v7527_v17  ;;  %v7556_v35 = vld [vmem:[#allocation16_spill] sm:$0xff] }
 0x55e   : > { %5047 = vmatmul.f32.gmra.mxu3 %v7527_v17 }
 0x55f   : > { %v4372_v14 = vpop.f32.mrf.mxu0 }
 0x560   : > { %v4373_v18 = vadd.f32 %v4372_v14, %v6976_v33  ;;  %v4451_v28 = vpop.f32.mrf.mxu1  ;;  %v4534_v2 = vpop.f32.mrf.mxu2  ;;  %v7557_v14 = vld [vmem:[#allocation18_spill] sm:$0xff] }
 0x561   : > { %v4677_v49 = vpop.f32.mrf.mxu3 }
 0x562   : > { %v4452_v27 = vadd.f32 %v4451_v28, %v4373_v18  ;;  %4763 = vmatmul.f32.gmra.mxu0 %v7554_v55  ;;  %v7066_v48 = vadd.f32 %v4677_v49, %v4534_v2 }
 0x563   : > { %4859 = vmatmul.f32.gmra.mxu1 %v7555_v26  ;;  %v7559_v26 = vld [vmem:[#allocation22_spill] sm:$0xff] }
 0x564   : > { %5322 = vst [vmem:[%s6077_s18 + $0x2d0] sm:$0xff] %v4452_v27  ;;  %v7558_v27 = vld [vmem:[#allocation20_spill] sm:$0xff] }
 0x565   : > { %4972 = vmatmul.f32.gmra.mxu2 %v7530_v54 }
 0x566   : > { %5051 = vmatmul.f32.gmra.mxu3 %v7530_v54 }
 0x567   : > { %v4376_v17 = vpop.f32.mrf.mxu0 }
 0x568   : > { %v4377_v58 = vadd.f32 %v4376_v17, %v6982_v36  ;;  %v4455_v33 = vpop.f32.mrf.mxu1  ;;  %v4542_v38 = vpop.f32.mrf.mxu2 }
 0x569   : > { %v4681_v39 = vpop.f32.mrf.mxu3 }
 0x56a   : > { %v4456_v13 = vadd.f32 %v4455_v33, %v4377_v58  ;;  %4768 = vmatmul.f32.gmra.mxu0 %v7556_v35  ;;  %v7074_v32 = vadd.f32 %v4681_v39, %v4542_v38  ;;  %v7560_v38 = vld [vmem:[#allocation24_spill] sm:$0xff]  ;;  %v7561_v39 = vld [vmem:[#allocation26_spill] sm:$0xff] }
 0x56b   : > { %4865 = vmatmul.f32.gmra.mxu1 %v7557_v14 }
 0x56c   : > { %5324 = vst [vmem:[%s6077_s18 + $0x2e0] sm:$0xff] %v4456_v13 }
 0x56d   : > { %4976 = vmatmul.f32.gmra.mxu2 %v7535_v15 }
 0x56e   : > { %5055 = vmatmul.f32.gmra.mxu3 %v7535_v15 }
 0x56f   : > { %v4380_v54 = vpop.f32.mrf.mxu0 }
 0x570   : > { %v4381_v18 = vadd.f32 %v4380_v54, %v6988_v42  ;;  %v4459_v36 = vpop.f32.mrf.mxu1  ;;  %v4550_v28 = vpop.f32.mrf.mxu2 }
 0x571   : > { %v4685_v55 = vpop.f32.mrf.mxu3 }
 0x572   : > { %v4460_v2 = vadd.f32 %v4459_v36, %v4381_v18  ;;  %4773 = vmatmul.f32.gmra.mxu0 %v7558_v27  ;;  %v7082_v49 = vadd.f32 %v4685_v55, %v4550_v28 }
 0x573   : > { %4871 = vmatmul.f32.gmra.mxu1 %v7559_v26 }
 0x574   : > { %5326 = vst [vmem:[%s6077_s18 + $0x2f0] sm:$0xff] %v4460_v2 }
 0x575   : > { %4980 = vmatmul.f32.gmra.mxu2 %v7537_v25 }
 0x576   : > { %5059 = vmatmul.f32.gmra.mxu3 %v7537_v25 }
 0x577   : > { %v4384_v15 = vpop.f32.mrf.mxu0 }
 0x578   : > { %v4385_v17 = vadd.f32 %v4384_v15, %v6994_v45  ;;  %v4463_v42 = vpop.f32.mrf.mxu1  ;;  %v4558_v58 = vpop.f32.mrf.mxu2 }
 0x579   : > { %v4689_v13 = vpop.f32.mrf.mxu3 }
 0x57a   : > { %v4464_v33 = vadd.f32 %v4463_v42, %v4385_v17  ;;  %4778 = vmatmul.f32.gmra.mxu0 %v7560_v38  ;;  %v7090_v35 = vadd.f32 %v4689_v13, %v4558_v58 }
 0x57b   : > { %4877 = vmatmul.f32.gmra.mxu1 %v7561_v39 }
 0x57c   : > { %5328 = vst [vmem:[%s6077_s18 + $0x300] sm:$0xff] %v4464_v33 }
 0x57d   : > { %4984 = vmatmul.f32.gmra.mxu2 %v5753_v53 }
 0x57e   : > { %5063 = vmatmul.f32.gmra.mxu3 %v5753_v53 }
 0x57f   : > { %v4388_v25 = vpop.f32.mrf.mxu0 }
 0x580   : > { %v4389_v14 = vadd.f32 %v4388_v25, %v7000_v60  ;;  %v4467_v45 = vpop.f32.mrf.mxu1  ;;  %v4566_v54 = vpop.f32.mrf.mxu2 }
 0x581   : > { %v4693_v36 = vpop.f32.mrf.mxu3 }
 0x582   : > { %v4468_v18 = vadd.f32 %v4467_v45, %v4389_v14  ;;  %4783 = vmatmul.f32.gmra.mxu0 %v5762_v56  ;;  %v7098_v28 = vadd.f32 %v4693_v36, %v4566_v54 }
 0x583   : > { %4883 = vmatmul.f32.gmra.mxu1 %v5772_v61 }
 0x584   : > { %5330 = vst [vmem:[%s6077_s18 + $0x310] sm:$0xff] %v4468_v18 }
 0x585   : > { %4988 = vmatmul.f32.gmra.mxu2 %v5774_v62 }
 0x586   : > { %5067 = vmatmul.f32.gmra.mxu3 %v5774_v62 }
 0x587   : > { %v4392_v53 = vpop.f32.mrf.mxu0 }
 0x588   : > { %v4393_v2 = vadd.f32 %v4392_v53, %v7006_v22  ;;  %v4471_v60 = vpop.f32.mrf.mxu1  ;;  %v4574_v27 = vpop.f32.mrf.mxu2 }
 0x589   : > { %v4697_v56 = vpop.f32.mrf.mxu3 }
 0x58a   : > { %v4472_v55 = vadd.f32 %v4471_v60, %v4393_v2  ;;  %4788 = vmatmul.f32.gmra.mxu0 %v5785_v3  ;;  %v7106_v26 = vadd.f32 %v4697_v56, %v4574_v27 }
 0x58b   : > { %4889 = vmatmul.f32.gmra.mxu1 %v5794_v10 }
 0x58c   : > { %5332 = vst [vmem:[%s6077_s18 + $0x320] sm:$0xff] %v4472_v55 }
 0x58d   : > { %4992 = vmatmul.f32.gmra.mxu2 %v5796_v11 }
 0x58e   : > { %5071 = vmatmul.f32.gmra.mxu3 %v5796_v11 }
 0x58f   : > { %v4396_v61 = vpop.f32.mrf.mxu0 }
 0x590   : > { %v4397_v62 = vadd.f32 %v4396_v61, %v7012_v0  ;;  %v4475_v22 = vpop.f32.mrf.mxu1  ;;  %v4582_v15 = vpop.f32.mrf.mxu2 }
 0x591   : > { %v4701_v3 = vpop.f32.mrf.mxu3 }
 0x592   : > { %v4476_v17 = vadd.f32 %v4475_v22, %v4397_v62  ;;  %4793 = vmatmul.f32.gmra.mxu0 %v5806_v16  ;;  %v7114_v42 = vadd.f32 %v4701_v3, %v4582_v15 }
 0x593   : > { %4895 = vmatmul.f32.gmra.mxu1 %v5815_v9 }
 0x594   : > { %5334 = vst [vmem:[%s6077_s18 + $0x330] sm:$0xff] %v4476_v17 }
 0x595   : > { %4996 = vmatmul.f32.gmra.mxu2 %v5817_v20 }
 0x596   : > { %5075 = vmatmul.f32.gmra.mxu3 %v5817_v20 }
 0x597   : > { %v4400_v10 = vpop.f32.mrf.mxu0 }
 0x598   : > { %v4401_v11 = vadd.f32 %v4400_v10, %v7018_v47  ;;  %v4479_v0 = vpop.f32.mrf.mxu1  ;;  %v4590_v58 = vpop.f32.mrf.mxu2 }
 0x599   : > { %v4705_v16 = vpop.f32.mrf.mxu3 }
 0x59a   : > { %v4480_v33 = vadd.f32 %v4479_v0, %v4401_v11  ;;  %4798 = vmatmul.f32.gmra.mxu0 %v5826_v24  ;;  %v7122_v38 = vadd.f32 %v4705_v16, %v4590_v58 }
 0x59b   : > { %4901 = vmatmul.f32.gmra.mxu1 %v5835_v29 }
 0x59c   : > { %5336 = vst [vmem:[%s6077_s18 + $0x340] sm:$0xff] %v4480_v33 }
 0x59d   : > { %5000 = vmatmul.f32.gmra.mxu2 %v5837_v30 }
 0x59e   : > { %5079 = vmatmul.f32.gmra.mxu3 %v5837_v30 }
 0x59f   : > { %v4404_v9 = vpop.f32.mrf.mxu0 }
 0x5a0   : > { %v4405_v20 = vadd.f32 %v4404_v9, %v7024_v19  ;;  %v4483_v47 = vpop.f32.mrf.mxu1  ;;  %v4598_v13 = vpop.f32.mrf.mxu2 }
 0x5a1   : > { %v4709_v24 = vpop.f32.mrf.mxu3 }
 0x5a2   : > { %v4484_v39 = vadd.f32 %v4483_v47, %v4405_v20  ;;  %4803 = vmatmul.f32.gmra.mxu0 %v5846_v34  ;;  %v7130_v25 = vadd.f32 %v4709_v24, %v4598_v13 }
 0x5a3   : > { %4907 = vmatmul.f32.gmra.mxu1 %v5855_v41 }
 0x5a4   : > { %5338 = vst [vmem:[%s6077_s18 + $0x350] sm:$0xff] %v4484_v39 }
 0x5a5   : > { %5004 = vmatmul.f32.gmra.mxu2 %v5857_v43 }
 0x5a6   : > { %5083 = vmatmul.f32.gmra.mxu3 %v5857_v43 }
 0x5a7   : > { %v4408_v29 = vpop.f32.mrf.mxu0 }
 0x5a8   : > { %v4409_v30 = vadd.f32 %v4408_v29, %v7030_v40  ;;  %v4487_v19 = vpop.f32.mrf.mxu1  ;;  %v4606_v14 = vpop.f32.mrf.mxu2 }
 0x5a9   : > { %v4713_v34 = vpop.f32.mrf.mxu3 }
 0x5aa   : > { %v4488_v45 = vadd.f32 %v4487_v19, %v4409_v30  ;;  %4808 = vmatmul.f32.gmra.mxu0 %v5866_v50  ;;  %v7138_v54 = vadd.f32 %v4713_v34, %v4606_v14 }
 0x5ab   : > { %4913 = vmatmul.f32.gmra.mxu1 %v5875_v57 }
 0x5ac   : > { %5340 = vst [vmem:[%s6077_s18 + $0x360] sm:$0xff] %v4488_v45 }
 0x5ad   : > { %5008 = vmatmul.f32.gmra.mxu2 %v7463_v21 }
 0x5ae   : > { %5087 = vmatmul.f32.gmra.mxu3 %v7463_v21 }
 0x5af   : > { %v4412_v41 = vpop.f32.mrf.mxu0 }
 0x5b0   : > { %v4413_v43 = vadd.f32 %v4412_v41, %v7036_v7  ;;  %v4491_v40 = vpop.f32.mrf.mxu1  ;;  %v4614_v18 = vpop.f32.mrf.mxu2 }
 0x5b1   : > { %v4717_v50 = vpop.f32.mrf.mxu3 }
 0x5b2   : > { %v4492_v36 = vadd.f32 %v4491_v40, %v4413_v43  ;;  %4813 = vmatmul.f32.gmra.mxu0 %v7440_v63  ;;  %v7146_v53 = vadd.f32 %v4717_v50, %v4614_v18 }
 0x5b3   : > { %4919 = vmatmul.f32.gmra.mxu1 %v7441_v6 }
 0x5b4   : > { %5342 = vst [vmem:[%s6077_s18 + $0x370] sm:$0xff] %v4492_v36 }
 0x5b5   : > { %5012 = vmatmul.f32.gmra.mxu2 %v7466_v46 }
 0x5b6   : > { %5091 = vmatmul.f32.gmra.mxu3 %v7466_v46 }
 0x5b7   : > { %v4416_v57 = vpop.f32.mrf.mxu0 }
 0x5b8   : > { %v4417_v21 = vadd.f32 %v4416_v57, %v7042_v8  ;;  %v4495_v7 = vpop.f32.mrf.mxu1  ;;  %v4622_v2 = vpop.f32.mrf.mxu2 }
 0x5b9   : > { %v4721_v63 = vpop.f32.mrf.mxu3 }
 0x5ba   : > { %v4496_v60 = vadd.f32 %v4495_v7, %v4417_v21  ;;  %4818 = vmatmul.f32.gmra.mxu0 %v7464_v1  ;;  %v7154_v27 = vadd.f32 %v4721_v63, %v4622_v2 }
 0x5bb   : > { %4925 = vmatmul.f32.gmra.mxu1 %v7481_v44 }
 0x5bc   : > { %5344 = vst [vmem:[%s6077_s18 + $0x380] sm:$0xff] %v4496_v60 }
 0x5bd   : > { %5016 = vmatmul.f32.gmra.mxu2 %v7506_v4 }
 0x5be   : > { %5095 = vmatmul.f32.gmra.mxu3 %v7506_v4 }
 0x5bf   : > { %v4420_v6 = vpop.f32.mrf.mxu0 }
 0x5c0   : > { %v4421_v46 = vadd.f32 %v4420_v6, %v7048_v52  ;;  %v4499_v8 = vpop.f32.mrf.mxu1  ;;  %v4630_v55 = vpop.f32.mrf.mxu2 }
 0x5c1   : > { %v4725_v1 = vpop.f32.mrf.mxu3 }
 0x5c2   : > { %v4500_v56 = vadd.f32 %v4499_v8, %v4421_v46  ;;  %4823 = vmatmul.f32.gmra.mxu0 %v7482_v23  ;;  %v7162_v61 = vadd.f32 %v4725_v1, %v4630_v55 }
 0x5c3   : > { %4931 = vmatmul.f32.gmra.mxu1 %v7483_v37 }
 0x5c4   : > { %5346 = vst [vmem:[%s6077_s18 + $0x390] sm:$0xff] %v4500_v56 }
 0x5c5   : > { %5020 = vmatmul.f32.gmra.mxu2 %v7509_v5 }
 0x5c6   : > { %5099 = vmatmul.f32.gmra.mxu3 %v7509_v5 }
 0x5c7   : > { %v4424_v44 = vpop.f32.mrf.mxu0 }
 0x5c8   : > { %v4425_v4 = vadd.f32 %v4424_v44, %v7054_v31  ;;  %v4503_v52 = vpop.f32.mrf.mxu1  ;;  %v4638_v62 = vpop.f32.mrf.mxu2 }
 0x5c9   : > { %v4729_v23 = vpop.f32.mrf.mxu3 }
 0x5ca   : > { %v4504_v22 = vadd.f32 %v4503_v52, %v4425_v4  ;;  %4828 = vmatmul.f32.gmra.mxu0 %v7507_v59  ;;  %v7170_v15 = vadd.f32 %v4729_v23, %v4638_v62 }
 0x5cb   : > { %4937 = vmatmul.f32.gmra.mxu1 %v7447_v12 }
 0x5cc   : > { %5348 = vst [vmem:[%s6077_s18 + $0x3a0] sm:$0xff] %v4504_v22 }
 0x5cf   : > { %v4428_v37 = vpop.f32.mrf.mxu0 }
 0x5d0   : > { %v4429_v17 = vadd.f32 %v4428_v37, %v7060_v51  ;;  %v4507_v5 = vpop.f32.mrf.mxu1  ;;  %v4646_v3 = vpop.f32.mrf.mxu2 }
 0x5d1   : > { %v4733_v31 = vpop.f32.mrf.mxu3 }
 0x5d2   : > { %v4508_v10 = vadd.f32 %v4507_v5, %v4429_v17  ;;  %v7175_v11 = vadd.f32 %v4733_v31, %v4646_v3 }
 0x5d4   : > { %5350 = vst [vmem:[%s6077_s18 + $0x3b0] sm:$0xff] %v4508_v10 }
 0x5d7   : > { %v4759_v0 = vpop.f32.mrf.mxu0 }
 0x5d8   : > { %v4760_v59 = vadd.f32 %v4759_v0, %v7066_v48  ;;  %v4854_v58 = vpop.f32.mrf.mxu1  ;;  %v4965_v33 = vpop.f32.mrf.mxu2 }
 0x5d9   : > { %v5044_v9 = vpop.f32.mrf.mxu3 }
 0x5da   : > { %v4855_v16 = vadd.f32 %v4854_v58, %v4760_v59 }
 0x5dc   : > { %v4966_v12 = vadd.f32 %v4965_v33, %v4855_v16 }
 0x5de   : > { %v5045_v20 = vadd.f32 %v5044_v9, %v4966_v12 }
 0x5df   : > { %v4764_v47 = vpop.f32.mrf.mxu0 }
 0x5e0   : > { %5323 = vst [vmem:[%s6077_s18 + $0x2d8] sm:$0xff] %v5045_v20  ;;  %v4765_v51 = vadd.f32 %v4764_v47, %v7074_v32  ;;  %v4860_v13 = vpop.f32.mrf.mxu1  ;;  %v4969_v39 = vpop.f32.mrf.mxu2 }
 0x5e1   : > { %v5048_v29 = vpop.f32.mrf.mxu3 }
 0x5e2   : > { %v4861_v24 = vadd.f32 %v4860_v13, %v4765_v51 }
 0x5e4   : > { %v4970_v30 = vadd.f32 %v4969_v39, %v4861_v24 }
 0x5e6   : > { %v5049_v19 = vadd.f32 %v5048_v29, %v4970_v30 }
 0x5e7   : > { %v4769_v14 = vpop.f32.mrf.mxu0 }
 0x5e8   : > { %5325 = vst [vmem:[%s6077_s18 + $0x2e8] sm:$0xff] %v5049_v19  ;;  %v4770_v48 = vadd.f32 %v4769_v14, %v7082_v49  ;;  %v4866_v45 = vpop.f32.mrf.mxu1  ;;  %v4973_v34 = vpop.f32.mrf.mxu2 }
 0x5e9   : > { %v5052_v43 = vpop.f32.mrf.mxu3 }
 0x5ea   : > { %v4867_v41 = vadd.f32 %v4866_v45, %v4770_v48 }
 0x5ec   : > { %v4974_v40 = vadd.f32 %v4973_v34, %v4867_v41 }
 0x5ee   : > { %v5053_v18 = vadd.f32 %v5052_v43, %v4974_v40 }
 0x5ef   : > { %v4774_v36 = vpop.f32.mrf.mxu0 }
 0x5f0   : > { %5327 = vst [vmem:[%s6077_s18 + $0x2f8] sm:$0xff] %v5053_v18  ;;  %v4775_v32 = vadd.f32 %v4774_v36, %v7090_v35  ;;  %v4872_v50 = vpop.f32.mrf.mxu1  ;;  %v4977_v57 = vpop.f32.mrf.mxu2 }
 0x5f1   : > { %v5056_v7 = vpop.f32.mrf.mxu3 }
 0x5f2   : > { %v4873_v21 = vadd.f32 %v4872_v50, %v4775_v32 }
 0x5f4   : > { %v4978_v2 = vadd.f32 %v4977_v57, %v4873_v21 }
 0x5f6   : > { %v5057_v60 = vadd.f32 %v5056_v7, %v4978_v2 }
 0x5f7   : > { %v4779_v63 = vpop.f32.mrf.mxu0 }
 0x5f8   : > { %5329 = vst [vmem:[%s6077_s18 + $0x308] sm:$0xff] %v5057_v60  ;;  %v4780_v49 = vadd.f32 %v4779_v63, %v7098_v28  ;;  %v4878_v6 = vpop.f32.mrf.mxu1  ;;  %v4981_v46 = vpop.f32.mrf.mxu2 }
 0x5f9   : > { %v5060_v55 = vpop.f32.mrf.mxu3 }
 0x5fa   : > { %v4879_v8 = vadd.f32 %v4878_v6, %v4780_v49 }
 0x5fc   : > { %v4982_v56 = vadd.f32 %v4981_v46, %v4879_v8 }
 0x5fe   : > { %v5061_v1 = vadd.f32 %v5060_v55, %v4982_v56 }
 0x5ff   : > { %v4784_v44 = vpop.f32.mrf.mxu0 }
 0x600   : > { %5331 = vst [vmem:[%s6077_s18 + $0x318] sm:$0xff] %v5061_v1  ;;  %v4785_v35 = vadd.f32 %v4784_v44, %v7106_v26  ;;  %v4884_v4 = vpop.f32.mrf.mxu1  ;;  %v4985_v52 = vpop.f32.mrf.mxu2 }
 0x601   : > { %v5064_v22 = vpop.f32.mrf.mxu3 }
 0x602   : > { %v4885_v62 = vadd.f32 %v4884_v4, %v4785_v35 }
 0x604   : > { %v4986_v23 = vadd.f32 %v4985_v52, %v4885_v62 }
 0x606   : > { %v5065_v37 = vadd.f32 %v5064_v22, %v4986_v23 }
 0x607   : > { %v4789_v17 = vpop.f32.mrf.mxu0 }
 0x608   : > { %5333 = vst [vmem:[%s6077_s18 + $0x328] sm:$0xff] %v5065_v37  ;;  %v4790_v28 = vadd.f32 %v4789_v17, %v7114_v42  ;;  %v4890_v5 = vpop.f32.mrf.mxu1  ;;  %v4989_v3 = vpop.f32.mrf.mxu2 }
 0x609   : > { %v5068_v31 = vpop.f32.mrf.mxu3 }
 0x60a   : > { %v4891_v10 = vadd.f32 %v4890_v5, %v4790_v28 }
 0x60c   : > { %v4990_v0 = vadd.f32 %v4989_v3, %v4891_v10 }
 0x60e   : > { %v5069_v59 = vadd.f32 %v5068_v31, %v4990_v0 }
 0x60f   : > { %v4794_v58 = vpop.f32.mrf.mxu0 }
 0x610   : > { %5335 = vst [vmem:[%s6077_s18 + $0x338] sm:$0xff] %v5069_v59  ;;  %v4795_v26 = vadd.f32 %v4794_v58, %v7122_v38  ;;  %v4896_v33 = vpop.f32.mrf.mxu1  ;;  %v4993_v16 = vpop.f32.mrf.mxu2 }
 0x611   : > { %v5072_v12 = vpop.f32.mrf.mxu3 }
 0x612   : > { %v4897_v9 = vadd.f32 %v4896_v33, %v4795_v26 }
 0x614   : > { %v4994_v20 = vadd.f32 %v4993_v16, %v4897_v9 }
 0x616   : > { %v5073_v47 = vadd.f32 %v5072_v12, %v4994_v20 }
 0x617   : > { %v4799_v51 = vpop.f32.mrf.mxu0 }
 0x618   : > { %5337 = vst [vmem:[%s6077_s18 + $0x348] sm:$0xff] %v5073_v47  ;;  %v4800_v42 = vadd.f32 %v4799_v51, %v7130_v25  ;;  %v4902_v13 = vpop.f32.mrf.mxu1  ;;  %v4997_v39 = vpop.f32.mrf.mxu2 }
 0x619   : > { %v5076_v29 = vpop.f32.mrf.mxu3 }
 0x61a   : > { %v4903_v24 = vadd.f32 %v4902_v13, %v4800_v42 }
 0x61c   : > { %v4998_v30 = vadd.f32 %v4997_v39, %v4903_v24 }
 0x61e   : > { %v5077_v19 = vadd.f32 %v5076_v29, %v4998_v30 }
 0x61f   : > { %v4804_v14 = vpop.f32.mrf.mxu0 }
 0x620   : > { %5339 = vst [vmem:[%s6077_s18 + $0x358] sm:$0xff] %v5077_v19  ;;  %v4805_v38 = vadd.f32 %v4804_v14, %v7138_v54  ;;  %v4908_v48 = vpop.f32.mrf.mxu1  ;;  %v5001_v45 = vpop.f32.mrf.mxu2 }
 0x621   : > { %v5080_v41 = vpop.f32.mrf.mxu3 }
 0x622   : > { %v4909_v34 = vadd.f32 %v4908_v48, %v4805_v38 }
 0x624   : > { %v5002_v43 = vadd.f32 %v5001_v45, %v4909_v34 }
 0x626   : > { %v5081_v40 = vadd.f32 %v5080_v41, %v5002_v43 }
 0x627   : > { %v4809_v18 = vpop.f32.mrf.mxu0 }
 0x628   : > { %5341 = vst [vmem:[%s6077_s18 + $0x368] sm:$0xff] %v5081_v40  ;;  %v4810_v25 = vadd.f32 %v4809_v18, %v7146_v53  ;;  %v4914_v36 = vpop.f32.mrf.mxu1  ;;  %v5005_v32 = vpop.f32.mrf.mxu2 }
 0x629   : > { %v5084_v57 = vpop.f32.mrf.mxu3 }
 0x62a   : > { %v4915_v50 = vadd.f32 %v4914_v36, %v4810_v25 }
 0x62c   : > { %v5006_v21 = vadd.f32 %v5005_v32, %v4915_v50 }
 0x62e   : > { %v5085_v7 = vadd.f32 %v5084_v57, %v5006_v21 }
 0x62f   : > { %v4814_v2 = vpop.f32.mrf.mxu0 }
 0x630   : > { %5343 = vst [vmem:[%s6077_s18 + $0x378] sm:$0xff] %v5085_v7  ;;  %v4815_v54 = vadd.f32 %v4814_v2, %v7154_v27  ;;  %v4920_v60 = vpop.f32.mrf.mxu1  ;;  %v5009_v63 = vpop.f32.mrf.mxu2 }
 0x631   : > { %v5088_v6 = vpop.f32.mrf.mxu3 }
 0x632   : > { %v4921_v49 = vadd.f32 %v4920_v60, %v4815_v54 }
 0x634   : > { %v5010_v46 = vadd.f32 %v5009_v63, %v4921_v49 }
 0x636   : > { %v5089_v8 = vadd.f32 %v5088_v6, %v5010_v46 }
 0x637   : > { %v4819_v55 = vpop.f32.mrf.mxu0 }
 0x638   : > { %5345 = vst [vmem:[%s6077_s18 + $0x388] sm:$0xff] %v5089_v8  ;;  %v4820_v53 = vadd.f32 %v4819_v55, %v7162_v61  ;;  %v4926_v56 = vpop.f32.mrf.mxu1  ;;  %v5013_v1 = vpop.f32.mrf.mxu2 }
 0x639   : > { %v5092_v35 = vpop.f32.mrf.mxu3 }
 0x63a   : > { %v4927_v44 = vadd.f32 %v4926_v56, %v4820_v53 }
 0x63c   : > { %v5014_v4 = vadd.f32 %v5013_v1, %v4927_v44 }
 0x63e   : > { %v5093_v52 = vadd.f32 %v5092_v35, %v5014_v4 }
 0x63f   : > { %v4824_v27 = vpop.f32.mrf.mxu0 }
 0x640   : > { %5347 = vst [vmem:[%s6077_s18 + $0x398] sm:$0xff] %v5093_v52  ;;  %v4825_v62 = vadd.f32 %v4824_v27, %v7170_v15  ;;  %v4932_v22 = vpop.f32.mrf.mxu1  ;;  %v5017_v23 = vpop.f32.mrf.mxu2 }
 0x641   : > { %v5096_v17 = vpop.f32.mrf.mxu3 }
 0x642   : > { %v4933_v37 = vadd.f32 %v4932_v22, %v4825_v62 }
 0x644   : > { %v5018_v28 = vadd.f32 %v5017_v23, %v4933_v37 }
 0x646   : > { %v5097_v61 = vadd.f32 %v5096_v17, %v5018_v28 }
 0x647   : > { %v4829_v5 = vpop.f32.mrf.mxu0 }
 0x648   : > { %5349 = vst [vmem:[%s6077_s18 + $0x3a8] sm:$0xff] %v5097_v61  ;;  %v4830_v3 = vadd.f32 %v4829_v5, %v7175_v11  ;;  %v4938_v10 = vpop.f32.mrf.mxu1  ;;  %v5021_v15 = vpop.f32.mrf.mxu2 }
 0x649   : > { %v5100_v0 = vpop.f32.mrf.mxu3 }
 0x64a   : > { %v4939_v31 = vadd.f32 %v4938_v10, %v4830_v3 }
 0x64c   : > { %v5022_v59 = vadd.f32 %v5021_v15, %v4939_v31 }
 0x64e   : > { %v5101_v58 = vadd.f32 %v5100_v0, %v5022_v59 }
 0x650   : > { %5351 = vst [vmem:[%s6077_s18 + $0x3b8] sm:$0xff] %v5101_v58 }
 0x651   : > { %5484 = shalt.err (!%p5481_p13)
}
 0x652   : > { %s5543_s15 = smov 256   ;;  %s5544_s7 = smov 16  }
 0x653   : > { %5363 = dma.vmem_to_hbm [thread:$0]  (%p5611_p9), %s5151_s27, 15360, %s5153_s21, %s5135_s12, %s5543_s15, %s5543_s15, %s5544_s7  }
 0x654 PF: > { %s5167_s8 = sand.u32 1, %s5519_s9   ;;  %p5370_p0 = pnand %p5243_p12, %p5618_p11 }
 0x655   : > { %s5168_s16 = scalar_lea.sflag [#allocation4], %s5167_s8 }
 0x656   : > { %p5371_p1 = pneg %p5370_p0 }
 0x658   : > { %5514 = dma.done.wait (%p5371_p1), %s5168_s16, 15360  }
 0x659   : > { %5516 = vsyncadd (%p5371_p1), %s5168_s16, 4294951936  ;;  %s18_s14 = sadd.s32 1, %s5539_s14   ;;  %s7562_s9 = smov %s5523_s10 }
 0x65a   : > { %p15_p2 = scmp.ge.s32.totalorder %s18_s14, 4   ;;  %s7563_s10 = smov %s5527_s11 }
 0x65b   : > { %s7564_s11 = smov %s5616_s23  ;;  %s7565_s12 = smov %s5535_s13 }
 0x65c   : > { %s7566_s13 = smov %s7568_s17  ;;  %17 = sbr.rel (!%p15_p2) target bundleno = 6 (0x6), region = 79 }
 0x661   :  { %5174 = vsyncpa [#allocation3], 1 }
 0x662   :  { %5176 = vsyncpa [#allocation3 + $0x1], 1 }
 0x663   :  { %5177 = vsyncpa [#allocation4], 1 }
 0x664   :  { %5179 = vsyncpa [#allocation4 + $0x1], 1 }

</bundles_post_ra>
